<compile_context>
chip_gen: v6e
topology: v6e:2x2x1
jax: 0.10.0
libtpu: 0.0.40
codegen_flags: <defaults>
</compile_context>

<pallas_src>
import functools

import jax
import jax.numpy as jnp
from jax import lax
from jax.experimental import pallas as pl
from jax.experimental.pallas import tpu as pltpu

_LANE = 128
_MIB = 1024 * 1024


def _appnp_kernel(adj_ref, norm_ref, h0_ref, out_ref, y_ref, *,
                  k_layers: int, alpha: float, n_chains: int):
    """One grid step = all N nodes x one lane-dense tile of feature columns."""
    s = norm_ref[...]                                   # (N, 1) f32, deg^{-1/2}
    adj = adj_ref[...]                                  # (N, N) bf16, exact 0/1
    inv_s = 1.0 / s                                     # deg^{+1/2}
    csa = (1.0 - alpha) * s * s                         # (1-alpha) * deg^{-1}, hoisted

    tf = y_ref.shape[1]
    w = tf // n_chains
    cols = [slice(c * w, (c + 1) * w) for c in range(n_chains)]

    # Loop-invariant terms, hoisted out of the K loop.
    y0 = [h0_ref[:, c].astype(jnp.float32) * inv_s for c in cols]
    ay0 = [alpha * v for v in y0]
    for c, v in zip(cols, y0):
        y_ref[:, c] = v

    # Fully unrolled power iteration (k_layers is a compile-time closure constant).
    # Per chain: one row-scale + one bf16 MXU matmul (f32 accumulate) + one add.
    # Chains are data-independent within an iteration, so the scheduler can
    # interleave their vmatmul pushes / result pops.
    for _ in range(k_layers):
        t = [(csa * y_ref[:, c]).astype(adj.dtype) for c in cols]
        r = [jnp.dot(adj, tc, preferred_element_type=jnp.float32) for tc in t]
        for c, a0, rc in zip(cols, ay0, r):
            y_ref[:, c] = rc + a0

    for c in cols:
        out_ref[:, c] = (s * y_ref[:, c]).astype(out_ref.dtype)


def _tpu_target():
    """Best-effort (vmem_bytes_per_core, tensorcores_per_chip)."""
    kind = ""
    try:
        kind = jax.devices()[0].device_kind.lower()
    except Exception:
        pass
    is_v7 = ("v7" in kind) or ("7x" in kind)
    vmem = None
    try:
        vmem = int(pltpu.get_tpu_info().vmem_capacity_bytes)
    except Exception:
        vmem = None
    if not vmem or vmem <= 0:
        vmem = 64 * _MIB if is_v7 else 128 * _MIB
    if is_v7:
        vmem = min(vmem, 64 * _MIB)     # per-TC VMEM is the real constraint on v7x
    return vmem, (2 if is_v7 else 1)


def _est_vmem_bytes(n, tile_f, adj_bytes, const_bufs=1):
    adj = const_bufs * n * n * adj_bytes            # adjacency block(s)
    norm = const_bufs * n * _LANE * 4               # (N,1) block lane-pads to (N,128)
    feat_io = 2 * 2 * n * tile_f * 4                # h0 + out blocks, double-buffered
    y = n * tile_f * 4                              # power-iteration carry scratch
    tmp = n * tile_f * (2 + 4)                      # bf16 matmul operand + f32 result temps
    return adj + norm + feat_io + y + tmp


def _pick_tile_f(n, f, adj_bytes, vmem_budget, num_cores):
    cands = [d for d in range(f, 0, -1) if f % d == 0 and d % _LANE == 0]
    if not cands:
        cands = [f]                                 # non-lane-aligned F: one full-width block
    fits = [d for d in cands if _est_vmem_bytes(n, d, adj_bytes) <= vmem_budget]
    if not fits:
        fits = [cands[-1]]
    if num_cores >= 2:
        # v7x: keep an even grid-step count so both TensorCores get equal work.
        even = [d for d in fits if (f // d) % num_cores == 0]
        if even:
            return even[0]
    # Single-TC chips (v5e/v6e): fewest grid steps / widest MXU RHS that fits VMEM.
    return fits[0]


def _build_appnp_call(n, f, tile_f, out_dtype, compute_dtype, k_layers, alpha,
                      n_chains, vmem_limit, single_buffer_const):
    kernel = functools.partial(_appnp_kernel, k_layers=k_layers, alpha=alpha,
                               n_chains=n_chains)
    spec_kw = {}
    if single_buffer_const:
        # Constant-index blocks (same tile every grid step): second pipeline buffer
        # is pure VMEM waste -> single-buffer them.
        spec_kw = dict(pipeline_mode=pl.Buffered(1))
    adj_spec = pl.BlockSpec((n, n), lambda j: (0, 0), **spec_kw)
    norm_spec = pl.BlockSpec((n, 1), lambda j: (0, 0), **spec_kw)

    adj_bytes = jnp.dtype(compute_dtype).itemsize
    cost = pl.CostEstimate(
        flops=2 * k_layers * n * n * f,
        transcendentals=0,
        bytes_accessed=n * n * adj_bytes + 2 * n * f * 4 + n * 4,
    )
    return pl.pallas_call(
        kernel,
        out_shape=jax.ShapeDtypeStruct((n, f), out_dtype),
        grid_spec=pltpu.PrefetchScalarGridSpec(
            num_scalar_prefetch=0,
            grid=(f // tile_f,),
            in_specs=[
                adj_spec,                                       # raw adjacency (constant block)
                norm_spec,                                      # deg^{-1/2} vector
                pl.BlockSpec((n, tile_f), lambda j: (0, j)),    # feature-column tile
            ],
            out_specs=pl.BlockSpec((n, tile_f), lambda j: (0, j)),
            scratch_shapes=[pltpu.VMEM((n, tile_f), jnp.float32)],   # power-iteration carry
        ),
        compiler_params=pltpu.CompilerParams(
            # TODO(synk): evaluate pltpu.CORE_PARALLEL on v7x if plain "parallel" does not
            # already shard the feature grid across both TensorCores.
            dimension_semantics=("parallel",),
            vmem_limit_bytes=int(vmem_limit),
        ),
        cost_estimate=cost,
    )


def appnp_forward(features, adj, *, k_layers: int, alpha: float,
                  tile_f: int | None = None, compute_dtype=jnp.bfloat16):
    """APPNP forward. features: (N, F) float32, adj: (N, N) dense 0/1 (any float dtype)."""
    n, f = features.shape
    assert adj.shape == (n, n)

    vmem_cap, num_cores = _tpu_target()
    # Leave headroom for compiler-internal scratch; ~100 MiB on 128 MiB chips, ~52 MiB on v7x.
    vmem_limit = max(min(vmem_cap - 12 * _MIB, 100 * _MIB), 32 * _MIB)
    adj_bytes = jnp.dtype(compute_dtype).itemsize

    if tile_f is None:
        tile_f = _pick_tile_f(n, f, adj_bytes, int(vmem_limit * 0.9), num_cores)
    assert f % tile_f == 0, "feature dim must be a multiple of tile_f"
    assert tile_f % _LANE == 0 or tile_f == f, "tile_f must be lane-dense (multiple of 128)"

    # Lane-pad-aware VMEM budget check (single-buffered constant blocks).
    # TODO(synk): for N beyond this cap, stream the adjacency from HBM (memory_space=pl.ANY +
    # pltpu.emit_pipeline over node blocks) instead of holding one (N,N) VMEM block.
    est = _est_vmem_bytes(n, tile_f, adj_bytes, const_bufs=1)
    assert est <= vmem_limit, (
        f"estimated VMEM {est / _MIB:.1f} MiB exceeds the {vmem_limit / _MIB:.0f} MiB budget; "
        "tile the node dimension (adjacency streaming path not implemented)")

    # Glue (plain JAX, cheap): per-node symmetric-normalization vector only; the (N,N)
    # anorm matrix is never materialized -- normalization is fused in-kernel.
    deg = jnp.maximum(jnp.sum(adj, axis=1, dtype=jnp.float32), 1.0)   # clamp(min=1)
    norm = lax.rsqrt(deg).reshape(n, 1).astype(jnp.float32)           # deg^{-1/2}
    # TODO(synk): int8 (v5e/v6e) / fp8-e4m3 (v7x) adjacency would halve HBM traffic; keeping
    # bf16 (0/1 exact) until narrow-dtype x bf16 mixed matmul support is verified.
    adj_c = adj.astype(compute_dtype)

    # Two independent column chains when the tile splits into lane-dense halves.
    n_chains = 2 if tile_f % (2 * _LANE) == 0 else 1

    last_err = None
    for single_buf in (True, False):
        try:
            call = _build_appnp_call(n, f, tile_f, features.dtype, compute_dtype,
                                     k_layers, alpha, n_chains, vmem_limit, single_buf)
            out = call(adj_c, norm, features)
            jax.block_until_ready(out)
            return out
        except Exception as e:  # pl.Buffered(1) unsupported on this build -> double-buffer
            last_err = e
    raise last_err


def _appnp_ref(features, adj, *, k_layers: int, alpha: float):
    adj = adj.astype(jnp.float32)
    deg = jnp.maximum(jnp.sum(adj, axis=1), 1.0)
    norm = deg ** -0.5
    anorm = adj * norm[:, None] * norm[None, :]
    h = features
    for _ in range(k_layers):
        h = (1.0 - alpha) * (anorm @ h) + alpha * features
    return h


if __name__ == "__main__":
    key = jax.random.PRNGKey(0)
    k_feat, k_adj = jax.random.split(key)

    N = 128      # nodes
    F = 256      # feature channels
    K_LAYERS = 4
    ALPHA = 0.1

    features = jax.random.normal(k_feat, (N, F), dtype=jnp.float32)
    # Random sparse-ish 0/1 adjacency (with self loops); 0/1 is exact in bf16.
    adj = (jax.random.uniform(k_adj, (N, N)) < 0.05).astype(jnp.bfloat16)
    adj = jnp.maximum(adj, jnp.eye(N, dtype=jnp.bfloat16))

    out = appnp_forward(features, adj, k_layers=K_LAYERS, alpha=ALPHA)
    out = jax.block_until_ready(out)

    ref = _appnp_ref(features, adj, k_layers=K_LAYERS, alpha=ALPHA)
    assert out.shape == (N, F)
    # bf16 MXU operands (f32 accumulate) -> ~1e-3..1e-2 deviation vs the f32 reference.
    assert jnp.allclose(out, ref, atol=3e-2, rtol=3e-2), "mismatch vs reference"

    print("KERNEL_OK")
</pallas_src>

<mosaic_0001>
module attributes {stable_mosaic.version = 11 : i64} {
  func.func @_appnp_kernel(%arg0: i32, %arg1: memref<128x128xbf16, #tpu.memory_space<vmem>>, %arg2: memref<128x1xf32, #tpu.memory_space<vmem>>, %arg3: memref<128x256xf32, #tpu.memory_space<vmem>>, %arg4: memref<128x256xf32, #tpu.memory_space<vmem>>, %arg5: memref<128x256xf32, #tpu.memory_space<vmem>>) attributes {dimension_semantics = [#tpu.dimension_semantics<parallel>], iteration_bounds = array<i64: 1>, scalar_prefetch = 0 : i64, scratch_operands = 1 : i64, tpu.core_type = #tpu.core_type<tc>, window_params = [{pipeline_mode = #tpu.pipeline_mode<synchronous>, transform_indices = @transform_0, window_bounds = array<i64: 128, 128>}, {pipeline_mode = #tpu.pipeline_mode<synchronous>, transform_indices = @transform_1, window_bounds = array<i64: 128, 1>}, {transform_indices = @transform_2, window_bounds = array<i64: 128, 256>}, {transform_indices = @transform_3, window_bounds = array<i64: 128, 256>}]} {
    %c0 = arith.constant 0 : index
    %c0_0 = arith.constant 0 : index
    %0 = vector.load %arg2[%c0, %c0_0] : memref<128x1xf32, #tpu.memory_space<vmem>>, vector<128x1xf32>
    %c0_1 = arith.constant 0 : index
    %c0_2 = arith.constant 0 : index
    %1 = vector.load %arg1[%c0_1, %c0_2] : memref<128x128xbf16, #tpu.memory_space<vmem>>, vector<128x128xbf16>
    %cst = arith.constant 1.000000e+00 : f32
    %2 = vector.broadcast %cst : f32 to vector<128x1xf32>
    %3 = arith.divf %2, %0 : vector<128x1xf32>
    %cst_3 = arith.constant 0.899999976 : f32
    %4 = vector.broadcast %cst_3 : f32 to vector<128x1xf32>
    %5 = arith.mulf %4, %0 : vector<128x1xf32>
    %6 = arith.mulf %5, %0 : vector<128x1xf32>
    %c0_4 = arith.constant 0 : index
    %c0_5 = arith.constant 0 : index
    %7 = vector.load %arg3[%c0_4, %c0_5] : memref<128x256xf32, #tpu.memory_space<vmem>>, vector<128x128xf32>
    %8 = vector.broadcast %3 : vector<128x1xf32> to vector<128x128xf32>
    %9 = arith.mulf %7, %8 : vector<128x128xf32>
    %c0_6 = arith.constant 0 : index
    %c128 = arith.constant 128 : index
    %10 = vector.load %arg3[%c0_6, %c128] : memref<128x256xf32, #tpu.memory_space<vmem>>, vector<128x128xf32>
    %11 = vector.broadcast %3 : vector<128x1xf32> to vector<128x128xf32>
    %12 = arith.mulf %10, %11 : vector<128x128xf32>
    %cst_7 = arith.constant 1.000000e-01 : f32
    %13 = vector.broadcast %cst_7 : f32 to vector<128x128xf32>
    %14 = arith.mulf %13, %9 : vector<128x128xf32>
    %cst_8 = arith.constant 1.000000e-01 : f32
    %15 = vector.broadcast %cst_8 : f32 to vector<128x128xf32>
    %16 = arith.mulf %15, %12 : vector<128x128xf32>
    %c0_9 = arith.constant 0 : index
    %c0_10 = arith.constant 0 : index
    %17 = vector.load %arg5[%c0_9, %c0_10] : memref<128x256xf32, #tpu.memory_space<vmem>>, vector<128x128xf32>
    tpu.vector_store %arg5[%c0_9, %c0_10], %9 {strides = array<i32>} : memref<128x256xf32, #tpu.memory_space<vmem>>, vector<128x128xf32>,
    %c0_11 = arith.constant 0 : index
    %c128_12 = arith.constant 128 : index
    %18 = vector.load %arg5[%c0_11, %c128_12] : memref<128x256xf32, #tpu.memory_space<vmem>>, vector<128x128xf32>
    tpu.vector_store %arg5[%c0_11, %c128_12], %12 {strides = array<i32>} : memref<128x256xf32, #tpu.memory_space<vmem>>, vector<128x128xf32>,
    %c0_13 = arith.constant 0 : index
    %c0_14 = arith.constant 0 : index
    %19 = vector.load %arg5[%c0_13, %c0_14] : memref<128x256xf32, #tpu.memory_space<vmem>>, vector<128x128xf32>
    %20 = vector.broadcast %6 : vector<128x1xf32> to vector<128x128xf32>
    %21 = arith.mulf %20, %19 : vector<128x128xf32>
    %22 = arith.truncf %21 : vector<128x128xf32> to vector<128x128xbf16>
    %c0_15 = arith.constant 0 : index
    %c128_16 = arith.constant 128 : index
    %23 = vector.load %arg5[%c0_15, %c128_16] : memref<128x256xf32, #tpu.memory_space<vmem>>, vector<128x128xf32>
    %24 = vector.broadcast %6 : vector<128x1xf32> to vector<128x128xf32>
    %25 = arith.mulf %24, %23 : vector<128x128xf32>
    %26 = arith.truncf %25 : vector<128x128xf32> to vector<128x128xbf16>
    %cst_17 = arith.constant dense<0.000000e+00> : vector<128x128xf32>
    %27 = tpu.matmul %1, %22, %cst_17 {dimension_numbers = #tpu.dot_dimension_numbers<[1], [0], [0], [1], [0, 0, 1, 1], [], []>} : vector<128x128xbf16>, vector<128x128xbf16>, vector<128x128xf32> -> vector<128x128xf32>
    %cst_18 = arith.constant dense<0.000000e+00> : vector<128x128xf32>
    %28 = tpu.matmul %1, %26, %cst_18 {dimension_numbers = #tpu.dot_dimension_numbers<[1], [0], [0], [1], [0, 0, 1, 1], [], []>} : vector<128x128xbf16>, vector<128x128xbf16>, vector<128x128xf32> -> vector<128x128xf32>
    %29 = arith.addf %27, %14 : vector<128x128xf32>
    %c0_19 = arith.constant 0 : index
    %c0_20 = arith.constant 0 : index
    %30 = vector.load %arg5[%c0_19, %c0_20] : memref<128x256xf32, #tpu.memory_space<vmem>>, vector<128x128xf32>
    tpu.vector_store %arg5[%c0_19, %c0_20], %29 {strides = array<i32>} : memref<128x256xf32, #tpu.memory_space<vmem>>, vector<128x128xf32>,
    %31 = arith.addf %28, %16 : vector<128x128xf32>
    %c0_21 = arith.constant 0 : index
    %c128_22 = arith.constant 128 : index
    %32 = vector.load %arg5[%c0_21, %c128_22] : memref<128x256xf32, #tpu.memory_space<vmem>>, vector<128x128xf32>
    tpu.vector_store %arg5[%c0_21, %c128_22], %31 {strides = array<i32>} : memref<128x256xf32, #tpu.memory_space<vmem>>, vector<128x128xf32>,
    %c0_23 = arith.constant 0 : index
    %c0_24 = arith.constant 0 : index
    %33 = vector.load %arg5[%c0_23, %c0_24] : memref<128x256xf32, #tpu.memory_space<vmem>>, vector<128x128xf32>
    %34 = vector.broadcast %6 : vector<128x1xf32> to vector<128x128xf32>
    %35 = arith.mulf %34, %33 : vector<128x128xf32>
    %36 = arith.truncf %35 : vector<128x128xf32> to vector<128x128xbf16>
    %c0_25 = arith.constant 0 : index
    %c128_26 = arith.constant 128 : index
    %37 = vector.load %arg5[%c0_25, %c128_26] : memref<128x256xf32, #tpu.memory_space<vmem>>, vector<128x128xf32>
    %38 = vector.broadcast %6 : vector<128x1xf32> to vector<128x128xf32>
    %39 = arith.mulf %38, %37 : vector<128x128xf32>
    %40 = arith.truncf %39 : vector<128x128xf32> to vector<128x128xbf16>
    %cst_27 = arith.constant dense<0.000000e+00> : vector<128x128xf32>
    %41 = tpu.matmul %1, %36, %cst_27 {dimension_numbers = #tpu.dot_dimension_numbers<[1], [0], [0], [1], [0, 0, 1, 1], [], []>} : vector<128x128xbf16>, vector<128x128xbf16>, vector<128x128xf32> -> vector<128x128xf32>
    %cst_28 = arith.constant dense<0.000000e+00> : vector<128x128xf32>
    %42 = tpu.matmul %1, %40, %cst_28 {dimension_numbers = #tpu.dot_dimension_numbers<[1], [0], [0], [1], [0, 0, 1, 1], [], []>} : vector<128x128xbf16>, vector<128x128xbf16>, vector<128x128xf32> -> vector<128x128xf32>
    %43 = arith.addf %41, %14 : vector<128x128xf32>
    %c0_29 = arith.constant 0 : index
    %c0_30 = arith.constant 0 : index
    %44 = vector.load %arg5[%c0_29, %c0_30] : memref<128x256xf32, #tpu.memory_space<vmem>>, vector<128x128xf32>
    tpu.vector_store %arg5[%c0_29, %c0_30], %43 {strides = array<i32>} : memref<128x256xf32, #tpu.memory_space<vmem>>, vector<128x128xf32>,
    %45 = arith.addf %42, %16 : vector<128x128xf32>
    %c0_31 = arith.constant 0 : index
    %c128_32 = arith.constant 128 : index
    %46 = vector.load %arg5[%c0_31, %c128_32] : memref<128x256xf32, #tpu.memory_space<vmem>>, vector<128x128xf32>
    tpu.vector_store %arg5[%c0_31, %c128_32], %45 {strides = array<i32>} : memref<128x256xf32, #tpu.memory_space<vmem>>, vector<128x128xf32>,
    %c0_33 = arith.constant 0 : index
    %c0_34 = arith.constant 0 : index
    %47 = vector.load %arg5[%c0_33, %c0_34] : memref<128x256xf32, #tpu.memory_space<vmem>>, vector<128x128xf32>
    %48 = vector.broadcast %6 : vector<128x1xf32> to vector<128x128xf32>
    %49 = arith.mulf %48, %47 : vector<128x128xf32>
    %50 = arith.truncf %49 : vector<128x128xf32> to vector<128x128xbf16>
    %c0_35 = arith.constant 0 : index
    %c128_36 = arith.constant 128 : index
    %51 = vector.load %arg5[%c0_35, %c128_36] : memref<128x256xf32, #tpu.memory_space<vmem>>, vector<128x128xf32>
    %52 = vector.broadcast %6 : vector<128x1xf32> to vector<128x128xf32>
    %53 = arith.mulf %52, %51 : vector<128x128xf32>
    %54 = arith.truncf %53 : vector<128x128xf32> to vector<128x128xbf16>
    %cst_37 = arith.constant dense<0.000000e+00> : vector<128x128xf32>
    %55 = tpu.matmul %1, %50, %cst_37 {dimension_numbers = #tpu.dot_dimension_numbers<[1], [0], [0], [1], [0, 0, 1, 1], [], []>} : vector<128x128xbf16>, vector<128x128xbf16>, vector<128x128xf32> -> vector<128x128xf32>
    %cst_38 = arith.constant dense<0.000000e+00> : vector<128x128xf32>
    %56 = tpu.matmul %1, %54, %cst_38 {dimension_numbers = #tpu.dot_dimension_numbers<[1], [0], [0], [1], [0, 0, 1, 1], [], []>} : vector<128x128xbf16>, vector<128x128xbf16>, vector<128x128xf32> -> vector<128x128xf32>
    %57 = arith.addf %55, %14 : vector<128x128xf32>
    %c0_39 = arith.constant 0 : index
    %c0_40 = arith.constant 0 : index
    %58 = vector.load %arg5[%c0_39, %c0_40] : memref<128x256xf32, #tpu.memory_space<vmem>>, vector<128x128xf32>
    tpu.vector_store %arg5[%c0_39, %c0_40], %57 {strides = array<i32>} : memref<128x256xf32, #tpu.memory_space<vmem>>, vector<128x128xf32>,
    %59 = arith.addf %56, %16 : vector<128x128xf32>
    %c0_41 = arith.constant 0 : index
    %c128_42 = arith.constant 128 : index
    %60 = vector.load %arg5[%c0_41, %c128_42] : memref<128x256xf32, #tpu.memory_space<vmem>>, vector<128x128xf32>
    tpu.vector_store %arg5[%c0_41, %c128_42], %59 {strides = array<i32>} : memref<128x256xf32, #tpu.memory_space<vmem>>, vector<128x128xf32>,
    %c0_43 = arith.constant 0 : index
    %c0_44 = arith.constant 0 : index
    %61 = vector.load %arg5[%c0_43, %c0_44] : memref<128x256xf32, #tpu.memory_space<vmem>>, vector<128x128xf32>
    %62 = vector.broadcast %6 : vector<128x1xf32> to vector<128x128xf32>
    %63 = arith.mulf %62, %61 : vector<128x128xf32>
    %64 = arith.truncf %63 : vector<128x128xf32> to vector<128x128xbf16>
    %c0_45 = arith.constant 0 : index
    %c128_46 = arith.constant 128 : index
    %65 = vector.load %arg5[%c0_45, %c128_46] : memref<128x256xf32, #tpu.memory_space<vmem>>, vector<128x128xf32>
    %66 = vector.broadcast %6 : vector<128x1xf32> to vector<128x128xf32>
    %67 = arith.mulf %66, %65 : vector<128x128xf32>
    %68 = arith.truncf %67 : vector<128x128xf32> to vector<128x128xbf16>
    %cst_47 = arith.constant dense<0.000000e+00> : vector<128x128xf32>
    %69 = tpu.matmul %1, %64, %cst_47 {dimension_numbers = #tpu.dot_dimension_numbers<[1], [0], [0], [1], [0, 0, 1, 1], [], []>} : vector<128x128xbf16>, vector<128x128xbf16>, vector<128x128xf32> -> vector<128x128xf32>
    %cst_48 = arith.constant dense<0.000000e+00> : vector<128x128xf32>
    %70 = tpu.matmul %1, %68, %cst_48 {dimension_numbers = #tpu.dot_dimension_numbers<[1], [0], [0], [1], [0, 0, 1, 1], [], []>} : vector<128x128xbf16>, vector<128x128xbf16>, vector<128x128xf32> -> vector<128x128xf32>
    %71 = arith.addf %69, %14 : vector<128x128xf32>
    %c0_49 = arith.constant 0 : index
    %c0_50 = arith.constant 0 : index
    %72 = vector.load %arg5[%c0_49, %c0_50] : memref<128x256xf32, #tpu.memory_space<vmem>>, vector<128x128xf32>
    tpu.vector_store %arg5[%c0_49, %c0_50], %71 {strides = array<i32>} : memref<128x256xf32, #tpu.memory_space<vmem>>, vector<128x128xf32>,
    %73 = arith.addf %70, %16 : vector<128x128xf32>
    %c0_51 = arith.constant 0 : index
    %c128_52 = arith.constant 128 : index
    %74 = vector.load %arg5[%c0_51, %c128_52] : memref<128x256xf32, #tpu.memory_space<vmem>>, vector<128x128xf32>
    tpu.vector_store %arg5[%c0_51, %c128_52], %73 {strides = array<i32>} : memref<128x256xf32, #tpu.memory_space<vmem>>, vector<128x128xf32>,
    %c0_53 = arith.constant 0 : index
    %c0_54 = arith.constant 0 : index
    %75 = vector.load %arg5[%c0_53, %c0_54] : memref<128x256xf32, #tpu.memory_space<vmem>>, vector<128x128xf32>
    %76 = vector.broadcast %0 : vector<128x1xf32> to vector<128x128xf32>
    %77 = arith.mulf %76, %75 : vector<128x128xf32>
    %c0_55 = arith.constant 0 : index
    %c0_56 = arith.constant 0 : index
    %78 = vector.load %arg4[%c0_55, %c0_56] : memref<128x256xf32, #tpu.memory_space<vmem>>, vector<128x128xf32>
    tpu.vector_store %arg4[%c0_55, %c0_56], %77 {strides = array<i32>} : memref<128x256xf32, #tpu.memory_space<vmem>>, vector<128x128xf32>,
    %c0_57 = arith.constant 0 : index
    %c128_58 = arith.constant 128 : index
    %79 = vector.load %arg5[%c0_57, %c128_58] : memref<128x256xf32, #tpu.memory_space<vmem>>, vector<128x128xf32>
    %80 = vector.broadcast %0 : vector<128x1xf32> to vector<128x128xf32>
    %81 = arith.mulf %80, %79 : vector<128x128xf32>
    %c0_59 = arith.constant 0 : index
    %c128_60 = arith.constant 128 : index
    %82 = vector.load %arg4[%c0_59, %c128_60] : memref<128x256xf32, #tpu.memory_space<vmem>>, vector<128x128xf32>
    tpu.vector_store %arg4[%c0_59, %c128_60], %81 {strides = array<i32>} : memref<128x256xf32, #tpu.memory_space<vmem>>, vector<128x128xf32>,
    return
  }
  func.func @transform_0(%arg0: i32) -> (i32, i32) {
    %c0_i32 = arith.constant 0 : i32
    %c0_i32_0 = arith.constant 0 : i32
    %c0_i32_1 = arith.constant 0 : i32
    return %c0_i32, %c0_i32_0 : i32, i32
  }
  func.func @transform_1(%arg0: i32) -> (i32, i32) {
    %c0_i32 = arith.constant 0 : i32
    %c0_i32_0 = arith.constant 0 : i32
    %c0_i32_1 = arith.constant 0 : i32
    return %c0_i32, %c0_i32_0 : i32, i32
  }
  func.func @transform_2(%arg0: i32) -> (i32, i32) {
    %c0_i32 = arith.constant 0 : i32
    %c0_i32_0 = arith.constant 0 : i32
    return %c0_i32, %arg0 : i32, i32
  }
  func.func @transform_3(%arg0: i32) -> (i32, i32) {
    %c0_i32 = arith.constant 0 : i32
    %c0_i32_0 = arith.constant 0 : i32
    return %c0_i32, %arg0 : i32, i32
  }
}

module attributes {stable_mosaic.version = 11 : i64} {
  func.func @_appnp_kernel(%arg0: i32, %arg1: memref<128x128xbf16, #tpu.memory_space<vmem>>, %arg2: memref<128x1xf32, #tpu.memory_space<vmem>>, %arg3: memref<128x256xf32, #tpu.memory_space<vmem>>, %arg4: memref<128x256xf32, #tpu.memory_space<vmem>>, %arg5: memref<128x256xf32, #tpu.memory_space<vmem>>) attributes {dimension_semantics = [#tpu.dimension_semantics<parallel>], iteration_bounds = array<i64: 1>, scalar_prefetch = 0 : i64, scratch_operands = 1 : i64, tpu.core_type = #tpu.core_type<tc>, window_params = [{pipeline_mode = #tpu.pipeline_mode<synchronous>, transform_indices = @transform_0, window_bounds = array<i64: 128, 128>}, {pipeline_mode = #tpu.pipeline_mode<synchronous>, transform_indices = @transform_1, window_bounds = array<i64: 128, 1>}, {transform_indices = @transform_2, window_bounds = array<i64: 128, 256>}, {transform_indices = @transform_3, window_bounds = array<i64: 128, 256>}]} {
    %c0 = arith.constant 0 : index
    %c0_0 = arith.constant 0 : index
    %0 = vector.load %arg2[%c0, %c0_0] : memref<128x1xf32, #tpu.memory_space<vmem>>, vector<128x1xf32>
    %c0_1 = arith.constant 0 : index
    %c0_2 = arith.constant 0 : index
    %1 = vector.load %arg1[%c0_1, %c0_2] : memref<128x128xbf16, #tpu.memory_space<vmem>>, vector<128x128xbf16>
    %cst = arith.constant 1.000000e+00 : f32
    %2 = vector.broadcast %cst : f32 to vector<128x1xf32>
    %3 = arith.divf %2, %0 : vector<128x1xf32>
    %cst_3 = arith.constant 0.899999976 : f32
    %4 = vector.broadcast %cst_3 : f32 to vector<128x1xf32>
    %5 = arith.mulf %4, %0 : vector<128x1xf32>
    %6 = arith.mulf %5, %0 : vector<128x1xf32>
    %c0_4 = arith.constant 0 : index
    %c0_5 = arith.constant 0 : index
    %7 = vector.load %arg3[%c0_4, %c0_5] : memref<128x256xf32, #tpu.memory_space<vmem>>, vector<128x128xf32>
    %8 = vector.broadcast %3 : vector<128x1xf32> to vector<128x128xf32>
    %9 = arith.mulf %7, %8 : vector<128x128xf32>
    %c0_6 = arith.constant 0 : index
    %c128 = arith.constant 128 : index
    %10 = vector.load %arg3[%c0_6, %c128] : memref<128x256xf32, #tpu.memory_space<vmem>>, vector<128x128xf32>
    %11 = vector.broadcast %3 : vector<128x1xf32> to vector<128x128xf32>
    %12 = arith.mulf %10, %11 : vector<128x128xf32>
    %cst_7 = arith.constant 1.000000e-01 : f32
    %13 = vector.broadcast %cst_7 : f32 to vector<128x128xf32>
    %14 = arith.mulf %13, %9 : vector<128x128xf32>
    %cst_8 = arith.constant 1.000000e-01 : f32
    %15 = vector.broadcast %cst_8 : f32 to vector<128x128xf32>
    %16 = arith.mulf %15, %12 : vector<128x128xf32>
    %c0_9 = arith.constant 0 : index
    %c0_10 = arith.constant 0 : index
    %17 = vector.load %arg5[%c0_9, %c0_10] : memref<128x256xf32, #tpu.memory_space<vmem>>, vector<128x128xf32>
    tpu.vector_store %arg5[%c0_9, %c0_10], %9 {strides = array<i32>} : memref<128x256xf32, #tpu.memory_space<vmem>>, vector<128x128xf32>,
    %c0_11 = arith.constant 0 : index
    %c128_12 = arith.constant 128 : index
    %18 = vector.load %arg5[%c0_11, %c128_12] : memref<128x256xf32, #tpu.memory_space<vmem>>, vector<128x128xf32>
    tpu.vector_store %arg5[%c0_11, %c128_12], %12 {strides = array<i32>} : memref<128x256xf32, #tpu.memory_space<vmem>>, vector<128x128xf32>,
    %c0_13 = arith.constant 0 : index
    %c0_14 = arith.constant 0 : index
    %19 = vector.load %arg5[%c0_13, %c0_14] : memref<128x256xf32, #tpu.memory_space<vmem>>, vector<128x128xf32>
    %20 = vector.broadcast %6 : vector<128x1xf32> to vector<128x128xf32>
    %21 = arith.mulf %20, %19 : vector<128x128xf32>
    %22 = arith.truncf %21 : vector<128x128xf32> to vector<128x128xbf16>
    %c0_15 = arith.constant 0 : index
    %c128_16 = arith.constant 128 : index
    %23 = vector.load %arg5[%c0_15, %c128_16] : memref<128x256xf32, #tpu.memory_space<vmem>>, vector<128x128xf32>
    %24 = vector.broadcast %6 : vector<128x1xf32> to vector<128x128xf32>
    %25 = arith.mulf %24, %23 : vector<128x128xf32>
    %26 = arith.truncf %25 : vector<128x128xf32> to vector<128x128xbf16>
    %cst_17 = arith.constant dense<0.000000e+00> : vector<128x128xf32>
    %27 = tpu.matmul %1, %22, %cst_17 {dimension_numbers = #tpu.dot_dimension_numbers<[1], [0], [0], [1], [0, 0, 1, 1], [], []>} : vector<128x128xbf16>, vector<128x128xbf16>, vector<128x128xf32> -> vector<128x128xf32>
    %cst_18 = arith.constant dense<0.000000e+00> : vector<128x128xf32>
    %28 = tpu.matmul %1, %26, %cst_18 {dimension_numbers = #tpu.dot_dimension_numbers<[1], [0], [0], [1], [0, 0, 1, 1], [], []>} : vector<128x128xbf16>, vector<128x128xbf16>, vector<128x128xf32> -> vector<128x128xf32>
    %29 = arith.addf %27, %14 : vector<128x128xf32>
    %c0_19 = arith.constant 0 : index
    %c0_20 = arith.constant 0 : index
    %30 = vector.load %arg5[%c0_19, %c0_20] : memref<128x256xf32, #tpu.memory_space<vmem>>, vector<128x128xf32>
    tpu.vector_store %arg5[%c0_19, %c0_20], %29 {strides = array<i32>} : memref<128x256xf32, #tpu.memory_space<vmem>>, vector<128x128xf32>,
    %31 = arith.addf %28, %16 : vector<128x128xf32>
    %c0_21 = arith.constant 0 : index
    %c128_22 = arith.constant 128 : index
    %32 = vector.load %arg5[%c0_21, %c128_22] : memref<128x256xf32, #tpu.memory_space<vmem>>, vector<128x128xf32>
    tpu.vector_store %arg5[%c0_21, %c128_22], %31 {strides = array<i32>} : memref<128x256xf32, #tpu.memory_space<vmem>>, vector<128x128xf32>,
    %c0_23 = arith.constant 0 : index
    %c0_24 = arith.constant 0 : index
    %33 = vector.load %arg5[%c0_23, %c0_24] : memref<128x256xf32, #tpu.memory_space<vmem>>, vector<128x128xf32>
    %34 = vector.broadcast %6 : vector<128x1xf32> to vector<128x128xf32>
    %35 = arith.mulf %34, %33 : vector<128x128xf32>
    %36 = arith.truncf %35 : vector<128x128xf32> to vector<128x128xbf16>
    %c0_25 = arith.constant 0 : index
    %c128_26 = arith.constant 128 : index
    %37 = vector.load %arg5[%c0_25, %c128_26] : memref<128x256xf32, #tpu.memory_space<vmem>>, vector<128x128xf32>
    %38 = vector.broadcast %6 : vector<128x1xf32> to vector<128x128xf32>
    %39 = arith.mulf %38, %37 : vector<128x128xf32>
    %40 = arith.truncf %39 : vector<128x128xf32> to vector<128x128xbf16>
    %cst_27 = arith.constant dense<0.000000e+00> : vector<128x128xf32>
    %41 = tpu.matmul %1, %36, %cst_27 {dimension_numbers = #tpu.dot_dimension_numbers<[1], [0], [0], [1], [0, 0, 1, 1], [], []>} : vector<128x128xbf16>, vector<128x128xbf16>, vector<128x128xf32> -> vector<128x128xf32>
    %cst_28 = arith.constant dense<0.000000e+00> : vector<128x128xf32>
    %42 = tpu.matmul %1, %40, %cst_28 {dimension_numbers = #tpu.dot_dimension_numbers<[1], [0], [0], [1], [0, 0, 1, 1], [], []>} : vector<128x128xbf16>, vector<128x128xbf16>, vector<128x128xf32> -> vector<128x128xf32>
    %43 = arith.addf %41, %14 : vector<128x128xf32>
    %c0_29 = arith.constant 0 : index
    %c0_30 = arith.constant 0 : index
    %44 = vector.load %arg5[%c0_29, %c0_30] : memref<128x256xf32, #tpu.memory_space<vmem>>, vector<128x128xf32>
    tpu.vector_store %arg5[%c0_29, %c0_30], %43 {strides = array<i32>} : memref<128x256xf32, #tpu.memory_space<vmem>>, vector<128x128xf32>,
    %45 = arith.addf %42, %16 : vector<128x128xf32>
    %c0_31 = arith.constant 0 : index
    %c128_32 = arith.constant 128 : index
    %46 = vector.load %arg5[%c0_31, %c128_32] : memref<128x256xf32, #tpu.memory_space<vmem>>, vector<128x128xf32>
    tpu.vector_store %arg5[%c0_31, %c128_32], %45 {strides = array<i32>} : memref<128x256xf32, #tpu.memory_space<vmem>>, vector<128x128xf32>,
    %c0_33 = arith.constant 0 : index
    %c0_34 = arith.constant 0 : index
    %47 = vector.load %arg5[%c0_33, %c0_34] : memref<128x256xf32, #tpu.memory_space<vmem>>, vector<128x128xf32>
    %48 = vector.broadcast %6 : vector<128x1xf32> to vector<128x128xf32>
    %49 = arith.mulf %48, %47 : vector<128x128xf32>
    %50 = arith.truncf %49 : vector<128x128xf32> to vector<128x128xbf16>
    %c0_35 = arith.constant 0 : index
    %c128_36 = arith.constant 128 : index
    %51 = vector.load %arg5[%c0_35, %c128_36] : memref<128x256xf32, #tpu.memory_space<vmem>>, vector<128x128xf32>
    %52 = vector.broadcast %6 : vector<128x1xf32> to vector<128x128xf32>
    %53 = arith.mulf %52, %51 : vector<128x128xf32>
    %54 = arith.truncf %53 : vector<128x128xf32> to vector<128x128xbf16>
    %cst_37 = arith.constant dense<0.000000e+00> : vector<128x128xf32>
    %55 = tpu.matmul %1, %50, %cst_37 {dimension_numbers = #tpu.dot_dimension_numbers<[1], [0], [0], [1], [0, 0, 1, 1], [], []>} : vector<128x128xbf16>, vector<128x128xbf16>, vector<128x128xf32> -> vector<128x128xf32>
    %cst_38 = arith.constant dense<0.000000e+00> : vector<128x128xf32>
    %56 = tpu.matmul %1, %54, %cst_38 {dimension_numbers = #tpu.dot_dimension_numbers<[1], [0], [0], [1], [0, 0, 1, 1], [], []>} : vector<128x128xbf16>, vector<128x128xbf16>, vector<128x128xf32> -> vector<128x128xf32>
    %57 = arith.addf %55, %14 : vector<128x128xf32>
    %c0_39 = arith.constant 0 : index
    %c0_40 = arith.constant 0 : index
    %58 = vector.load %arg5[%c0_39, %c0_40] : memref<128x256xf32, #tpu.memory_space<vmem>>, vector<128x128xf32>
    tpu.vector_store %arg5[%c0_39, %c0_40], %57 {strides = array<i32>} : memref<128x256xf32, #tpu.memory_space<vmem>>, vector<128x128xf32>,
    %59 = arith.addf %56, %16 : vector<128x128xf32>
    %c0_41 = arith.constant 0 : index
    %c128_42 = arith.constant 128 : index
    %60 = vector.load %arg5[%c0_41, %c128_42] : memref<128x256xf32, #tpu.memory_space<vmem>>, vector<128x128xf32>
    tpu.vector_store %arg5[%c0_41, %c128_42], %59 {strides = array<i32>} : memref<128x256xf32, #tpu.memory_space<vmem>>, vector<128x128xf32>,
    %c0_43 = arith.constant 0 : index
    %c0_44 = arith.constant 0 : index
    %61 = vector.load %arg5[%c0_43, %c0_44] : memref<128x256xf32, #tpu.memory_space<vmem>>, vector<128x128xf32>
    %62 = vector.broadcast %6 : vector<128x1xf32> to vector<128x128xf32>
    %63 = arith.mulf %62, %61 : vector<128x128xf32>
    %64 = arith.truncf %63 : vector<128x128xf32> to vector<128x128xbf16>
    %c0_45 = arith.constant 0 : index
    %c128_46 = arith.constant 128 : index
    %65 = vector.load %arg5[%c0_45, %c128_46] : memref<128x256xf32, #tpu.memory_space<vmem>>, vector<128x128xf32>
    %66 = vector.broadcast %6 : vector<128x1xf32> to vector<128x128xf32>
    %67 = arith.mulf %66, %65 : vector<128x128xf32>
    %68 = arith.truncf %67 : vector<128x128xf32> to vector<128x128xbf16>
    %cst_47 = arith.constant dense<0.000000e+00> : vector<128x128xf32>
    %69 = tpu.matmul %1, %64, %cst_47 {dimension_numbers = #tpu.dot_dimension_numbers<[1], [0], [0], [1], [0, 0, 1, 1], [], []>} : vector<128x128xbf16>, vector<128x128xbf16>, vector<128x128xf32> -> vector<128x128xf32>
    %cst_48 = arith.constant dense<0.000000e+00> : vector<128x128xf32>
    %70 = tpu.matmul %1, %68, %cst_48 {dimension_numbers = #tpu.dot_dimension_numbers<[1], [0], [0], [1], [0, 0, 1, 1], [], []>} : vector<128x128xbf16>, vector<128x128xbf16>, vector<128x128xf32> -> vector<128x128xf32>
    %71 = arith.addf %69, %14 : vector<128x128xf32>
    %c0_49 = arith.constant 0 : index
    %c0_50 = arith.constant 0 : index
    %72 = vector.load %arg5[%c0_49, %c0_50] : memref<128x256xf32, #tpu.memory_space<vmem>>, vector<128x128xf32>
    tpu.vector_store %arg5[%c0_49, %c0_50], %71 {strides = array<i32>} : memref<128x256xf32, #tpu.memory_space<vmem>>, vector<128x128xf32>,
    %73 = arith.addf %70, %16 : vector<128x128xf32>
    %c0_51 = arith.constant 0 : index
    %c128_52 = arith.constant 128 : index
    %74 = vector.load %arg5[%c0_51, %c128_52] : memref<128x256xf32, #tpu.memory_space<vmem>>, vector<128x128xf32>
    tpu.vector_store %arg5[%c0_51, %c128_52], %73 {strides = array<i32>} : memref<128x256xf32, #tpu.memory_space<vmem>>, vector<128x128xf32>,
    %c0_53 = arith.constant 0 : index
    %c0_54 = arith.constant 0 : index
    %75 = vector.load %arg5[%c0_53, %c0_54] : memref<128x256xf32, #tpu.memory_space<vmem>>, vector<128x128xf32>
    %76 = vector.broadcast %0 : vector<128x1xf32> to vector<128x128xf32>
    %77 = arith.mulf %76, %75 : vector<128x128xf32>
    %c0_55 = arith.constant 0 : index
    %c0_56 = arith.constant 0 : index
    %78 = vector.load %arg4[%c0_55, %c0_56] : memref<128x256xf32, #tpu.memory_space<vmem>>, vector<128x128xf32>
    tpu.vector_store %arg4[%c0_55, %c0_56], %77 {strides = array<i32>} : memref<128x256xf32, #tpu.memory_space<vmem>>, vector<128x128xf32>,
    %c0_57 = arith.constant 0 : index
    %c128_58 = arith.constant 128 : index
    %79 = vector.load %arg5[%c0_57, %c128_58] : memref<128x256xf32, #tpu.memory_space<vmem>>, vector<128x128xf32>
    %80 = vector.broadcast %0 : vector<128x1xf32> to vector<128x128xf32>
    %81 = arith.mulf %80, %79 : vector<128x128xf32>
    %c0_59 = arith.constant 0 : index
    %c128_60 = arith.constant 128 : index
    %82 = vector.load %arg4[%c0_59, %c128_60] : memref<128x256xf32, #tpu.memory_space<vmem>>, vector<128x128xf32>
    tpu.vector_store %arg4[%c0_59, %c128_60], %81 {strides = array<i32>} : memref<128x256xf32, #tpu.memory_space<vmem>>, vector<128x128xf32>,
    return
  }
  func.func @transform_0(%arg0: i32) -> (i32, i32) {
    %c0_i32 = arith.constant 0 : i32
    %c0_i32_0 = arith.constant 0 : i32
    %c0_i32_1 = arith.constant 0 : i32
    return %c0_i32, %c0_i32_0 : i32, i32
  }
  func.func @transform_1(%arg0: i32) -> (i32, i32) {
    %c0_i32 = arith.constant 0 : i32
    %c0_i32_0 = arith.constant 0 : i32
    %c0_i32_1 = arith.constant 0 : i32
    return %c0_i32, %c0_i32_0 : i32, i32
  }
  func.func @transform_2(%arg0: i32) -> (i32, i32) {
    %c0_i32 = arith.constant 0 : i32
    %c0_i32_0 = arith.constant 0 : i32
    return %c0_i32, %arg0 : i32, i32
  }
  func.func @transform_3(%arg0: i32) -> (i32, i32) {
    %c0_i32 = arith.constant 0 : i32
    %c0_i32_0 = arith.constant 0 : i32
    return %c0_i32, %arg0 : i32, i32
  }
}

</mosaic_0001>

<bundles_post_ra>
// kernel: tpu_custom_call.1
= control target key start
LH: loop header
LB: loop body
LE: loop exit
PB: predicated region body
PF: predicated region fallthrough
CT: control target
= control target key end

     0   :  { %8 = vsyncpa [#allocation4], 0  ;;  %s3269_s0 = inlined_call_operand.vmem [shape: bf16[128,128], index: 0, kind: input, shape index: {}]   ;;  %s3270_s1 = inlined_call_operand.vmem [shape: f32[128,1], index: 1, kind: input, shape index: {}]   ;;  %s3271_s2 = inlined_call_operand.hbm [shape: f32[128,256], index: 2, kind: input, shape index: {}]   ;;  %s3272_s3 = inlined_call_operand.hbm [shape: f32[128,256], index: 3, kind: output, shape index: {}]  }
   0x1   :  { %9 = vsyncpa [#allocation5], 0  ;;  %s2370_s12 = smov [#allocation3]  }
   0x2   :  { %s19_s13 = sshll.u32 %s2370_s12, 4  ;;  %s20_s13 = int_to_ptr.vmem [resolvable:$true] %s19_s13 }
   0x3   :  { %s2334_s14 = scalar_lea.vmem %s20_s13, 4096  ;;  %p2339_p1 = scmp.lt.s32.totalorder %s20_s13, %s20_s13 }
   0x4   :  { %p2335_p0 = scmp.ne.s32.totalorder %s20_s13, %s2334_s14  ;;  %p2340_p2 = scmp.lt.s32.totalorder %s2334_s14, %s2334_s14 }
   0x6   :  { %p2341_p3 = por %p2340_p2, %p2339_p1 }
   0x8   :  { %p2342_p4 = pnand %p2341_p3, %p2335_p0 }
   0xa   :  { %2345 = shalt.err (!%p2342_p4)
}
   0xb   :  { %s2371_s15 = smov 256   ;;  %s2372_s16 = smov 16  }
   0xc   :  { %25 = dma.hbm_to_vmem [thread:$0]  %s3271_s2, 4096, %s20_s13, [#allocation4], %s2371_s15, %s2371_s15, %s2372_s16  }
   0xd   :  { %2366 = dma.done.wait [#allocation4], 4096  }
   0xe   :  { %2367 = vsyncadd [#allocation4], 4294963200  ;;  %v2373_v0 = vmov 0   ;;  %v2404_v1 = vld [vmem:[%s3270_s1 + $0x70] sm:$0xff]  ;;  %v2409_v2 = vld [vmem:[%s3270_s1 + $0x60] sm:$0xff] }
   0xf   :  { %2277 = vset.pattern.permute.xlu0 %v2373_v0  ;;  %2276 = vset.pattern.permute.xlu1 %v2373_v0  ;;  %v2414_v3 = vld [vmem:[%s3270_s1 + $0x78] sm:$0xff]  ;;  %v108_v4 = vmul.f32 0.9, %v2404_v1  ;;  %2286 = vrcp.f32 %v2404_v1  ;;  %v106_v5 = vmul.f32 0.9, %v2409_v2  ;;  %v2423_v7 = vld [vmem:[%s3270_s1 + $0x50] sm:$0xff] }
  0x10   :  { %v109_v6 = vmul.f32 0.9, %v2414_v3  ;;  %v2428_v8 = vld [vmem:[%s3270_s1 + $0x68] sm:$0xff]  ;;  %2288 = vrcp.f32 %v2414_v3  ;;  %v104_v11 = vmul.f32 0.9, %v2423_v7  ;;  %v2441_v15 = vld [vmem:[%s3270_s1 + $0x58] sm:$0xff] }
  0x11   :  { %v124_v9 = vmul.f32 %v108_v4, %v2404_v1  ;;  %v122_v10 = vmul.f32 %v106_v5, %v2409_v2  ;;  %v107_v13 = vmul.f32 0.9, %v2428_v8  ;;  %2290 = vrcp.f32 %v2428_v8  ;;  %v2450_v18 = vld [vmem:[%s3270_s1 + $0x48] sm:$0xff]  ;;  %v2456_v19 = vld [vmem:[%s3270_s1 + $0x40] sm:$0xff]  ;;  %v2464_v24 = vld [vmem:[%s3270_s1 + $0x38] sm:$0xff] }
  0x12   :  { %v125_v12 = vmul.f32 %v109_v6, %v2414_v3  ;;  %v120_v14 = vmul.f32 %v104_v11, %v2423_v7  ;;  %2292 = vrcp.f32 %v2409_v2  ;;  %v105_v17 = vmul.f32 0.9, %v2441_v15  ;;  %v2469_v26 = vld [vmem:[%s3270_s1 + $0x30] sm:$0xff]  ;;  %v2477_v31 = vld [vmem:[%s3270_s1 + $0x28] sm:$0xff]  ;;  %v2483_v34 = vld [vmem:[%s3270_s1 + $0x20] sm:$0xff] }
  0x13   :  { %422 = vperm.xlu1 %2276, %v124_v9   ;;  %412 = vperm.xlu0 %2277, %v122_v10   ;;  %v123_v16 = vmul.f32 %v107_v13, %v2428_v8  ;;  %2294 = vrcp.f32 %v2441_v15  ;;  %v103_v29 = vmul.f32 0.9, %v2450_v18  ;;  %v102_v32 = vmul.f32 0.9, %v2456_v19  ;;  %v33_v39 = vld [vmem:[%s3270_s1 + $0x18] sm:$0xff]  ;;  %v32_v42 = vld [vmem:[%s3270_s1 + $0x10] sm:$0xff] }
  0x14   :  { %2296 = vrcp.f32 %v2423_v7  ;;  %v121_v20 = vmul.f32 %v105_v17, %v2441_v15  ;;  %v101_v37 = vmul.f32 0.9, %v2464_v24  ;;  %v100_v40 = vmul.f32 0.9, %v2469_v26  ;;  %v31_v47 = vld [vmem:[%s3270_s1 + $0x8] sm:$0xff]  ;;  %v30_v50 = vld [vmem:[%s3270_s1] sm:$0xff] }
  0x15   :  { %2298 = vrcp.f32 %v2450_v18  ;;  %v119_v35 = vmul.f32 %v103_v29, %v2450_v18  ;;  %v118_v36 = vmul.f32 %v102_v32, %v2456_v19  ;;  %v99_v45 = vmul.f32 0.9, %v2477_v31  ;;  %v2512_v4 = vld [vmem:[%s3269_s0] sm:$0xff]   ;;  %v252_v13 = vld [vmem:[#allocation3 + $0xe8] sm:$0xff]  ;;  %v251_v17 = vld [vmem:[#allocation3 + $0xd8] sm:$0xff] }
  0x16   :  { %2300 = vrcp.f32 %v2456_v19  ;;  %v117_v43 = vmul.f32 %v101_v37, %v2464_v24  ;;  %v116_v44 = vmul.f32 %v100_v40, %v2469_v26  ;;  %v98_v48 = vmul.f32 0.9, %v2483_v34  ;;  %3356 = vst [vmem:[#allocation9_spill] sm:$0xff] %v2512_v4  ;;  %2031 = vmatprep.mubr.bf16.mxu0 %v2512_v4  ;;  %2063 = vmatprep.mubr.bf16.mxu1 %v2512_v4  ;;  %v136_v40 = vld [vmem:[#allocation3 + $0xa0] sm:$0xff] }
  0x17   :  { %427 = vperm.xlu1 %2276, %v125_v12   ;;  %402 = vperm.xlu0 %2277, %v120_v14   ;;  %2302 = vrcp.f32 %v2464_v24  ;;  %v115_v51 = vmul.f32 %v99_v45, %v2477_v31  ;;  %v97_v53 = vmul.f32 0.9, %v33_v39  ;;  %v96_v55 = vmul.f32 0.9, %v32_v42  ;;  %v253_v14 = vld [vmem:[#allocation3 + $0xf8] sm:$0xff] }
  0x18   :  { %2304 = vrcp.f32 %v2469_v26  ;;  %v114_v52 = vmul.f32 %v98_v48, %v2483_v34  ;;  %v95_v59 = vmul.f32 0.9, %v31_v47  ;;  %v94_v61 = vmul.f32 0.9, %v30_v50 }
  0x19   :  { %2306 = vrcp.f32 %v2477_v31  ;;  %v113_v57 = vmul.f32 %v97_v53, %v33_v39  ;;  %v112_v58 = vmul.f32 %v96_v55, %v32_v42 }
  0x1a   :  { %2308 = vrcp.f32 %v2483_v34  ;;  %v111_v63 = vmul.f32 %v95_v59, %v31_v47  ;;  %v110_v0 = vmul.f32 %v94_v61, %v30_v50 }
  0x1b   :  { %417 = vperm.xlu1 %2276, %v123_v16   ;;  %2310 = vrcp.f32 %v33_v39  ;;  %v139_v16 = vld [vmem:[#allocation3 + $0xd0] sm:$0xff] }
  0x1c   :  { %v2287_v21 = vpop.eup %2286  ;;  %2312 = vrcp.f32 %v32_v42 }
  0x1d   :  { %214 = vperm.xlu0 %2277, %v2287_v21   ;;  %v2289_v22 = vpop.eup %2288  ;;  %2314 = vrcp.f32 %v31_v47 }
  0x1e   :  { %v2291_v23 = vpop.eup %2290  ;;  %2316 = vrcp.f32 %v30_v50 }
  0x1f   :  { %407 = vperm.xlu1 %2276, %v121_v20   ;;  %v2293_v25 = vpop.eup %2292 }
  0x20   :  { %v2295_v27 = vpop.eup %2294 }
  0x21   :  { %219 = vperm.xlu0 %2277, %v2289_v22   ;;  %v2297_v28 = vpop.eup %2296 }
  0x22   :  { %v2299_v30 = vpop.eup %2298 }
  0x23   :  { %209 = vperm.xlu1 %2276, %v2291_v23   ;;  %v2301_v33 = vpop.eup %2300  ;;  %v138_v23 = vld [vmem:[#allocation3 + $0xc0] sm:$0xff] }
  0x24   :  { %v2303_v38 = vpop.eup %2302 }
  0x25   :  { %204 = vperm.xlu0 %2277, %v2293_v25   ;;  %v2305_v41 = vpop.eup %2304 }
  0x26   :  { %v2307_v46 = vpop.eup %2306 }
  0x27   :  { %199 = vperm.xlu1 %2276, %v2295_v27   ;;  %v2309_v49 = vpop.eup %2308 }
  0x28   :  { %v2311_v54 = vpop.eup %2310 }
  0x29   :  { %194 = vperm.xlu0 %2277, %v2297_v28   ;;  %v2313_v56 = vpop.eup %2312 }
  0x2a   :  { %v2315_v60 = vpop.eup %2314 }
  0x2b   :  { %189 = vperm.xlu1 %2276, %v2299_v30   ;;  %v2317_v62 = vpop.eup %2316 }
  0x2d   :  { %184 = vperm.xlu0 %2277, %v2301_v33  }
  0x2f   :  { %397 = vperm.xlu1 %2276, %v119_v35  }
  0x31   :  { %392 = vperm.xlu0 %2277, %v118_v36  }
  0x33   :  { %179 = vperm.xlu1 %2276, %v2303_v38  }
  0x35   :  { %174 = vperm.xlu0 %2277, %v2305_v41   ;;  %v248_v41 = vld [vmem:[#allocation3 + $0xa8] sm:$0xff] }
  0x37   :  { %387 = vperm.xlu1 %2276, %v117_v43  }
  0x39   :  { %382 = vperm.xlu0 %2277, %v116_v44  }
  0x3b   :  { %169 = vperm.xlu1 %2276, %v2307_v46  }
  0x3d   :  { %164 = vperm.xlu0 %2277, %v2309_v49  }
  0x3f   :  { %377 = vperm.xlu1 %2276, %v115_v51  }
  0x41   :  { %372 = vperm.xlu0 %2277, %v114_v52   ;;  %v135_v52 = vld [vmem:[#allocation3 + $0x90] sm:$0xff] }
  0x43   :  { %159 = vperm.xlu1 %2276, %v2311_v54  }
  0x45   :  { %154 = vperm.xlu0 %2277, %v2313_v56   ;;  %v247_v56 = vld [vmem:[#allocation3 + $0x98] sm:$0xff] }
  0x47   :  { %367 = vperm.xlu1 %2276, %v113_v57   ;;  %v134_v57 = vld [vmem:[#allocation3 + $0x80] sm:$0xff] }
  0x49   :  { %362 = vperm.xlu0 %2277, %v112_v58   ;;  %v246_v58 = vld [vmem:[#allocation3 + $0x88] sm:$0xff] }
  0x4b   :  { %149 = vperm.xlu1 %2276, %v2315_v60  }
  0x4d   :  { %144 = vperm.xlu0 %2277, %v2317_v62  }
  0x4f   :  { %357 = vperm.xlu1 %2276, %v111_v63  }
  0x51   :  { %352 = vperm.xlu0 %2277, %v110_v0  }
  0x53   :  { %1709 = vperm.xlu1 %2276, %v31_v47  }
  0x55   :  { %1704 = vperm.xlu0 %2277, %v30_v50  }
  0x57   :  { %1719 = vperm.xlu1 %2276, %v33_v39  }
  0x59   :  { %1714 = vperm.xlu0 %2277, %v32_v42  }
  0x5b   :  { %1729 = vperm.xlu1 %2276, %v2477_v31   ;;  %v249_v31 = vld [vmem:[#allocation3 + $0xb8] sm:$0xff] }
  0x5d   :  { %1724 = vperm.xlu0 %2277, %v2483_v34  }
  0x5f   :  { %1739 = vperm.xlu1 %2276, %v2464_v24   ;;  %v250_v24 = vld [vmem:[#allocation3 + $0xc8] sm:$0xff] }
  0x61   :  { %1734 = vperm.xlu0 %2277, %v2469_v26   ;;  %v137_v26 = vld [vmem:[#allocation3 + $0xb0] sm:$0xff] }
  0x63   :  { %1749 = vperm.xlu1 %2276, %v2450_v18  }
  0x65   :  { %1744 = vperm.xlu0 %2277, %v2456_v19  }
  0x67   :  { %1759 = vperm.xlu1 %2276, %v2441_v15  }
  0x69   :  { %1754 = vperm.xlu0 %2277, %v2423_v7   ;;  %v140_v7 = vld [vmem:[#allocation3 + $0xe0] sm:$0xff] }
  0x6b   :  { %1769 = vperm.xlu1 %2276, %v2428_v8  }
  0x6d   :  { %1764 = vperm.xlu0 %2277, %v2409_v2   ;;  %v141_v2 = vld [vmem:[#allocation3 + $0xf0] sm:$0xff] }
  0x6f   :  { %1779 = vperm.xlu1 %2276, %v2414_v3  }
  0x71   :  { %1774 = vperm.xlu0 %2277, %v2404_v1  }
  0x8e   :  { %v2528_v5 = vpop.permute.xlu1 %422  ;;  %v2530_v6 = vpop.permute.xlu0 %412 }
  0x8f   :  { %3357 = vst [vmem:[#allocation10_spill] sm:$0xff] %v2528_v5 }
  0x92   :  { %v2532_v9 = vpop.permute.xlu1 %427  ;;  %v2534_v10 = vpop.permute.xlu0 %402 }
  0x96   :  { %v2536_v11 = vpop.permute.xlu1 %417 }
  0x98   :  { %v215_v12 = vpop.permute.xlu0 %214 }
  0x99   :  { %v2540_v3 = vmul.f32 %v215_v12, %v140_v7  ;;  %v2542_v1 = vmul.f32 %v252_v13, %v215_v12 }
  0x9a   :  { %v2538_v8 = vpop.permute.xlu1 %407 }
  0x9b   :  { %v444_v27 = vmul.f32 %v2528_v5, %v2540_v3  ;;  %v484_v29 = vmul.f32 %v2528_v5, %v2542_v1 }
  0x9c   :  { %v220_v15 = vpop.permute.xlu0 %219 }
  0x9d   :  { %v2544_v18 = vmul.f32 %v220_v15, %v141_v2  ;;  %v2546_v19 = vmul.f32 %v253_v14, %v220_v15 }
  0x9e   :  { %v210_v20 = vpop.permute.xlu1 %209 }
  0x9f   :  { %v2548_v21 = vmul.f32 %v210_v20, %v139_v16  ;;  %v2550_v22 = vmul.f32 %v251_v17, %v210_v20  ;;  %v445_v28 = vmul.f32 %v2532_v9, %v2544_v18  ;;  %v485_v30 = vmul.f32 %v2532_v9, %v2546_v19  ;;  %v133_v20 = vld [vmem:[#allocation3 + $0x70] sm:$0xff] }
  0xa0   :  { %v205_v25 = vpop.permute.xlu0 %204 }
  0xa1   :  { %v2560_v32 = vmul.f32 %v205_v25, %v138_v23  ;;  %v2562_v33 = vmul.f32 %v250_v24, %v205_v25  ;;  %v453_v35 = vpack.c.bf16 %v445_v28, %v444_v27  ;;  %v493_v36 = vpack.c.bf16 %v485_v30, %v484_v29  ;;  %v245_v25 = vld [vmem:[#allocation3 + $0x78] sm:$0xff]  ;;  %v244_v27 = vld [vmem:[#allocation3 + $0x68] sm:$0xff] }
  0xa2   :  { %v200_v34 = vpop.permute.xlu1 %199  ;;  %v443_v37 = vmul.f32 %v2536_v11, %v2548_v21  ;;  %v483_v38 = vmul.f32 %v2536_v11, %v2550_v22 }
  0xa3   :  { %v2568_v39 = vmul.f32 %v200_v34, %v137_v26  ;;  %v442_v42 = vmul.f32 %v2530_v6, %v2560_v32  ;;  %v482_v43 = vmul.f32 %v2530_v6, %v2562_v33  ;;  %v2574_v44 = vmul.f32 %v249_v31, %v200_v34  ;;  %2015 = vmatprep.subr.bf16.mxu0 %v453_v35  ;;  %v132_v26 = vld [vmem:[#allocation3 + $0x60] sm:$0xff] }
  0xa4   :  { %2047 = vmatprep.subr.bf16.mxu1 %v493_v36  ;;  %v195_v45 = vpop.permute.xlu0 %194  ;;  %2016 = vmatpush3.bf16.msra.mxu0 %v453_v35 }
  0xa5   :  { %2048 = vmatpush3.bf16.msra.mxu1 %v493_v36  ;;  %v2576_v46 = vmul.f32 %v195_v45, %v136_v40  ;;  %v2578_v47 = vmul.f32 %v248_v41, %v195_v45  ;;  %v452_v49 = vpack.c.bf16 %v443_v37, %v442_v42  ;;  %v492_v50 = vpack.c.bf16 %v483_v38, %v482_v43  ;;  %v131_v43 = vld [vmem:[#allocation3 + $0x50] sm:$0xff] }
  0xa6   :  { %v190_v48 = vpop.permute.xlu1 %189  ;;  %v441_v51 = vmul.f32 %v2538_v8, %v2568_v39  ;;  %v481_v53 = vmul.f32 %v2538_v8, %v2574_v44 }
  0xa7   :  { %v440_v54 = vmul.f32 %v2534_v10, %v2576_v46  ;;  %v480_v55 = vmul.f32 %v2534_v10, %v2578_v47  ;;  %2017 = vmatprep.subr.bf16.mxu0 %v452_v49  ;;  %2049 = vmatprep.subr.bf16.mxu1 %v492_v50  ;;  %v2588_v60 = vmul.f32 %v190_v48, %v135_v52 }
  0xa8   :  { %v185_v59 = vpop.permute.xlu0 %184  ;;  %2018 = vmatpush3.bf16.msra.mxu0 %v452_v49  ;;  %v2592_v0 = vmul.f32 %v247_v56, %v190_v48  ;;  %v243_v49 = vld [vmem:[#allocation3 + $0x58] sm:$0xff] }
  0xa9   :  { %2050 = vmatpush3.bf16.msra.mxu1 %v492_v50  ;;  %v451_v62 = vpack.c.bf16 %v441_v51, %v440_v54  ;;  %v491_v63 = vpack.c.bf16 %v481_v53, %v480_v55  ;;  %v2594_v12 = vmul.f32 %v185_v59, %v134_v57  ;;  %v2596_v7 = vmul.f32 %v246_v58, %v185_v59  ;;  %v130_v50 = vld [vmem:[#allocation3 + $0x40] sm:$0xff]  ;;  %v242_v51 = vld [vmem:[#allocation3 + $0x48] sm:$0xff] }
  0xaa   :  { %v2590_v61 = vpop.permute.xlu1 %397 }
  0xab   :  { %2019 = vmatprep.subr.bf16.mxu0 %v451_v62  ;;  %2051 = vmatprep.subr.bf16.mxu1 %v491_v63  ;;  %v439_v2 = vmul.f32 %v2590_v61, %v2588_v60  ;;  %v479_v16 = vmul.f32 %v2590_v61, %v2592_v0 }
  0xac   :  { %v2598_v13 = vpop.permute.xlu0 %392  ;;  %2020 = vmatpush3.bf16.msra.mxu0 %v451_v62 }
  0xad   :  { %2052 = vmatpush3.bf16.msra.mxu1 %v491_v63  ;;  %v438_v14 = vmul.f32 %v2598_v13, %v2594_v12  ;;  %v478_v15 = vmul.f32 %v2598_v13, %v2596_v7 }
  0xae   :  { %v180_v17 = vpop.permute.xlu1 %179 }
  0xaf   :  { %v450_v23 = vpack.c.bf16 %v439_v2, %v438_v14  ;;  %v490_v24 = vpack.c.bf16 %v479_v16, %v478_v15  ;;  %v2610_v30 = vmul.f32 %v180_v17, %v133_v20  ;;  %v2612_v31 = vmul.f32 %v245_v25, %v180_v17  ;;  %v129_v15 = vld [vmem:[#allocation3 + $0x30] sm:$0xff]  ;;  %v241_v20 = vld [vmem:[#allocation3 + $0x38] sm:$0xff] }
  0xb0   :  { %v175_v28 = vpop.permute.xlu0 %174 }
  0xb1   :  { %2021 = vmatprep.subr.bf16.mxu0 %v450_v23  ;;  %2053 = vmatprep.subr.bf16.mxu1 %v490_v24  ;;  %v2614_v34 = vmul.f32 %v175_v28, %v132_v26  ;;  %v2616_v35 = vmul.f32 %v244_v27, %v175_v28 }
  0xb2   :  { %2022 = vmatpush3.bf16.msra.mxu0 %v450_v23  ;;  %2054 = vmatpush3.bf16.msra.mxu1 %v490_v24  ;;  %v2608_v29 = vpop.permute.xlu1 %387  ;;  %v128_v23 = vld [vmem:[#allocation3 + $0x20] sm:$0xff]  ;;  %v240_v24 = vld [vmem:[#allocation3 + $0x28] sm:$0xff] }
  0xb3   :  { %v437_v38 = vmul.f32 %v2608_v29, %v2610_v30  ;;  %v477_v41 = vmul.f32 %v2608_v29, %v2612_v31 }
  0xb4   :  { %v2618_v36 = vpop.permute.xlu0 %382 }
  0xb5   :  { %v436_v37 = vmul.f32 %v2618_v36, %v2614_v34  ;;  %v476_v40 = vmul.f32 %v2618_v36, %v2616_v35 }
  0xb6   :  { %v170_v42 = vpop.permute.xlu1 %169 }
  0xb7   :  { %v449_v45 = vpack.c.bf16 %v437_v38, %v436_v37  ;;  %v489_v48 = vpack.c.bf16 %v477_v41, %v476_v40  ;;  %v2630_v54 = vmul.f32 %v170_v42, %v131_v43  ;;  %v2632_v55 = vmul.f32 %v243_v49, %v170_v42  ;;  %v127_v49 = vld [vmem:[#allocation3 + $0x10] sm:$0xff] }
  0xb8   :  { %v165_v52 = vpop.permute.xlu0 %164 }
  0xb9   :  { %2023 = vmatprep.subr.bf16.mxu0 %v449_v45  ;;  %2055 = vmatprep.subr.bf16.mxu1 %v489_v48  ;;  %v2634_v56 = vmul.f32 %v165_v52, %v130_v50  ;;  %v2636_v57 = vmul.f32 %v242_v51, %v165_v52  ;;  %v239_v52 = vld [vmem:[#allocation3 + $0x18] sm:$0xff] }
  0xba   :  { %2024 = vmatpush3.bf16.msra.mxu0 %v449_v45  ;;  %2056 = vmatpush3.bf16.msra.mxu1 %v489_v48  ;;  %v2628_v53 = vpop.permute.xlu1 %377 }
  0xbb   :  { %3358 = vst [vmem:[#allocation11_spill] sm:$0xff] %v2628_v53  ;;  %v435_v62 = vmul.f32 %v2628_v53, %v2630_v54  ;;  %v475_v2 = vmul.f32 %v2628_v53, %v2632_v55  ;;  %v2791_v53 = vmul.f32 0.1, %v2560_v32  ;;  %v2808_v32 = vmul.f32 0.1, %v2576_v46 }
  0xbc   :  { %v2638_v58 = vpop.permute.xlu0 %372 }
  0xbd   :  { %3359 = vst [vmem:[#allocation12_spill] sm:$0xff] %v2638_v58  ;;  %v434_v59 = vmul.f32 %v2638_v58, %v2634_v56  ;;  %v474_v63 = vmul.f32 %v2638_v58, %v2636_v57  ;;  %3389 = vst [vmem:[#allocation42_spill] sm:$0xff] %v2791_v53 }
  0xbe   :  { %v160_v14 = vpop.permute.xlu1 %159 }
  0xbf   :  { %v448_v16 = vpack.c.bf16 %v435_v62, %v434_v59  ;;  %v488_v17 = vpack.c.bf16 %v475_v2, %v474_v63  ;;  %v2650_v27 = vmul.f32 %v160_v14, %v129_v15  ;;  %v2652_v28 = vmul.f32 %v241_v20, %v160_v14  ;;  %v126_v59 = vld [vmem:[#allocation3] sm:$0xff]  ;;  %v238_v62 = vld [vmem:[#allocation3 + $0x8] sm:$0xff] }
  0xc0   :  { %v155_v25 = vpop.permute.xlu0 %154 }
  0xc1   :  { %2025 = vmatprep.subr.bf16.mxu0 %v448_v16  ;;  %2057 = vmatprep.subr.bf16.mxu1 %v488_v17  ;;  %v2654_v37 = vmul.f32 %v155_v25, %v128_v23  ;;  %v2656_v38 = vmul.f32 %v240_v24, %v155_v25 }
  0xc2   :  { %2026 = vmatpush3.bf16.msra.mxu0 %v448_v16  ;;  %2058 = vmatpush3.bf16.msra.mxu1 %v488_v17  ;;  %v2648_v26 = vpop.permute.xlu1 %367 }
  0xc3   :  { %3360 = vst [vmem:[#allocation13_spill] sm:$0xff] %v2648_v26  ;;  %3361 = vst [vmem:[#allocation14_spill] sm:$0xff] %v2654_v37  ;;  %v433_v42 = vmul.f32 %v2648_v26, %v2650_v27  ;;  %v473_v45 = vmul.f32 %v2648_v26, %v2652_v28 }
  0xc4   :  { %3362 = vst [vmem:[#allocation15_spill] sm:$0xff] %v2656_v38  ;;  %v2658_v40 = vpop.permute.xlu0 %362 }
  0xc5   :  { %3363 = vst [vmem:[#allocation16_spill] sm:$0xff] %v2658_v40  ;;  %v432_v41 = vmul.f32 %v2658_v40, %v2654_v37  ;;  %v472_v43 = vmul.f32 %v2658_v40, %v2656_v38 }
  0xc6   :  { %v150_v48 = vpop.permute.xlu1 %149 }
  0xc7   :  { %v447_v50 = vpack.c.bf16 %v433_v42, %v432_v41  ;;  %v487_v51 = vpack.c.bf16 %v473_v45, %v472_v43  ;;  %v2670_v14 = vmul.f32 %v150_v48, %v127_v49  ;;  %v2672_v15 = vmul.f32 %v239_v52, %v150_v48  ;;  %v2691_v45 = vld [vmem:[%s3269_s0 + $0x8] sm:$0xff]   ;;  %v2696_v48 = vld [vmem:[%s3269_s0 + $0x10] sm:$0xff]   ;;  %v2705_v49 = vld [vmem:[%s3269_s0 + $0x18] sm:$0xff]  }
  0xc8   :  { %v145_v63 = vpop.permute.xlu0 %144  ;;  %3370 = vst [vmem:[#allocation23_spill] sm:$0xff] %v2691_v45  ;;  %3371 = vst [vmem:[#allocation24_spill] sm:$0xff] %v2696_v48  ;;  %v2724_v52 = vld [vmem:[%s3269_s0 + $0x30] sm:$0xff]  }
  0xc9   :  { %2027 = vmatprep.subr.bf16.mxu0 %v447_v50  ;;  %2059 = vmatprep.subr.bf16.mxu1 %v487_v51  ;;  %3365 = vst [vmem:[#allocation18_spill] sm:$0xff] %v2670_v14  ;;  %3366 = vst [vmem:[#allocation19_spill] sm:$0xff] %v2672_v15  ;;  %v2674_v16 = vmul.f32 %v145_v63, %v126_v59  ;;  %v2676_v17 = vmul.f32 %v238_v62, %v145_v63  ;;  %v2733_v59 = vld [vmem:[%s3269_s0 + $0x38] sm:$0xff]  }
  0xca   :  { %2028 = vmatpush3.bf16.msra.mxu0 %v447_v50  ;;  %2060 = vmatpush3.bf16.msra.mxu1 %v487_v51  ;;  %v2668_v2 = vpop.permute.xlu1 %357  ;;  %3372 = vst [vmem:[#allocation25_spill] sm:$0xff] %v2705_v49  ;;  %v2710_v50 = vld [vmem:[%s3269_s0 + $0x20] sm:$0xff]   ;;  %v2719_v51 = vld [vmem:[%s3269_s0 + $0x28] sm:$0xff]   ;;  %3375 = vst [vmem:[#allocation28_spill] sm:$0xff] %v2724_v52 }
  0xcb   :  { %3364 = vst [vmem:[#allocation17_spill] sm:$0xff] %v2668_v2  ;;  %3367 = vst [vmem:[#allocation20_spill] sm:$0xff] %v2674_v16  ;;  %v431_v24 = vmul.f32 %v2668_v2, %v2670_v14  ;;  %v471_v41 = vmul.f32 %v2668_v2, %v2672_v15  ;;  %v2782_v15 = vmul.f32 0.1, %v2544_v18  ;;  %v2788_v14 = vmul.f32 0.1, %v2548_v21 }
  0xcc   :  { %3368 = vst [vmem:[#allocation21_spill] sm:$0xff] %v2676_v17  ;;  %v2678_v20 = vpop.permute.xlu0 %352  ;;  %3373 = vst [vmem:[#allocation26_spill] sm:$0xff] %v2710_v50  ;;  %v2799_v18 = vmul.f32 0.1, %v2550_v22  ;;  %v2805_v21 = vmul.f32 0.1, %v2574_v44 }
  0xcd   :  { %3369 = vst [vmem:[#allocation22_spill] sm:$0xff] %v2678_v20  ;;  %v430_v23 = vmul.f32 %v2678_v20, %v2674_v16  ;;  %v470_v25 = vmul.f32 %v2678_v20, %v2676_v17  ;;  %3374 = vst [vmem:[#allocation27_spill] sm:$0xff] %v2719_v51  ;;  %v2776_v17 = vmul.f32 0.1, %v2540_v3  ;;  %v2779_v16 = vmul.f32 0.1, %v2542_v1 }
  0xce   :  { %3376 = vst [vmem:[#allocation29_spill] sm:$0xff] %v2733_v59  ;;  %v2794_v3 = vmul.f32 0.1, %v2562_v33  ;;  %3391 = vst [vmem:[#allocation44_spill] sm:$0xff] %v2805_v21  ;;  %v2811_v33 = vmul.f32 0.1, %v2578_v47 }
  0xcf   :  { %v446_v42 = vpack.c.bf16 %v431_v24, %v430_v23  ;;  %v486_v43 = vpack.c.bf16 %v471_v41, %v470_v25  ;;  %3386 = vst [vmem:[#allocation39_spill] sm:$0xff] %v2776_v17  ;;  %3387 = vst [vmem:[#allocation40_spill] sm:$0xff] %v2779_v16  ;;  %v2816_v22 = vmul.f32 0.1, %v2588_v60 }
  0xd0   :  { %3390 = vst [vmem:[#allocation43_spill] sm:$0xff] %v2794_v3 }
  0xd1   :  { %2029 = vmatprep.subr.bf16.mxu0 %v446_v42  ;;  %2061 = vmatprep.subr.bf16.mxu1 %v486_v43 }
  0xd2   :  { %2030 = vmatpush3.bf16.msra.mxu0 %v446_v42  ;;  %2062 = vmatpush3.bf16.msra.mxu1 %v486_v43 }
  0xd5   :  { %2032 = vmatmul.mubr.bf16.vlgmr.msra.gmra.mxu0 %v2691_v45  ;;  %2064 = vmatmul.mubr.bf16.vlgmr.msra.gmra.mxu1 %v2691_v45 }
  0xd6   :  { %2035 = vmatprep.mubr.bf16.mxu0 %v2696_v48  ;;  %2067 = vmatprep.mubr.bf16.mxu1 %v2696_v48 }
  0xdd   :  { %2036 = vmatmul.mubr.bf16.gmra.mxu0 %v2705_v49  ;;  %2068 = vmatmul.mubr.bf16.gmra.mxu1 %v2705_v49 }
  0xde   :  { %2039 = vmatprep.mubr.bf16.mxu0 %v2710_v50  ;;  %2071 = vmatprep.mubr.bf16.mxu1 %v2710_v50 }
  0xe5   :  { %2040 = vmatmul.mubr.bf16.gmra.mxu0 %v2719_v51  ;;  %2072 = vmatmul.mubr.bf16.gmra.mxu1 %v2719_v51 }
  0xe6   :  { %2043 = vmatprep.mubr.bf16.mxu0 %v2724_v52  ;;  %2075 = vmatprep.mubr.bf16.mxu1 %v2724_v52 }
  0xed   :  { %2044 = vmatmul.mubr.bf16.gmra.mxu0 %v2733_v59  ;;  %2076 = vmatmul.mubr.bf16.gmra.mxu1 %v2733_v59 }
  0xee   :  { %2095 = vmatprep.mubr.bf16.mxu0 %v2512_v4  ;;  %2127 = vmatprep.mubr.bf16.mxu1 %v2512_v4 }
 0x195   :  { %v2739_v62 = vpop.f32.mrf.mxu0  ;;  %v2741_v63 = vpop.f32.mrf.mxu1 }
 0x196   :  { %3377 = vst [vmem:[#allocation30_spill] sm:$0xff] %v2739_v62  ;;  %3378 = vst [vmem:[#allocation31_spill] sm:$0xff] %v2741_v63  ;;  %v2785_v62 = vmul.f32 0.1, %v2546_v19  ;;  %v2802_v19 = vmul.f32 0.1, %v2568_v39 }
 0x197   :  { %v2743_v23 = vpop.f32.mrf.mxu0  ;;  %v2745_v24 = vpop.f32.mrf.mxu1  ;;  %v2819_v39 = vmul.f32 0.1, %v2592_v0 }
 0x198   :  { %3379 = vst [vmem:[#allocation32_spill] sm:$0xff] %v2743_v23  ;;  %3380 = vst [vmem:[#allocation33_spill] sm:$0xff] %v2745_v24 }
 0x199   :  { %v2747_v25 = vpop.f32.mrf.mxu0  ;;  %v2749_v41 = vpop.f32.mrf.mxu1  ;;  %3388 = vst [vmem:[#allocation41_spill] sm:$0xff] %v2785_v62 }
 0x19a   :  { %3381 = vst [vmem:[#allocation34_spill] sm:$0xff] %v2747_v25  ;;  %3382 = vst [vmem:[#allocation35_spill] sm:$0xff] %v2749_v41 }
 0x19b   :  { %v2751_v42 = vpop.f32.mrf.mxu0  ;;  %v2753_v43 = vpop.f32.mrf.mxu1 }
 0x19c   :  { %3383 = vst [vmem:[#allocation36_spill] sm:$0xff] %v2751_v42  ;;  %3384 = vst [vmem:[#allocation37_spill] sm:$0xff] %v2753_v43 }
 0x19d   :  { %v2755_v59 = vpop.f32.mrf.mxu0  ;;  %v2757_v52 = vpop.f32.mrf.mxu1 }
 0x19f   :  { %v2759_v4 = vpop.f32.mrf.mxu0  ;;  %v2761_v51 = vpop.f32.mrf.mxu1 }
 0x1a0   :  { %3385 = vst [vmem:[#allocation38_spill] sm:$0xff] %v2761_v51 }
 0x1a1   :  { %v2763_v50 = vpop.f32.mrf.mxu0  ;;  %v2765_v49 = vpop.f32.mrf.mxu1 }
 0x1a3   :  { %v2767_v48 = vpop.f32.mrf.mxu0  ;;  %v2769_v45 = vpop.f32.mrf.mxu1 }
 0x1a5   :  { %v2041_v20 = vpop.f32.mrf.mxu0  ;;  %v2073_v2 = vpop.f32.mrf.mxu1 }
 0x1a7   :  { %v2771_v24 = vpop.f32.mrf.mxu0  ;;  %v2773_v23 = vpop.f32.mrf.mxu1 }
 0x1a9   :  { %v2042_v40 = vpop.f32.mrf.mxu0  ;;  %v2074_v43 = vpop.f32.mrf.mxu1 }
 0x1aa   :  { %v620_v37 = vadd.f32 %v2042_v40, %v2802_v19  ;;  %v733_v47 = vadd.f32 %v2074_v43, %v2805_v21  ;;  %v730_v40 = vadd.f32 %v2073_v2, %v2811_v33  ;;  %v2844_v2 = vmul.f32 0.1, %v2596_v7 }
 0x1ab   :  { %v611_v42 = vpop.f32.mrf.mxu0  ;;  %v724_v26 = vpop.f32.mrf.mxu1 }
 0x1ad   :  { %v2045_v58 = vpop.f32.mrf.mxu0  ;;  %v2077_v63 = vpop.f32.mrf.mxu1 }
 0x1ae   :  { %v633_v1 = vadd.f32 %v2045_v58, %v2776_v17  ;;  %v746_v41 = vadd.f32 %v2077_v63, %v2779_v16 }
 0x1af   :  { %v624_v25 = vpop.f32.mrf.mxu0  ;;  %v737_v38 = vpop.f32.mrf.mxu1 }
 0x1b0   :  { %v625_v58 = vadd.f32 %v624_v25, %v2791_v53  ;;  %v738_v63 = vadd.f32 %v737_v38, %v2794_v3  ;;  %v798_v25 = vmul.f32 %v633_v1, %v2528_v5  ;;  %v838_v38 = vmul.f32 %v746_v41, %v2528_v5 }
 0x1b1   :  { %v2046_v16 = vpop.f32.mrf.mxu0  ;;  %v2078_v17 = vpop.f32.mrf.mxu1 }
 0x1b2   :  { %v636_v44 = vadd.f32 %v2046_v16, %v2782_v15  ;;  %v749_v46 = vadd.f32 %v2078_v17, %v2785_v62  ;;  %v617_v17 = vadd.f32 %v2041_v20, %v2808_v32  ;;  %v796_v43 = vmul.f32 %v625_v58, %v2530_v6 }
 0x1b3   :  { %v627_v3 = vpop.f32.mrf.mxu0  ;;  %v740_v53 = vpop.f32.mrf.mxu1  ;;  %v836_v1 = vmul.f32 %v738_v63, %v2530_v6  ;;  %v612_v20 = vadd.f32 %v611_v42, %v2816_v22  ;;  %v725_v58 = vadd.f32 %v724_v26, %v2819_v39  ;;  %v834_v42 = vmul.f32 %v730_v40, %v2534_v10 }
 0x1b4   :  { %v799_v60 = vmul.f32 %v636_v44, %v2532_v9  ;;  %v839_v51 = vmul.f32 %v749_v46, %v2532_v9  ;;  %v628_v0 = vadd.f32 %v627_v3, %v2788_v14  ;;  %v741_v16 = vadd.f32 %v740_v53, %v2799_v18 }
 0x1b5   :  { %v2838_v46 = vmul.f32 0.1, %v2594_v12  ;;  %v795_v3 = vmul.f32 %v620_v37, %v2538_v8  ;;  %v835_v53 = vmul.f32 %v733_v47, %v2538_v8  ;;  %v2851_v12 = vmul.f32 0.1, %v2612_v31 }
 0x1b6   :  { %v797_v41 = vmul.f32 %v628_v0, %v2536_v11  ;;  %v837_v5 = vmul.f32 %v741_v16, %v2536_v11  ;;  %v807_v21 = vpack.c.bf16 %v799_v60, %v798_v25  ;;  %v847_v44 = vpack.c.bf16 %v839_v51, %v838_v38 }
 0x1b7   :  { %v2848_v51 = vmul.f32 0.1, %v2610_v30  ;;  %v794_v37 = vmul.f32 %v617_v17, %v2534_v10  ;;  %v609_v7 = vadd.f32 %v2771_v24, %v2838_v46  ;;  %v722_v26 = vadd.f32 %v2773_v23, %v2844_v2 }
 0x1b8   :  { %2079 = vmatprep.subr.bf16.mxu0 %v807_v21  ;;  %2111 = vmatprep.subr.bf16.mxu1 %v847_v44  ;;  %v806_v63 = vpack.c.bf16 %v797_v41, %v796_v43  ;;  %v846_v0 = vpack.c.bf16 %v837_v5, %v836_v1  ;;  %v2860_v5 = vmul.f32 0.1, %v2614_v34  ;;  %v2863_v30 = vmul.f32 0.1, %v2616_v35 }
 0x1b9   :  { %2080 = vmatpush3.bf16.msra.mxu0 %v807_v21  ;;  %2112 = vmatpush3.bf16.msra.mxu1 %v847_v44  ;;  %v604_v31 = vadd.f32 %v2763_v50, %v2848_v51  ;;  %v717_v21 = vadd.f32 %v2765_v49, %v2851_v12  ;;  %v793_v47 = vmul.f32 %v612_v20, %v2590_v61  ;;  %v2872_v38 = vmul.f32 0.1, %v2630_v54  ;;  %v3394_v44 = vld [vmem:[#allocation38_spill] sm:$0xff] }
 0x1ba   :  { %2081 = vmatprep.subr.bf16.mxu0 %v806_v63  ;;  %2113 = vmatprep.subr.bf16.mxu1 %v846_v0  ;;  %v833_v24 = vmul.f32 %v725_v58, %v2590_v61  ;;  %v805_v25 = vpack.c.bf16 %v795_v3, %v794_v37  ;;  %v845_v23 = vpack.c.bf16 %v835_v53, %v834_v42  ;;  %v2877_v35 = vmul.f32 0.1, %v2632_v55  ;;  %v3395_v3 = vld [vmem:[#allocation14_spill] sm:$0xff]  ;;  %v3397_v53 = vld [vmem:[#allocation15_spill] sm:$0xff] }
 0x1bb   :  { %v601_v34 = vadd.f32 %v2755_v59, %v2860_v5  ;;  %v714_v49 = vadd.f32 %v2757_v52, %v2863_v30  ;;  %v792_v50 = vmul.f32 %v609_v7, %v2598_v13  ;;  %v832_v60 = vmul.f32 %v722_v26, %v2598_v13  ;;  %v3399_v20 = vld [vmem:[#allocation34_spill] sm:$0xff]  ;;  %v3401_v37 = vld [vmem:[#allocation11_spill] sm:$0xff] }
 0x1bc   :  { %v2884_v54 = vmul.f32 0.1, %v2634_v56  ;;  %v2887_v16 = vmul.f32 0.1, %v2636_v57  ;;  %v791_v59 = vmul.f32 %v604_v31, %v2608_v29  ;;  %v831_v55 = vmul.f32 %v717_v21, %v2608_v29  ;;  %v3402_v31 = vld [vmem:[#allocation18_spill] sm:$0xff] }
 0x1bd   :  { %2082 = vmatpush3.bf16.msra.mxu0 %v806_v63  ;;  %2114 = vmatpush3.bf16.msra.mxu1 %v846_v0  ;;  %v596_v17 = vadd.f32 %v2767_v48, %v2872_v38  ;;  %v709_v52 = vadd.f32 %v2769_v45, %v2877_v35  ;;  %v804_v40 = vpack.c.bf16 %v793_v47, %v792_v50  ;;  %v2896_v1 = vmul.f32 0.1, %v2650_v27  ;;  %v3400_v63 = vld [vmem:[#allocation35_spill] sm:$0xff]  ;;  %v3404_v47 = vld [vmem:[#allocation30_spill] sm:$0xff]  ;;  %v3408_v50 = vld [vmem:[#allocation12_spill] sm:$0xff] }
 0x1be   :  { %2083 = vmatprep.subr.bf16.mxu0 %v805_v25  ;;  %2115 = vmatprep.subr.bf16.mxu1 %v845_v23  ;;  %v844_v43 = vpack.c.bf16 %v833_v24, %v832_v60  ;;  %v2899_v56 = vmul.f32 0.1, %v2652_v28  ;;  %v790_v57 = vmul.f32 %v601_v34, %v2618_v36  ;;  %v830_v41 = vmul.f32 %v714_v49, %v2618_v36  ;;  %v3407_v34 = vld [vmem:[#allocation31_spill] sm:$0xff] }
 0x1bf   :  { %3392 = vst [vmem:[#allocation45_spill] sm:$0xff] %v2896_v1  ;;  %v593_v48 = vadd.f32 %v2759_v4, %v2884_v54  ;;  %v706_v45 = vadd.f32 %v3394_v44, %v2887_v16  ;;  %v2908_v27 = vmul.f32 0.1, %v3395_v3  ;;  %v2911_v28 = vmul.f32 0.1, %v3397_v53  ;;  %v3414_v44 = vld [vmem:[#allocation36_spill] sm:$0xff] }
 0x1c0   :  { %3393 = vst [vmem:[#allocation46_spill] sm:$0xff] %v2899_v56  ;;  %v588_v58 = vadd.f32 %v3399_v20, %v2896_v1  ;;  %v701_v0 = vadd.f32 %v3400_v63, %v2899_v56  ;;  %v789_v42 = vmul.f32 %v596_v17, %v3401_v37  ;;  %v829_v4 = vmul.f32 %v709_v52, %v3401_v37  ;;  %v3411_v52 = vld [vmem:[#allocation21_spill] sm:$0xff]  ;;  %v3416_v63 = vld [vmem:[#allocation16_spill] sm:$0xff]  ;;  %v3442_v1 = vld [vmem:[#allocation10_spill] sm:$0xff] }
 0x1c1   :  { %2084 = vmatpush3.bf16.msra.mxu0 %v805_v25  ;;  %2116 = vmatpush3.bf16.msra.mxu1 %v845_v23  ;;  %3396 = vst [vmem:[#allocation38_spill] sm:$0xff] %v2908_v27  ;;  %3398 = vst [vmem:[#allocation14_spill] sm:$0xff] %v2911_v28  ;;  %v803_v7 = vpack.c.bf16 %v791_v59, %v790_v57  ;;  %v843_v26 = vpack.c.bf16 %v831_v55, %v830_v41  ;;  %v2920_v21 = vmul.f32 0.1, %v3402_v31  ;;  %v3405_v25 = vld [vmem:[#allocation19_spill] sm:$0xff]  ;;  %v3409_v59 = vld [vmem:[#allocation20_spill] sm:$0xff] }
 0x1c2   :  { %2085 = vmatprep.subr.bf16.mxu0 %v804_v40  ;;  %2117 = vmatprep.subr.bf16.mxu1 %v844_v43  ;;  %v585_v24 = vadd.f32 %v3404_v47, %v2908_v27  ;;  %v2925_v23 = vmul.f32 0.1, %v3405_v25  ;;  %v698_v49 = vadd.f32 %v3407_v34, %v2911_v28  ;;  %v788_v60 = vmul.f32 %v593_v48, %v3408_v50  ;;  %v3415_v53 = vld [vmem:[#allocation37_spill] sm:$0xff]  ;;  %v3417_v25 = vld [vmem:[#allocation32_spill] sm:$0xff] }
 0x1c3   :  { %3403 = vst [vmem:[#allocation15_spill] sm:$0xff] %v2920_v21  ;;  %v828_v17 = vmul.f32 %v706_v45, %v3408_v50  ;;  %v2932_v55 = vmul.f32 0.1, %v3409_v59  ;;  %v2935_v57 = vmul.f32 0.1, %v3411_v52  ;;  %v580_v3 = vadd.f32 %v3414_v44, %v2920_v21  ;;  %v3419_v59 = vld [vmem:[#allocation17_spill] sm:$0xff] }
 0x1c4   :  { %3406 = vst [vmem:[#allocation34_spill] sm:$0xff] %v2925_v23  ;;  %v693_v48 = vadd.f32 %v3415_v53, %v2925_v23  ;;  %v802_v20 = vpack.c.bf16 %v789_v42, %v788_v60  ;;  %v786_v31 = vmul.f32 %v585_v24, %v3416_v63  ;;  %v826_v47 = vmul.f32 %v698_v49, %v3416_v63  ;;  %v3425_v53 = vld [vmem:[#allocation27_spill] sm:$0xff]  ;;  %v3438_v63 = vld [vmem:[#allocation40_spill] sm:$0xff]  ;;  %v3439_v21 = vld [vmem:[#allocation42_spill] sm:$0xff] }
 0x1c5   :  { %2086 = vmatpush3.bf16.msra.mxu0 %v804_v40  ;;  %2118 = vmatpush3.bf16.msra.mxu1 %v844_v43  ;;  %3410 = vst [vmem:[#allocation35_spill] sm:$0xff] %v2932_v55  ;;  %3412 = vst [vmem:[#allocation18_spill] sm:$0xff] %v2935_v57  ;;  %v3413_v40 = vld [vmem:[#allocation13_spill] sm:$0xff]  ;;  %v842_v45 = vpack.c.bf16 %v829_v4, %v828_v17  ;;  %v577_v34 = vadd.f32 %v3417_v25, %v2932_v55  ;;  %v3421_v17 = vld [vmem:[#allocation23_spill] sm:$0xff] }
 0x1c6   :  { %2087 = vmatprep.subr.bf16.mxu0 %v803_v7  ;;  %2119 = vmatprep.subr.bf16.mxu1 %v843_v26  ;;  %v787_v43 = vmul.f32 %v588_v58, %v3413_v40  ;;  %v827_v41 = vmul.f32 %v701_v0, %v3413_v40  ;;  %v3418_v58 = vld [vmem:[#allocation33_spill] sm:$0xff]  ;;  %v785_v52 = vmul.f32 %v580_v3, %v3419_v59  ;;  %v3424_v3 = vld [vmem:[#allocation26_spill] sm:$0xff]  ;;  %v3440_v50 = vld [vmem:[#allocation43_spill] sm:$0xff] }
 0x1c7   :  { %v690_v0 = vadd.f32 %v3418_v58, %v2935_v57  ;;  %v825_v44 = vmul.f32 %v693_v48, %v3419_v59  ;;  %v3426_v48 = vld [vmem:[#allocation28_spill] sm:$0xff] }
 0x1c8   :  { %v801_v42 = vpack.c.bf16 %v787_v43, %v786_v31  ;;  %v841_v4 = vpack.c.bf16 %v827_v41, %v826_v47  ;;  %v3422_v43 = vld [vmem:[#allocation24_spill] sm:$0xff]  ;;  %v3423_v41 = vld [vmem:[#allocation25_spill] sm:$0xff] }
 0x1c9   :  { %2088 = vmatpush3.bf16.msra.mxu0 %v803_v7  ;;  %2120 = vmatpush3.bf16.msra.mxu1 %v843_v26  ;;  %v3420_v7 = vld [vmem:[#allocation22_spill] sm:$0xff]  ;;  %v3441_v56 = vld [vmem:[#allocation44_spill] sm:$0xff] }
 0x1ca   :  { %2089 = vmatprep.subr.bf16.mxu0 %v802_v20  ;;  %2121 = vmatprep.subr.bf16.mxu1 %v842_v45  ;;  %v784_v26 = vmul.f32 %v577_v34, %v3420_v7  ;;  %v824_v24 = vmul.f32 %v690_v0, %v3420_v7 }
 0x1cc   :  { %v800_v49 = vpack.c.bf16 %v785_v52, %v784_v26  ;;  %v840_v60 = vpack.c.bf16 %v825_v44, %v824_v24 }
 0x1cd   :  { %2090 = vmatpush3.bf16.msra.mxu0 %v802_v20  ;;  %2122 = vmatpush3.bf16.msra.mxu1 %v842_v45  ;;  %v3427_v20 = vld [vmem:[#allocation29_spill] sm:$0xff] }
 0x1ce   :  { %2091 = vmatprep.subr.bf16.mxu0 %v801_v42  ;;  %2123 = vmatprep.subr.bf16.mxu1 %v841_v4  ;;  %v3428_v45 = vld [vmem:[#allocation9_spill] sm:$0xff] }
 0x1d1   :  { %2092 = vmatpush3.bf16.msra.mxu0 %v801_v42  ;;  %2124 = vmatpush3.bf16.msra.mxu1 %v841_v4 }
 0x1d2   :  { %2093 = vmatprep.subr.bf16.mxu0 %v800_v49  ;;  %2125 = vmatprep.subr.bf16.mxu1 %v840_v60 }
 0x1d5   :  { %2094 = vmatpush3.bf16.msra.mxu0 %v800_v49  ;;  %2126 = vmatpush3.bf16.msra.mxu1 %v840_v60 }
 0x1d8   :  { %2096 = vmatmul.mubr.bf16.vlgmr.msra.gmra.mxu0 %v3421_v17  ;;  %2128 = vmatmul.mubr.bf16.vlgmr.msra.gmra.mxu1 %v3421_v17 }
 0x1d9   :  { %2099 = vmatprep.mubr.bf16.mxu0 %v3422_v43  ;;  %2131 = vmatprep.mubr.bf16.mxu1 %v3422_v43 }
 0x1e0   :  { %2100 = vmatmul.mubr.bf16.gmra.mxu0 %v3423_v41  ;;  %2132 = vmatmul.mubr.bf16.gmra.mxu1 %v3423_v41 }
 0x1e1   :  { %2103 = vmatprep.mubr.bf16.mxu0 %v3424_v3  ;;  %2135 = vmatprep.mubr.bf16.mxu1 %v3424_v3 }
 0x1e8   :  { %2104 = vmatmul.mubr.bf16.gmra.mxu0 %v3425_v53  ;;  %2136 = vmatmul.mubr.bf16.gmra.mxu1 %v3425_v53 }
 0x1e9   :  { %2107 = vmatprep.mubr.bf16.mxu0 %v3426_v48  ;;  %2139 = vmatprep.mubr.bf16.mxu1 %v3426_v48 }
 0x1f0   :  { %2108 = vmatmul.mubr.bf16.gmra.mxu0 %v3427_v20  ;;  %2140 = vmatmul.mubr.bf16.gmra.mxu1 %v3427_v20 }
 0x1f1   :  { %2159 = vmatprep.mubr.bf16.mxu0 %v3428_v45  ;;  %2191 = vmatprep.mubr.bf16.mxu1 %v3428_v45 }
 0x298   :  { %v2969_v31 = vpop.f32.mrf.mxu0  ;;  %v2971_v47 = vpop.f32.mrf.mxu1 }
 0x299   :  { %3429 = vst [vmem:[#allocation30_spill] sm:$0xff] %v2969_v31  ;;  %3430 = vst [vmem:[#allocation19_spill] sm:$0xff] %v2971_v47 }
 0x29a   :  { %v2973_v25 = vpop.f32.mrf.mxu0  ;;  %v2975_v34 = vpop.f32.mrf.mxu1 }
 0x29b   :  { %3431 = vst [vmem:[#allocation31_spill] sm:$0xff] %v2973_v25  ;;  %3432 = vst [vmem:[#allocation20_spill] sm:$0xff] %v2975_v34  ;;  %v3437_v25 = vld [vmem:[#allocation39_spill] sm:$0xff] }
 0x29c   :  { %v2977_v58 = vpop.f32.mrf.mxu0  ;;  %v2979_v0 = vpop.f32.mrf.mxu1 }
 0x29d   :  { %3433 = vst [vmem:[#allocation21_spill] sm:$0xff] %v2977_v58  ;;  %3434 = vst [vmem:[#allocation36_spill] sm:$0xff] %v2979_v0 }
 0x29e   :  { %v2981_v52 = vpop.f32.mrf.mxu0  ;;  %v2983_v44 = vpop.f32.mrf.mxu1 }
 0x29f   :  { %3435 = vst [vmem:[#allocation37_spill] sm:$0xff] %v2981_v52  ;;  %3436 = vst [vmem:[#allocation32_spill] sm:$0xff] %v2983_v44 }
 0x2a0   :  { %v2985_v42 = vpop.f32.mrf.mxu0  ;;  %v2987_v4 = vpop.f32.mrf.mxu1 }
 0x2a2   :  { %v2989_v26 = vpop.f32.mrf.mxu0  ;;  %v2991_v24 = vpop.f32.mrf.mxu1 }
 0x2a4   :  { %v2102_v49 = vpop.f32.mrf.mxu0  ;;  %v2134_v60 = vpop.f32.mrf.mxu1 }
 0x2a6   :  { %v2993_v45 = vpop.f32.mrf.mxu0  ;;  %v2995_v20 = vpop.f32.mrf.mxu1 }
 0x2a8   :  { %v2105_v48 = vpop.f32.mrf.mxu0  ;;  %v2137_v53 = vpop.f32.mrf.mxu1 }
 0x2aa   :  { %v914_v3 = vpop.f32.mrf.mxu0  ;;  %v1027_v41 = vpop.f32.mrf.mxu1 }
 0x2ac   :  { %v2106_v43 = vpop.f32.mrf.mxu0  ;;  %v2138_v17 = vpop.f32.mrf.mxu1 }
 0x2ad   :  { %v926_v0 = vadd.f32 %v2106_v43, %v2802_v19  ;;  %v1039_v58 = vadd.f32 %v2138_v17, %v3441_v56  ;;  %v1036_v43 = vadd.f32 %v2137_v53, %v2811_v33 }
 0x2ae   :  { %v917_v7 = vpop.f32.mrf.mxu0  ;;  %v1030_v59 = vpop.f32.mrf.mxu1 }
 0x2b0   :  { %v2109_v34 = vpop.f32.mrf.mxu0  ;;  %v2141_v57 = vpop.f32.mrf.mxu1 }
 0x2b1   :  { %v939_v55 = vadd.f32 %v2109_v34, %v3437_v25  ;;  %v1052_v44 = vadd.f32 %v2141_v57, %v3438_v63 }
 0x2b2   :  { %v930_v23 = vpop.f32.mrf.mxu0  ;;  %v1043_v52 = vpop.f32.mrf.mxu1 }
 0x2b3   :  { %v931_v40 = vadd.f32 %v930_v23, %v3439_v21  ;;  %v1044_v47 = vadd.f32 %v1043_v52, %v3440_v50  ;;  %v1104_v34 = vmul.f32 %v939_v55, %v3442_v1  ;;  %v1144_v57 = vmul.f32 %v1052_v44, %v3442_v1 }
 0x2b4   :  { %v2110_v28 = vpop.f32.mrf.mxu0  ;;  %v2142_v31 = vpop.f32.mrf.mxu1 }
 0x2b5   :  { %v942_v27 = vadd.f32 %v2110_v28, %v2782_v15  ;;  %v1055_v37 = vadd.f32 %v2142_v31, %v2785_v62  ;;  %v923_v31 = vadd.f32 %v2105_v48, %v2808_v32  ;;  %v1102_v17 = vmul.f32 %v931_v40, %v2530_v6 }
 0x2b6   :  { %v933_v63 = vpop.f32.mrf.mxu0  ;;  %v1046_v25 = vpop.f32.mrf.mxu1  ;;  %v1142_v55 = vmul.f32 %v1044_v47, %v2530_v6  ;;  %v1031_v48 = vadd.f32 %v1030_v59, %v2819_v39  ;;  %v1023_v59 = vadd.f32 %v2134_v60, %v2851_v12 }
 0x2b7   :  { %v1105_v23 = vmul.f32 %v942_v27, %v2532_v9  ;;  %v1145_v52 = vmul.f32 %v1055_v37, %v2532_v9  ;;  %v934_v50 = vadd.f32 %v933_v63, %v2788_v14  ;;  %v1047_v28 = vadd.f32 %v1046_v25, %v2799_v18 }
 0x2b8   :  { %v1101_v37 = vmul.f32 %v926_v0, %v2538_v8  ;;  %v1141_v63 = vmul.f32 %v1039_v58, %v2538_v8  ;;  %v918_v25 = vadd.f32 %v917_v7, %v2816_v22  ;;  %v1100_v47 = vmul.f32 %v923_v31, %v2534_v10 }
 0x2b9   :  { %v1103_v44 = vmul.f32 %v934_v50, %v2536_v11  ;;  %v1143_v1 = vmul.f32 %v1047_v28, %v2536_v11  ;;  %v1113_v56 = vpack.c.bf16 %v1105_v23, %v1104_v34  ;;  %v1153_v27 = vpack.c.bf16 %v1145_v52, %v1144_v57 }
 0x2ba   :  { %v1140_v50 = vmul.f32 %v1036_v43, %v2534_v10  ;;  %v915_v34 = vadd.f32 %v914_v3, %v2838_v46  ;;  %v1028_v0 = vadd.f32 %v1027_v41, %v2844_v2  ;;  %v910_v7 = vadd.f32 %v2102_v49, %v2848_v51 }
 0x2bb   :  { %2143 = vmatprep.subr.bf16.mxu0 %v1113_v56  ;;  %2175 = vmatprep.subr.bf16.mxu1 %v1153_v27  ;;  %v1112_v53 = vpack.c.bf16 %v1103_v44, %v1102_v17  ;;  %v1152_v40 = vpack.c.bf16 %v1143_v1, %v1142_v55  ;;  %v1099_v58 = vmul.f32 %v918_v25, %v2590_v61 }
 0x2bc   :  { %2144 = vmatpush3.bf16.msra.mxu0 %v1113_v56  ;;  %2176 = vmatpush3.bf16.msra.mxu1 %v1153_v27  ;;  %v1139_v1 = vmul.f32 %v1031_v48, %v2590_v61  ;;  %v1111_v57 = vpack.c.bf16 %v1101_v37, %v1100_v47  ;;  %v1151_v23 = vpack.c.bf16 %v1141_v63, %v1140_v50  ;;  %v3444_v27 = vld [vmem:[#allocation21_spill] sm:$0xff]  ;;  %v3446_v63 = vld [vmem:[#allocation36_spill] sm:$0xff]  ;;  %v3447_v48 = vld [vmem:[#allocation11_spill] sm:$0xff] }
 0x2bd   :  { %2145 = vmatprep.subr.bf16.mxu0 %v1112_v53  ;;  %2177 = vmatprep.subr.bf16.mxu1 %v1152_v40  ;;  %v907_v56 = vadd.f32 %v2985_v42, %v2860_v5  ;;  %v1020_v41 = vadd.f32 %v2987_v4, %v2863_v30  ;;  %v1098_v3 = vmul.f32 %v915_v34, %v2598_v13  ;;  %v3448_v34 = vld [vmem:[#allocation38_spill] sm:$0xff] }
 0x2be   :  { %v1138_v49 = vmul.f32 %v1028_v0, %v2598_v13  ;;  %v1097_v60 = vmul.f32 %v910_v7, %v2608_v29  ;;  %v1137_v52 = vmul.f32 %v1023_v59, %v2608_v29  ;;  %v902_v28 = vadd.f32 %v2993_v45, %v2872_v38  ;;  %v3443_v45 = vld [vmem:[#allocation45_spill] sm:$0xff]  ;;  %v3449_v0 = vld [vmem:[#allocation30_spill] sm:$0xff]  ;;  %v3451_v7 = vld [vmem:[#allocation19_spill] sm:$0xff] }
 0x2bf   :  { %v1015_v42 = vadd.f32 %v2995_v20, %v2877_v35  ;;  %v1110_v31 = vpack.c.bf16 %v1099_v58, %v1098_v3  ;;  %v1096_v4 = vmul.f32 %v907_v56, %v2618_v36  ;;  %v1136_v17 = vmul.f32 %v1020_v41, %v2618_v36  ;;  %v3445_v20 = vld [vmem:[#allocation46_spill] sm:$0xff]  ;;  %v3452_v58 = vld [vmem:[#allocation12_spill] sm:$0xff]  ;;  %v3454_v3 = vld [vmem:[#allocation15_spill] sm:$0xff] }
 0x2c0   :  { %2146 = vmatpush3.bf16.msra.mxu0 %v1112_v53  ;;  %2178 = vmatpush3.bf16.msra.mxu1 %v1152_v40  ;;  %v1150_v43 = vpack.c.bf16 %v1139_v1, %v1138_v49  ;;  %v899_v55 = vadd.f32 %v2989_v26, %v2884_v54  ;;  %v1012_v44 = vadd.f32 %v2991_v24, %v2887_v16  ;;  %v3450_v24 = vld [vmem:[#allocation14_spill] sm:$0xff]  ;;  %v3455_v49 = vld [vmem:[#allocation37_spill] sm:$0xff] }
 0x2c1   :  { %2147 = vmatprep.subr.bf16.mxu0 %v1111_v57  ;;  %2179 = vmatprep.subr.bf16.mxu1 %v1151_v23  ;;  %v894_v37 = vadd.f32 %v3444_v27, %v3443_v45  ;;  %v1007_v25 = vadd.f32 %v3446_v63, %v3445_v20  ;;  %v1095_v53 = vmul.f32 %v902_v28, %v3447_v48  ;;  %v3457_v28 = vld [vmem:[#allocation32_spill] sm:$0xff]  ;;  %v3460_v27 = vld [vmem:[#allocation31_spill] sm:$0xff]  ;;  %v3484_v45 = vld [vmem:[#allocation10_spill] sm:$0xff] }
 0x2c2   :  { %v1135_v40 = vmul.f32 %v1015_v42, %v3447_v48  ;;  %v1109_v47 = vpack.c.bf16 %v1097_v60, %v1096_v4  ;;  %v1149_v50 = vpack.c.bf16 %v1137_v52, %v1136_v17  ;;  %v891_v26 = vadd.f32 %v3449_v0, %v3448_v34  ;;  %v3456_v52 = vld [vmem:[#allocation34_spill] sm:$0xff]  ;;  %v3458_v4 = vld [vmem:[#allocation16_spill] sm:$0xff] }
 0x2c3   :  { %v1004_v59 = vadd.f32 %v3451_v7, %v3450_v24  ;;  %v1094_v1 = vmul.f32 %v899_v55, %v3452_v58  ;;  %v886_v60 = vadd.f32 %v3455_v49, %v3454_v3  ;;  %v999_v42 = vadd.f32 %v3457_v28, %v3456_v52  ;;  %v3462_v0 = vld [vmem:[#allocation20_spill] sm:$0xff]  ;;  %v3463_v7 = vld [vmem:[#allocation17_spill] sm:$0xff] }
 0x2c4   :  { %2148 = vmatpush3.bf16.msra.mxu0 %v1111_v57  ;;  %2180 = vmatpush3.bf16.msra.mxu1 %v1151_v23  ;;  %v1134_v57 = vmul.f32 %v1012_v44, %v3452_v58  ;;  %v3453_v23 = vld [vmem:[#allocation13_spill] sm:$0xff]  ;;  %v1092_v17 = vmul.f32 %v891_v26, %v3458_v4  ;;  %v3459_v44 = vld [vmem:[#allocation35_spill] sm:$0xff]  ;;  %v3483_v20 = vld [vmem:[#allocation44_spill] sm:$0xff] }
 0x2c5   :  { %2149 = vmatprep.subr.bf16.mxu0 %v1110_v31  ;;  %2181 = vmatprep.subr.bf16.mxu1 %v1150_v43  ;;  %v1093_v56 = vmul.f32 %v894_v37, %v3453_v23  ;;  %v1133_v41 = vmul.f32 %v1007_v25, %v3453_v23  ;;  %v1132_v55 = vmul.f32 %v1004_v59, %v3458_v4  ;;  %v3461_v37 = vld [vmem:[#allocation18_spill] sm:$0xff]  ;;  %v3482_v58 = vld [vmem:[#allocation43_spill] sm:$0xff] }
 0x2c6   :  { %v883_v63 = vadd.f32 %v3460_v27, %v3459_v44  ;;  %v996_v25 = vadd.f32 %v3462_v0, %v3461_v37  ;;  %v1091_v49 = vmul.f32 %v886_v60, %v3463_v7  ;;  %v1131_v28 = vmul.f32 %v999_v42, %v3463_v7  ;;  %v3468_v60 = vld [vmem:[#allocation26_spill] sm:$0xff]  ;;  %v3469_v42 = vld [vmem:[#allocation27_spill] sm:$0xff] }
 0x2c7   :  { %v3480_v44 = vld [vmem:[#allocation39_spill] sm:$0xff] }
 0x2c8   :  { %2150 = vmatpush3.bf16.msra.mxu0 %v1110_v31  ;;  %2182 = vmatpush3.bf16.msra.mxu1 %v1150_v43  ;;  %v1108_v31 = vpack.c.bf16 %v1095_v53, %v1094_v1  ;;  %v1148_v43 = vpack.c.bf16 %v1135_v40, %v1134_v57  ;;  %v1107_v53 = vpack.c.bf16 %v1093_v56, %v1092_v17  ;;  %v3465_v57 = vld [vmem:[#allocation23_spill] sm:$0xff]  ;;  %v3466_v56 = vld [vmem:[#allocation24_spill] sm:$0xff]  ;;  %v2318_v17 = vld [vmem:[%s3269_s0] sm:$0xff]  }
 0x2c9   :  { %2151 = vmatprep.subr.bf16.mxu0 %v1109_v47  ;;  %2183 = vmatprep.subr.bf16.mxu1 %v1149_v50  ;;  %v1147_v40 = vpack.c.bf16 %v1133_v41, %v1132_v55  ;;  %v3467_v41 = vld [vmem:[#allocation25_spill] sm:$0xff] }
 0x2cc   :  { %2152 = vmatpush3.bf16.msra.mxu0 %v1109_v47  ;;  %2184 = vmatpush3.bf16.msra.mxu1 %v1149_v50  ;;  %v3464_v47 = vld [vmem:[#allocation22_spill] sm:$0xff] }
 0x2cd   :  { %2153 = vmatprep.subr.bf16.mxu0 %v1108_v31  ;;  %2185 = vmatprep.subr.bf16.mxu1 %v1148_v43  ;;  %v1090_v50 = vmul.f32 %v883_v63, %v3464_v47  ;;  %v1130_v26 = vmul.f32 %v996_v25, %v3464_v47 }
 0x2cf   :  { %v1106_v59 = vpack.c.bf16 %v1091_v49, %v1090_v50  ;;  %v1146_v1 = vpack.c.bf16 %v1131_v28, %v1130_v26 }
 0x2d0   :  { %2154 = vmatpush3.bf16.msra.mxu0 %v1108_v31  ;;  %2186 = vmatpush3.bf16.msra.mxu1 %v1148_v43  ;;  %v3470_v31 = vld [vmem:[#allocation28_spill] sm:$0xff]  ;;  %v3471_v43 = vld [vmem:[#allocation29_spill] sm:$0xff] }
 0x2d1   :  { %2155 = vmatprep.subr.bf16.mxu0 %v1107_v53  ;;  %2187 = vmatprep.subr.bf16.mxu1 %v1147_v40 }
 0x2d4   :  { %2156 = vmatpush3.bf16.msra.mxu0 %v1107_v53  ;;  %2188 = vmatpush3.bf16.msra.mxu1 %v1147_v40 }
 0x2d5   :  { %2157 = vmatprep.subr.bf16.mxu0 %v1106_v59  ;;  %2189 = vmatprep.subr.bf16.mxu1 %v1146_v1 }
 0x2d8   :  { %2158 = vmatpush3.bf16.msra.mxu0 %v1106_v59  ;;  %2190 = vmatpush3.bf16.msra.mxu1 %v1146_v1 }
 0x2db   :  { %2160 = vmatmul.mubr.bf16.vlgmr.msra.gmra.mxu0 %v3465_v57  ;;  %2192 = vmatmul.mubr.bf16.vlgmr.msra.gmra.mxu1 %v3465_v57 }
 0x2dc   :  { %2163 = vmatprep.mubr.bf16.mxu0 %v3466_v56  ;;  %2195 = vmatprep.mubr.bf16.mxu1 %v3466_v56 }
 0x2e3   :  { %2164 = vmatmul.mubr.bf16.gmra.mxu0 %v3467_v41  ;;  %2196 = vmatmul.mubr.bf16.gmra.mxu1 %v3467_v41 }
 0x2e4   :  { %2167 = vmatprep.mubr.bf16.mxu0 %v3468_v60  ;;  %2199 = vmatprep.mubr.bf16.mxu1 %v3468_v60 }
 0x2eb   :  { %2168 = vmatmul.mubr.bf16.gmra.mxu0 %v3469_v42  ;;  %2200 = vmatmul.mubr.bf16.gmra.mxu1 %v3469_v42 }
 0x2ec   :  { %2171 = vmatprep.mubr.bf16.mxu0 %v3470_v31  ;;  %2203 = vmatprep.mubr.bf16.mxu1 %v3470_v31 }
 0x2f3   :  { %2172 = vmatmul.mubr.bf16.gmra.mxu0 %v3471_v43  ;;  %2204 = vmatmul.mubr.bf16.gmra.mxu1 %v3471_v43 }
 0x2f4   :  { %2223 = vmatprep.mubr.bf16.mxu0 %v2318_v17  ;;  %2255 = vmatprep.mubr.bf16.mxu1 %v2318_v17 }
 0x39b   :  { %v3092_v55 = vpop.f32.mrf.mxu0  ;;  %v3094_v27 = vpop.f32.mrf.mxu1 }
 0x39c   :  { %3472 = vst [vmem:[#allocation33_spill] sm:$0xff] %v3092_v55  ;;  %3473 = vst [vmem:[#allocation9_spill] sm:$0xff] %v3094_v27 }
 0x39d   :  { %v3096_v63 = vpop.f32.mrf.mxu0  ;;  %v3098_v0 = vpop.f32.mrf.mxu1 }
 0x39e   :  { %3474 = vst [vmem:[#allocation42_spill] sm:$0xff] %v3096_v63  ;;  %3475 = vst [vmem:[#allocation21_spill] sm:$0xff] %v3098_v0 }
 0x39f   :  { %v3100_v25 = vpop.f32.mrf.mxu0  ;;  %v3102_v49 = vpop.f32.mrf.mxu1 }
 0x3a0   :  { %3476 = vst [vmem:[#allocation36_spill] sm:$0xff] %v3100_v25  ;;  %3477 = vst [vmem:[#allocation30_spill] sm:$0xff] %v3102_v49 }
 0x3a1   :  { %v3104_v28 = vpop.f32.mrf.mxu0  ;;  %v3106_v53 = vpop.f32.mrf.mxu1 }
 0x3a2   :  { %3478 = vst [vmem:[#allocation19_spill] sm:$0xff] %v3104_v28  ;;  %3479 = vst [vmem:[#allocation37_spill] sm:$0xff] %v3106_v53  ;;  %v3481_v53 = vld [vmem:[#allocation40_spill] sm:$0xff] }
 0x3a3   :  { %v3108_v40 = vpop.f32.mrf.mxu0  ;;  %v3110_v50 = vpop.f32.mrf.mxu1 }
 0x3a5   :  { %v3112_v26 = vpop.f32.mrf.mxu0  ;;  %v3114_v59 = vpop.f32.mrf.mxu1 }
 0x3a7   :  { %v2166_v1 = vpop.f32.mrf.mxu0  ;;  %v2198_v57 = vpop.f32.mrf.mxu1 }
 0x3a9   :  { %v3116_v56 = vpop.f32.mrf.mxu0  ;;  %v3118_v41 = vpop.f32.mrf.mxu1 }
 0x3ab   :  { %v2169_v60 = vpop.f32.mrf.mxu0  ;;  %v2201_v42 = vpop.f32.mrf.mxu1 }
 0x3ad   :  { %v1220_v31 = vpop.f32.mrf.mxu0  ;;  %v1333_v43 = vpop.f32.mrf.mxu1 }
 0x3af   :  { %v2170_v17 = vpop.f32.mrf.mxu0  ;;  %v2202_v47 = vpop.f32.mrf.mxu1 }
 0x3b0   :  { %v1232_v49 = vadd.f32 %v2170_v17, %v2802_v19  ;;  %v1345_v25 = vadd.f32 %v2202_v47, %v3483_v20  ;;  %v1342_v17 = vadd.f32 %v2201_v42, %v2811_v33 }
 0x3b1   :  { %v1223_v7 = vpop.f32.mrf.mxu0  ;;  %v1336_v0 = vpop.f32.mrf.mxu1 }
 0x3b3   :  { %v2173_v37 = vpop.f32.mrf.mxu0  ;;  %v2205_v63 = vpop.f32.mrf.mxu1 }
 0x3b4   :  { %v1245_v4 = vadd.f32 %v2173_v37, %v3480_v44  ;;  %v1358_v52 = vadd.f32 %v2205_v63, %v3481_v53 }
 0x3b5   :  { %v1236_v28 = vpop.f32.mrf.mxu0  ;;  %v1349_v3 = vpop.f32.mrf.mxu1 }
 0x3b6   :  { %v1237_v23 = vadd.f32 %v1236_v28, %v3439_v21  ;;  %v1350_v27 = vadd.f32 %v1349_v3, %v3482_v58  ;;  %v1410_v37 = vmul.f32 %v1245_v4, %v3484_v45  ;;  %v1450_v63 = vmul.f32 %v1358_v52, %v3484_v45 }
 0x3b7   :  { %v2174_v24 = vpop.f32.mrf.mxu0  ;;  %v2206_v55 = vpop.f32.mrf.mxu1 }
 0x3b8   :  { %v1248_v34 = vadd.f32 %v2174_v24, %v2782_v15  ;;  %v1361_v48 = vadd.f32 %v2206_v55, %v2785_v62  ;;  %v1229_v55 = vadd.f32 %v2169_v60, %v2808_v32  ;;  %v1408_v47 = vmul.f32 %v1237_v23, %v2530_v6 }
 0x3b9   :  { %v1239_v53 = vpop.f32.mrf.mxu0  ;;  %v1352_v44 = vpop.f32.mrf.mxu1  ;;  %v1448_v4 = vmul.f32 %v1350_v27, %v2530_v6  ;;  %v1334_v27 = vadd.f32 %v1333_v43, %v2844_v2  ;;  %v1208_v43 = vadd.f32 %v3116_v56, %v2872_v38  ;;  %v3485_v56 = vld [vmem:[#allocation45_spill] sm:$0xff] }
 0x3ba   :  { %v1411_v28 = vmul.f32 %v1248_v34, %v2532_v9  ;;  %v1451_v3 = vmul.f32 %v1361_v48, %v2532_v9  ;;  %v1240_v58 = vadd.f32 %v1239_v53, %v2788_v14  ;;  %v1353_v24 = vadd.f32 %v1352_v44, %v2799_v18 }
 0x3bb   :  { %v1407_v9 = vmul.f32 %v1232_v49, %v2538_v8  ;;  %v1447_v48 = vmul.f32 %v1345_v25, %v2538_v8  ;;  %v1224_v44 = vadd.f32 %v1223_v7, %v2816_v22  ;;  %v1337_v53 = vadd.f32 %v1336_v0, %v2819_v39 }
 0x3bc   :  { %v1409_v45 = vmul.f32 %v1240_v58, %v2536_v11  ;;  %v1449_v52 = vmul.f32 %v1353_v24, %v2536_v11  ;;  %v1419_v62 = vpack.c.bf16 %v1411_v28, %v1410_v37  ;;  %v1459_v34 = vpack.c.bf16 %v1451_v3, %v1450_v63  ;;  %v3486_v3 = vld [vmem:[#allocation36_spill] sm:$0xff] }
 0x3bd   :  { %v1406_v6 = vmul.f32 %v1229_v55, %v2534_v10  ;;  %v1446_v11 = vmul.f32 %v1342_v17, %v2534_v10  ;;  %v1221_v58 = vadd.f32 %v1220_v31, %v2838_v46  ;;  %v1216_v8 = vadd.f32 %v2166_v1, %v2848_v51  ;;  %v3488_v55 = vld [vmem:[#allocation30_spill] sm:$0xff] }
 0x3be   :  { %2207 = vmatprep.subr.bf16.mxu0 %v1419_v62  ;;  %2239 = vmatprep.subr.bf16.mxu1 %v1459_v34  ;;  %v1418_v60 = vpack.c.bf16 %v1409_v45, %v1408_v47  ;;  %v1458_v23 = vpack.c.bf16 %v1449_v52, %v1448_v4  ;;  %v1329_v7 = vadd.f32 %v2198_v57, %v2851_v12  ;;  %v3489_v47 = vld [vmem:[#allocation11_spill] sm:$0xff] }
 0x3bf   :  { %2208 = vmatpush3.bf16.msra.mxu0 %v1419_v62  ;;  %2240 = vmatpush3.bf16.msra.mxu1 %v1459_v34  ;;  %v1405_v0 = vmul.f32 %v1224_v44, %v2590_v61  ;;  %v1445_v25 = vmul.f32 %v1337_v53, %v2590_v61  ;;  %v1417_v49 = vpack.c.bf16 %v1407_v9, %v1406_v6  ;;  %v3490_v34 = vld [vmem:[#allocation38_spill] sm:$0xff]  ;;  %v3491_v9 = vld [vmem:[#allocation33_spill] sm:$0xff]  ;;  %v3494_v53 = vld [vmem:[#allocation12_spill] sm:$0xff] }
 0x3c0   :  { %2209 = vmatprep.subr.bf16.mxu0 %v1418_v60  ;;  %2241 = vmatprep.subr.bf16.mxu1 %v1458_v23  ;;  %v1457_v42 = vpack.c.bf16 %v1447_v48, %v1446_v11  ;;  %v1213_v62 = vadd.f32 %v3108_v40, %v2860_v5  ;;  %v1326_v10 = vadd.f32 %v3110_v50, %v2863_v30  ;;  %v3493_v48 = vld [vmem:[#allocation9_spill] sm:$0xff] }
 0x3c1   :  { %v1404_v31 = vmul.f32 %v1221_v58, %v2598_v13  ;;  %v1444_v1 = vmul.f32 %v1334_v27, %v2598_v13  ;;  %v1403_v57 = vmul.f32 %v1216_v8, %v2608_v29  ;;  %v1443_v61 = vmul.f32 %v1329_v7, %v2608_v29  ;;  %v3495_v6 = vld [vmem:[#allocation13_spill] sm:$0xff]  ;;  %v3496_v27 = vld [vmem:[#allocation15_spill] sm:$0xff] }
 0x3c2   :  { %v1321_v40 = vadd.f32 %v3118_v41, %v2877_v35  ;;  %v1402_v50 = vmul.f32 %v1213_v62, %v2618_v36  ;;  %v1442_v13 = vmul.f32 %v1326_v10, %v2618_v36  ;;  %v1205_v28 = vadd.f32 %v3112_v26, %v2884_v54  ;;  %v3487_v41 = vld [vmem:[#allocation46_spill] sm:$0xff]  ;;  %v3497_v8 = vld [vmem:[#allocation19_spill] sm:$0xff]  ;;  %v3500_v10 = vld [vmem:[#allocation16_spill] sm:$0xff] }
 0x3c3   :  { %2210 = vmatpush3.bf16.msra.mxu0 %v1418_v60  ;;  %2242 = vmatpush3.bf16.msra.mxu1 %v1458_v23  ;;  %v1416_v37 = vpack.c.bf16 %v1405_v0, %v1404_v31  ;;  %v1456_v63 = vpack.c.bf16 %v1445_v25, %v1444_v1  ;;  %v1318_v29 = vadd.f32 %v3114_v59, %v2887_v16  ;;  %v3492_v59 = vld [vmem:[#allocation14_spill] sm:$0xff]  ;;  %v3499_v25 = vld [vmem:[#allocation37_spill] sm:$0xff] }
 0x3c4   :  { %2211 = vmatprep.subr.bf16.mxu0 %v1417_v49  ;;  %2243 = vmatprep.subr.bf16.mxu1 %v1457_v42  ;;  %v1200_v24 = vadd.f32 %v3486_v3, %v3485_v56  ;;  %v1313_v17 = vadd.f32 %v3488_v55, %v3487_v41  ;;  %v1401_v4 = vmul.f32 %v1208_v43, %v3489_v47  ;;  %v3498_v0 = vld [vmem:[#allocation34_spill] sm:$0xff] }
 0x3c5   :  { %v1441_v45 = vmul.f32 %v1321_v40, %v3489_v47  ;;  %v1415_v52 = vpack.c.bf16 %v1403_v57, %v1402_v50  ;;  %v1455_v36 = vpack.c.bf16 %v1443_v61, %v1442_v13  ;;  %v1197_v26 = vadd.f32 %v3491_v9, %v3490_v34  ;;  %v3501_v57 = vld [vmem:[#allocation35_spill] sm:$0xff]  ;;  %v3502_v61 = vld [vmem:[#allocation42_spill] sm:$0xff]  ;;  %v3505_v50 = vld [vmem:[#allocation17_spill] sm:$0xff] }
 0x3c6   :  { %v1310_v44 = vadd.f32 %v3493_v48, %v3492_v59  ;;  %v1400_v60 = vmul.f32 %v1205_v28, %v3494_v53  ;;  %v1440_v23 = vmul.f32 %v1318_v29, %v3494_v53  ;;  %v1399_v11 = vmul.f32 %v1200_v24, %v3495_v6  ;;  %v3503_v40 = vld [vmem:[#allocation18_spill] sm:$0xff]  ;;  %v2322_v9 = vld [vmem:[%s3269_s0 + $0x20] sm:$0xff]   ;;  %v2324_v48 = vld [vmem:[%s3269_s0 + $0x30] sm:$0xff]   ;;  %v1705_v53 = vpop.permute.xlu0 %1704 }
 0x3c7   :  { %2212 = vmatpush3.bf16.msra.mxu0 %v1417_v49  ;;  %2244 = vmatpush3.bf16.msra.mxu1 %v1457_v42  ;;  %v1439_v58 = vmul.f32 %v1313_v17, %v3495_v6  ;;  %v1192_v7 = vadd.f32 %v3497_v8, %v3496_v27  ;;  %v1305_v49 = vadd.f32 %v3499_v25, %v3498_v0  ;;  %v3506_v24 = vld [vmem:[#allocation22_spill] sm:$0xff] }
 0x3c8   :  { %2213 = vmatprep.subr.bf16.mxu0 %v1416_v37  ;;  %2245 = vmatprep.subr.bf16.mxu1 %v1456_v63  ;;  %v1414_v42 = vpack.c.bf16 %v1401_v4, %v1400_v60  ;;  %v1454_v62 = vpack.c.bf16 %v1441_v45, %v1440_v23  ;;  %v1398_v31 = vmul.f32 %v1197_v26, %v3500_v10  ;;  %v2319_v45 = vld [vmem:[%s3269_s0 + $0x8] sm:$0xff]   ;;  %v1710_v60 = vpop.permute.xlu1 %1709 }
 0x3c9   :  { %v1438_v1 = vmul.f32 %v1310_v44, %v3500_v10  ;;  %v1189_v43 = vadd.f32 %v3502_v61, %v3501_v57  ;;  %v1397_v13 = vmul.f32 %v1192_v7, %v3505_v50  ;;  %v1437_v28 = vmul.f32 %v1305_v49, %v3505_v50  ;;  %v2323_v26 = vld [vmem:[%s3269_s0 + $0x28] sm:$0xff]   ;;  %v2325_v44 = vld [vmem:[%s3269_s0 + $0x38] sm:$0xff]  }
 0x3ca   :  { %v1413_v29 = vpack.c.bf16 %v1399_v11, %v1398_v31  ;;  %v1715_v23 = vpop.permute.xlu0 %1714 }
 0x3cb   :  { %2214 = vmatpush3.bf16.msra.mxu0 %v1416_v37  ;;  %2246 = vmatpush3.bf16.msra.mxu1 %v1456_v63  ;;  %v3504_v37 = vld [vmem:[#allocation21_spill] sm:$0xff]  ;;  %v1453_v3 = vpack.c.bf16 %v1439_v58, %v1438_v1  ;;  %v1396_v55 = vmul.f32 %v1189_v43, %v3506_v24 }
 0x3cc   :  { %2215 = vmatprep.subr.bf16.mxu0 %v1415_v52  ;;  %2247 = vmatprep.subr.bf16.mxu1 %v1455_v36  ;;  %v1302_v63 = vadd.f32 %v3504_v37, %v3503_v40  ;;  %v1720_v6 = vpop.permute.xlu1 %1719 }
 0x3cd   :  { %v1412_v47 = vpack.c.bf16 %v1397_v13, %v1396_v55 }
 0x3ce   :  { %v1436_v17 = vmul.f32 %v1302_v63, %v3506_v24  ;;  %v1725_v11 = vpop.permute.xlu0 %1724 }
 0x3cf   :  { %2216 = vmatpush3.bf16.msra.mxu0 %v1415_v52  ;;  %2248 = vmatpush3.bf16.msra.mxu1 %v1455_v36  ;;  %v2320_v52 = vld [vmem:[%s3269_s0 + $0x10] sm:$0xff]   ;;  %v2321_v36 = vld [vmem:[%s3269_s0 + $0x18] sm:$0xff]   ;;  %s2374_s0 = smov [#allocation6]  }
 0x3d0   :  { %2217 = vmatprep.subr.bf16.mxu0 %v1414_v42  ;;  %2249 = vmatprep.subr.bf16.mxu1 %v1454_v62  ;;  %v1452_v4 = vpack.c.bf16 %v1437_v28, %v1436_v17  ;;  %v3219_v58 = vpop.permute.xlu1 %1729  ;;  %s1867_s28 = sshll.u32 %s2374_s0, 4  ;;  %s1868_s28 = int_to_ptr.vmem [resolvable:$true] %s1867_s28 }
 0x3d1   :  { %s2346_s29 = scalar_lea.vmem %s1868_s28, 4096  ;;  %p2351_p6 = scmp.lt.s32.totalorder %s1868_s28, %s1868_s28 }
 0x3d2   :  { %v1735_v25 = vpop.permute.xlu0 %1734  ;;  %p2347_p5 = scmp.ne.s32.totalorder %s1868_s28, %s2346_s29  ;;  %p2352_p7 = scmp.lt.s32.totalorder %s2346_s29, %s2346_s29 }
 0x3d3   :  { %2218 = vmatpush3.bf16.msra.mxu0 %v1414_v42  ;;  %2250 = vmatpush3.bf16.msra.mxu1 %v1454_v62 }
 0x3d4   :  { %2219 = vmatprep.subr.bf16.mxu0 %v1413_v29  ;;  %2251 = vmatprep.subr.bf16.mxu1 %v1453_v3  ;;  %v1740_v50 = vpop.permute.xlu1 %1739  ;;  %p2353_p8 = por %p2352_p7, %p2351_p6 }
 0x3d6   :  { %v3227_v24 = vpop.permute.xlu0 %1744  ;;  %p2354_p9 = pnand %p2353_p8, %p2347_p5 }
 0x3d7   :  { %2220 = vmatpush3.bf16.msra.mxu0 %v1413_v29  ;;  %2252 = vmatpush3.bf16.msra.mxu1 %v1453_v3 }
 0x3d8   :  { %2221 = vmatprep.subr.bf16.mxu0 %v1412_v47  ;;  %2253 = vmatprep.subr.bf16.mxu1 %v1452_v4 }
 0x3db   :  { %2222 = vmatpush3.bf16.msra.mxu0 %v1412_v47  ;;  %2254 = vmatpush3.bf16.msra.mxu1 %v1452_v4 }
 0x3de   :  { %2224 = vmatmul.mubr.bf16.vlgmr.msra.gmra.mxu0 %v2319_v45  ;;  %2256 = vmatmul.mubr.bf16.vlgmr.msra.gmra.mxu1 %v2319_v45 }
 0x3df   :  { %2227 = vmatprep.mubr.bf16.mxu0 %v2320_v52  ;;  %2259 = vmatprep.mubr.bf16.mxu1 %v2320_v52 }
 0x3e6   :  { %2228 = vmatmul.mubr.bf16.gmra.mxu0 %v2321_v36  ;;  %2260 = vmatmul.mubr.bf16.gmra.mxu1 %v2321_v36 }
 0x3e7   :  { %2231 = vmatprep.mubr.bf16.mxu0 %v2322_v9  ;;  %2263 = vmatprep.mubr.bf16.mxu1 %v2322_v9 }
 0x3ee   :  { %2232 = vmatmul.mubr.bf16.gmra.mxu0 %v2323_v26  ;;  %2264 = vmatmul.mubr.bf16.gmra.mxu1 %v2323_v26  ;;  %v3233_v26 = vpop.permute.xlu1 %1749 }
 0x3ef   :  { %2235 = vmatprep.mubr.bf16.mxu0 %v2324_v48  ;;  %2267 = vmatprep.mubr.bf16.mxu1 %v2324_v48 }
 0x3f6   :  { %2236 = vmatmul.mubr.bf16.gmra.mxu0 %v2325_v44  ;;  %2268 = vmatmul.mubr.bf16.gmra.mxu1 %v2325_v44 }
 0x49e   :  { %v2225_v8 = vpop.f32.mrf.mxu0  ;;  %v2257_v7 = vpop.f32.mrf.mxu1 }
 0x49f   :  { %v1503_v49 = vadd.f32 %v2225_v8, %v3490_v34  ;;  %v1616_v42 = vadd.f32 %v2257_v7, %v3492_v59 }
 0x4a0   :  { %v1494_v62 = vpop.f32.mrf.mxu0  ;;  %v1607_v10 = vpop.f32.mrf.mxu1 }
 0x4a1   :  { %v1784_v31 = vmul.f32 %v1715_v23, %v1503_v49  ;;  %v1832_v1 = vmul.f32 %v1715_v23, %v1616_v42  ;;  %v1495_v61 = vadd.f32 %v1494_v62, %v3501_v57  ;;  %v1608_v43 = vadd.f32 %v1607_v10, %v3503_v40 }
 0x4a2   :  { %v2226_v37 = vpop.f32.mrf.mxu0  ;;  %v2258_v63 = vpop.f32.mrf.mxu1 }
 0x4a3   :  { %1800 = vst [vmem:[#allocation6 + $0x20] sm:$0xff] %v1784_v31  ;;  %1848 = vst [vmem:[#allocation6 + $0x28] sm:$0xff] %v1832_v1  ;;  %v1782_v13 = vmul.f32 %v1705_v53, %v1495_v61  ;;  %v1830_v28 = vmul.f32 %v1705_v53, %v1608_v43  ;;  %v1506_v29 = vadd.f32 %v2226_v37, %v3485_v56  ;;  %v1760_v31 = vpop.permute.xlu1 %1759 }
 0x4a4   :  { %v1619_v34 = vadd.f32 %v2258_v63, %v3487_v41  ;;  %v1497_v59 = vpop.f32.mrf.mxu0  ;;  %v1610_v3 = vpop.f32.mrf.mxu1 }
 0x4a5   :  { %1798 = vst [vmem:[#allocation6] sm:$0xff] %v1782_v13  ;;  %1846 = vst [vmem:[#allocation6 + $0x8] sm:$0xff] %v1830_v28  ;;  %v1785_v57 = vmul.f32 %v1720_v6, %v1506_v29  ;;  %v1498_v40 = vadd.f32 %v1497_v59, %v3496_v27  ;;  %v1611_v17 = vadd.f32 %v1610_v3, %v3498_v0 }
 0x4a6   :  { %v1833_v55 = vmul.f32 %v1720_v6, %v1619_v34  ;;  %v2229_v47 = vpop.f32.mrf.mxu0  ;;  %v2261_v4 = vpop.f32.mrf.mxu1 }
 0x4a7   :  { %1801 = vst [vmem:[#allocation6 + $0x30] sm:$0xff] %v1785_v57  ;;  %v1783_v45 = vmul.f32 %v1710_v60, %v1498_v40  ;;  %v1831_v56 = vmul.f32 %v1710_v60, %v1611_v17  ;;  %v1519_v41 = vadd.f32 %v2229_v47, %v2860_v5  ;;  %v1632_v52 = vadd.f32 %v2261_v4, %v2863_v30  ;;  %v1755_v6 = vpop.permute.xlu0 %1754  ;;  %v1770_v3 = vpop.permute.xlu1 %1769 }
 0x4a8   :  { %1849 = vst [vmem:[#allocation6 + $0x38] sm:$0xff] %v1833_v55  ;;  %v1510_v36 = vpop.f32.mrf.mxu0  ;;  %v1623_v9 = vpop.f32.mrf.mxu1 }
 0x4a9   :  { %1799 = vst [vmem:[#allocation6 + $0x10] sm:$0xff] %v1783_v45  ;;  %1847 = vst [vmem:[#allocation6 + $0x18] sm:$0xff] %v1831_v56  ;;  %v1788_v48 = vmul.f32 %v1735_v25, %v1519_v41  ;;  %v1836_v27 = vmul.f32 %v1735_v25, %v1632_v52  ;;  %v1511_v0 = vadd.f32 %v1510_v36, %v2884_v54  ;;  %v3508_v45 = vld [vmem:[#allocation40_spill] sm:$0xff] }
 0x4aa   :  { %v1624_v44 = vadd.f32 %v1623_v9, %v2887_v16  ;;  %v2230_v53 = vpop.f32.mrf.mxu0  ;;  %v2262_v23 = vpop.f32.mrf.mxu1  ;;  %v3509_v9 = vld [vmem:[#allocation43_spill] sm:$0xff] }
 0x4ab   :  { %1804 = vst [vmem:[#allocation6 + $0x60] sm:$0xff] %v1788_v48  ;;  %1852 = vst [vmem:[#allocation6 + $0x68] sm:$0xff] %v1836_v27  ;;  %v1786_v5 = vmul.f32 %v1725_v11, %v1511_v0  ;;  %v1522_v30 = vadd.f32 %v2230_v53, %v2848_v51  ;;  %v1635_v8 = vadd.f32 %v2262_v23, %v2851_v12  ;;  %v1765_v37 = vpop.permute.xlu0 %1764 }
 0x4ac   :  { %v1834_v60 = vmul.f32 %v1725_v11, %v1624_v44  ;;  %v1513_v7 = vpop.f32.mrf.mxu0  ;;  %v1626_v49 = vpop.f32.mrf.mxu1 }
 0x4ad   :  { %1802 = vst [vmem:[#allocation6 + $0x40] sm:$0xff] %v1786_v5  ;;  %v1789_v25 = vmul.f32 %v1740_v50, %v1522_v30  ;;  %v1837_v42 = vmul.f32 %v1740_v50, %v1635_v8  ;;  %v1514_v54 = vadd.f32 %v1513_v7, %v2872_v38  ;;  %v1627_v16 = vadd.f32 %v1626_v49, %v2877_v35  ;;  %v1780_v44 = vpop.permute.xlu1 %1779 }
 0x4ae   :  { %1850 = vst [vmem:[#allocation6 + $0x48] sm:$0xff] %v1834_v60  ;;  %v2233_v62 = vpop.f32.mrf.mxu0  ;;  %v2265_v10 = vpop.f32.mrf.mxu1 }
 0x4af   :  { %1805 = vst [vmem:[#allocation6 + $0x70] sm:$0xff] %v1789_v25  ;;  %1853 = vst [vmem:[#allocation6 + $0x78] sm:$0xff] %v1837_v42  ;;  %v1787_v11 = vmul.f32 %v3219_v58, %v1514_v54  ;;  %v1835_v51 = vmul.f32 %v3219_v58, %v1627_v16  ;;  %v1535_v12 = vadd.f32 %v2233_v62, %v2808_v32  ;;  %v1775_v47 = vpop.permute.xlu0 %1774 }
 0x4b0   :  { %v1648_v1 = vadd.f32 %v2265_v10, %v2811_v33  ;;  %v1526_v61 = vpop.f32.mrf.mxu0  ;;  %v1639_v43 = vpop.f32.mrf.mxu1 }
 0x4b1   :  { %1803 = vst [vmem:[#allocation6 + $0x50] sm:$0xff] %v1787_v11  ;;  %1851 = vst [vmem:[#allocation6 + $0x58] sm:$0xff] %v1835_v51  ;;  %v1792_v38 = vmul.f32 %v1755_v6, %v1535_v12  ;;  %v1527_v63 = vadd.f32 %v1526_v61, %v2838_v46  ;;  %v1640_v50 = vadd.f32 %v1639_v43, %v2844_v2 }
 0x4b2   :  { %v1840_v35 = vmul.f32 %v1755_v6, %v1648_v1  ;;  %v2234_v13 = vpop.f32.mrf.mxu0  ;;  %v2266_v28 = vpop.f32.mrf.mxu1  ;;  %v3510_v6 = vld [vmem:[#allocation41_spill] sm:$0xff] }
 0x4b3   :  { %1808 = vst [vmem:[#allocation6 + $0xa0] sm:$0xff] %v1792_v38  ;;  %v1790_v58 = vmul.f32 %v3227_v24, %v1527_v63  ;;  %v1838_v32 = vmul.f32 %v3227_v24, %v1640_v50  ;;  %v1538_v33 = vadd.f32 %v2234_v13, %v2802_v19  ;;  %v1651_v29 = vadd.f32 %v2266_v28, %v3483_v20  ;;  %v3507_v24 = vld [vmem:[#allocation39_spill] sm:$0xff] }
 0x4b4   :  { %1856 = vst [vmem:[#allocation6 + $0xa8] sm:$0xff] %v1840_v35  ;;  %v1529_v34 = vpop.f32.mrf.mxu0  ;;  %v1642_v59 = vpop.f32.mrf.mxu1 }
 0x4b5   :  { %1806 = vst [vmem:[#allocation6 + $0x80] sm:$0xff] %v1790_v58  ;;  %1854 = vst [vmem:[#allocation6 + $0x88] sm:$0xff] %v1838_v32  ;;  %v1793_v46 = vmul.f32 %v1760_v31, %v1538_v33  ;;  %v1841_v57 = vmul.f32 %v1760_v31, %v1651_v29  ;;  %v1530_v2 = vadd.f32 %v1529_v34, %v2816_v22 }
 0x4b6   :  { %v1643_v55 = vadd.f32 %v1642_v59, %v2819_v39  ;;  %v2237_v40 = vpop.f32.mrf.mxu0  ;;  %v2269_v17 = vpop.f32.mrf.mxu1 }
 0x4b7   :  { %1809 = vst [vmem:[#allocation6 + $0xb0] sm:$0xff] %v1793_v46  ;;  %1857 = vst [vmem:[#allocation6 + $0xb8] sm:$0xff] %v1841_v57  ;;  %v1791_v19 = vmul.f32 %v3233_v26, %v1530_v2  ;;  %v1551_v4 = vadd.f32 %v2237_v40, %v3507_v24  ;;  %v1664_v56 = vadd.f32 %v2269_v17, %v3508_v45 }
 0x4b8   :  { %v1839_v20 = vmul.f32 %v3233_v26, %v1643_v55  ;;  %v1542_v41 = vpop.f32.mrf.mxu0  ;;  %v1655_v52 = vpop.f32.mrf.mxu1 }
 0x4b9   :  { %1807 = vst [vmem:[#allocation6 + $0x90] sm:$0xff] %v1791_v19  ;;  %v1796_v22 = vmul.f32 %v1775_v47, %v1551_v4  ;;  %v1844_v36 = vmul.f32 %v1775_v47, %v1664_v56  ;;  %v1543_v39 = vadd.f32 %v1542_v41, %v3439_v21  ;;  %v1656_v48 = vadd.f32 %v1655_v52, %v3509_v9 }
 0x4ba   :  { %1855 = vst [vmem:[#allocation6 + $0x98] sm:$0xff] %v1839_v20  ;;  %v2238_v27 = vpop.f32.mrf.mxu0  ;;  %v2270_v0 = vpop.f32.mrf.mxu1 }
 0x4bb   :  { %1812 = vst [vmem:[#allocation6 + $0xe0] sm:$0xff] %v1796_v22  ;;  %1860 = vst [vmem:[#allocation6 + $0xe8] sm:$0xff] %v1844_v36  ;;  %v1794_v26 = vmul.f32 %v1765_v37, %v1543_v39  ;;  %v1842_v53 = vmul.f32 %v1765_v37, %v1656_v48  ;;  %v1554_v23 = vadd.f32 %v2238_v27, %v2782_v15 }
 0x4bc   :  { %v1667_v5 = vadd.f32 %v2270_v0, %v3510_v6  ;;  %v1545_v60 = vpop.f32.mrf.mxu0  ;;  %v1658_v30 = vpop.f32.mrf.mxu1 }
 0x4bd   :  { %1810 = vst [vmem:[#allocation6 + $0xc0] sm:$0xff] %v1794_v26  ;;  %1858 = vst [vmem:[#allocation6 + $0xc8] sm:$0xff] %v1842_v53  ;;  %v1797_v21 = vmul.f32 %v1780_v44, %v1554_v23  ;;  %v1546_v7 = vadd.f32 %v1545_v60, %v2788_v14  ;;  %v1659_v49 = vadd.f32 %v1658_v30, %v2799_v18 }
 0x4be   :  { %v1845_v8 = vmul.f32 %v1780_v44, %v1667_v5 }
 0x4bf   :  { %1813 = vst [vmem:[#allocation6 + $0xf0] sm:$0xff] %v1797_v21  ;;  %v1795_v25 = vmul.f32 %v1770_v3, %v1546_v7  ;;  %v1843_v42 = vmul.f32 %v1770_v3, %v1659_v49 }
 0x4c0   :  { %1861 = vst [vmem:[#allocation6 + $0xf8] sm:$0xff] %v1845_v8 }
 0x4c1   :  { %1811 = vst [vmem:[#allocation6 + $0xd0] sm:$0xff] %v1795_v25  ;;  %1859 = vst [vmem:[#allocation6 + $0xd8] sm:$0xff] %v1843_v42 }
 0x4c2   :  { %2357 = shalt.err (!%p2354_p9)
}
 0x4c3   :  { %1873 = dma.vmem_to_hbm [thread:$0]  %s1868_s28, 4096, %s3272_s3, [#allocation5], %s2371_s15, %s2371_s15, %s2372_s16  }
 0x4c4   :  { %2368 = dma.done.wait [#allocation5], 4096  }
 0x4c5   :  { %2369 = vsyncadd [#allocation5], 4294963200 }
 0x4c6   :  { %1877 = vsyncpa [#allocation4], 1 }
 0x4c7   :  { %1878 = vsyncpa [#allocation5], 1 }

// kernel: tpu_custom_call.1
= control target key start
LH: loop header
LB: loop body
LE: loop exit
PB: predicated region body
PF: predicated region fallthrough
CT: control target
= control target key end

     0   :  { %8 = vsyncpa [#allocation4], 0  ;;  %s3269_s0 = inlined_call_operand.vmem [shape: bf16[128,128], index: 0, kind: input, shape index: {}]   ;;  %s3270_s1 = inlined_call_operand.vmem [shape: f32[128,1], index: 1, kind: input, shape index: {}]   ;;  %s3271_s2 = inlined_call_operand.hbm [shape: f32[128,256], index: 2, kind: input, shape index: {}]   ;;  %s3272_s3 = inlined_call_operand.hbm [shape: f32[128,256], index: 3, kind: output, shape index: {}]  }
   0x1   :  { %9 = vsyncpa [#allocation5], 0  ;;  %s2370_s12 = smov [#allocation3]  }
   0x2   :  { %s19_s13 = sshll.u32 %s2370_s12, 4  ;;  %s20_s13 = int_to_ptr.vmem [resolvable:$true] %s19_s13 }
   0x3   :  { %s2334_s14 = scalar_lea.vmem %s20_s13, 4096  ;;  %p2339_p1 = scmp.lt.s32.totalorder %s20_s13, %s20_s13 }
   0x4   :  { %p2335_p0 = scmp.ne.s32.totalorder %s20_s13, %s2334_s14  ;;  %p2340_p2 = scmp.lt.s32.totalorder %s2334_s14, %s2334_s14 }
   0x6   :  { %p2341_p3 = por %p2340_p2, %p2339_p1 }
   0x8   :  { %p2342_p4 = pnand %p2341_p3, %p2335_p0 }
   0xa   :  { %2345 = shalt.err (!%p2342_p4)
}
   0xb   :  { %s2371_s15 = smov 256   ;;  %s2372_s16 = smov 16  }
   0xc   :  { %25 = dma.hbm_to_vmem [thread:$0]  %s3271_s2, 4096, %s20_s13, [#allocation4], %s2371_s15, %s2371_s15, %s2372_s16  }
   0xd   :  { %2366 = dma.done.wait [#allocation4], 4096  }
   0xe   :  { %2367 = vsyncadd [#allocation4], 4294963200  ;;  %v2373_v0 = vmov 0   ;;  %v2404_v1 = vld [vmem:[%s3270_s1 + $0x70] sm:$0xff]  ;;  %v2409_v2 = vld [vmem:[%s3270_s1 + $0x60] sm:$0xff] }
   0xf   :  { %2277 = vset.pattern.permute.xlu0 %v2373_v0  ;;  %2276 = vset.pattern.permute.xlu1 %v2373_v0  ;;  %v2414_v3 = vld [vmem:[%s3270_s1 + $0x78] sm:$0xff]  ;;  %v108_v4 = vmul.f32 0.9, %v2404_v1  ;;  %2286 = vrcp.f32 %v2404_v1  ;;  %v106_v5 = vmul.f32 0.9, %v2409_v2  ;;  %v2423_v7 = vld [vmem:[%s3270_s1 + $0x50] sm:$0xff] }
  0x10   :  { %v109_v6 = vmul.f32 0.9, %v2414_v3  ;;  %v2428_v8 = vld [vmem:[%s3270_s1 + $0x68] sm:$0xff]  ;;  %2288 = vrcp.f32 %v2414_v3  ;;  %v104_v11 = vmul.f32 0.9, %v2423_v7  ;;  %v2441_v15 = vld [vmem:[%s3270_s1 + $0x58] sm:$0xff] }
  0x11   :  { %v124_v9 = vmul.f32 %v108_v4, %v2404_v1  ;;  %v122_v10 = vmul.f32 %v106_v5, %v2409_v2  ;;  %v107_v13 = vmul.f32 0.9, %v2428_v8  ;;  %2290 = vrcp.f32 %v2428_v8  ;;  %v2450_v18 = vld [vmem:[%s3270_s1 + $0x48] sm:$0xff]  ;;  %v2456_v19 = vld [vmem:[%s3270_s1 + $0x40] sm:$0xff]  ;;  %v2464_v24 = vld [vmem:[%s3270_s1 + $0x38] sm:$0xff] }
  0x12   :  { %v125_v12 = vmul.f32 %v109_v6, %v2414_v3  ;;  %v120_v14 = vmul.f32 %v104_v11, %v2423_v7  ;;  %2292 = vrcp.f32 %v2409_v2  ;;  %v105_v17 = vmul.f32 0.9, %v2441_v15  ;;  %v2469_v26 = vld [vmem:[%s3270_s1 + $0x30] sm:$0xff]  ;;  %v2477_v31 = vld [vmem:[%s3270_s1 + $0x28] sm:$0xff]  ;;  %v2483_v34 = vld [vmem:[%s3270_s1 + $0x20] sm:$0xff] }
  0x13   :  { %422 = vperm.xlu1 %2276, %v124_v9   ;;  %412 = vperm.xlu0 %2277, %v122_v10   ;;  %v123_v16 = vmul.f32 %v107_v13, %v2428_v8  ;;  %2294 = vrcp.f32 %v2441_v15  ;;  %v103_v29 = vmul.f32 0.9, %v2450_v18  ;;  %v102_v32 = vmul.f32 0.9, %v2456_v19  ;;  %v33_v39 = vld [vmem:[%s3270_s1 + $0x18] sm:$0xff]  ;;  %v32_v42 = vld [vmem:[%s3270_s1 + $0x10] sm:$0xff] }
  0x14   :  { %2296 = vrcp.f32 %v2423_v7  ;;  %v121_v20 = vmul.f32 %v105_v17, %v2441_v15  ;;  %v101_v37 = vmul.f32 0.9, %v2464_v24  ;;  %v100_v40 = vmul.f32 0.9, %v2469_v26  ;;  %v31_v47 = vld [vmem:[%s3270_s1 + $0x8] sm:$0xff]  ;;  %v30_v50 = vld [vmem:[%s3270_s1] sm:$0xff] }
  0x15   :  { %2298 = vrcp.f32 %v2450_v18  ;;  %v119_v35 = vmul.f32 %v103_v29, %v2450_v18  ;;  %v118_v36 = vmul.f32 %v102_v32, %v2456_v19  ;;  %v99_v45 = vmul.f32 0.9, %v2477_v31  ;;  %v2512_v4 = vld [vmem:[%s3269_s0] sm:$0xff]   ;;  %v252_v13 = vld [vmem:[#allocation3 + $0xe8] sm:$0xff]  ;;  %v251_v17 = vld [vmem:[#allocation3 + $0xd8] sm:$0xff] }
  0x16   :  { %2300 = vrcp.f32 %v2456_v19  ;;  %v117_v43 = vmul.f32 %v101_v37, %v2464_v24  ;;  %v116_v44 = vmul.f32 %v100_v40, %v2469_v26  ;;  %v98_v48 = vmul.f32 0.9, %v2483_v34  ;;  %3356 = vst [vmem:[#allocation9_spill] sm:$0xff] %v2512_v4  ;;  %2031 = vmatprep.mubr.bf16.mxu0 %v2512_v4  ;;  %2063 = vmatprep.mubr.bf16.mxu1 %v2512_v4  ;;  %v136_v40 = vld [vmem:[#allocation3 + $0xa0] sm:$0xff] }
  0x17   :  { %427 = vperm.xlu1 %2276, %v125_v12   ;;  %402 = vperm.xlu0 %2277, %v120_v14   ;;  %2302 = vrcp.f32 %v2464_v24  ;;  %v115_v51 = vmul.f32 %v99_v45, %v2477_v31  ;;  %v97_v53 = vmul.f32 0.9, %v33_v39  ;;  %v96_v55 = vmul.f32 0.9, %v32_v42  ;;  %v253_v14 = vld [vmem:[#allocation3 + $0xf8] sm:$0xff] }
  0x18   :  { %2304 = vrcp.f32 %v2469_v26  ;;  %v114_v52 = vmul.f32 %v98_v48, %v2483_v34  ;;  %v95_v59 = vmul.f32 0.9, %v31_v47  ;;  %v94_v61 = vmul.f32 0.9, %v30_v50 }
  0x19   :  { %2306 = vrcp.f32 %v2477_v31  ;;  %v113_v57 = vmul.f32 %v97_v53, %v33_v39  ;;  %v112_v58 = vmul.f32 %v96_v55, %v32_v42 }
  0x1a   :  { %2308 = vrcp.f32 %v2483_v34  ;;  %v111_v63 = vmul.f32 %v95_v59, %v31_v47  ;;  %v110_v0 = vmul.f32 %v94_v61, %v30_v50 }
  0x1b   :  { %417 = vperm.xlu1 %2276, %v123_v16   ;;  %2310 = vrcp.f32 %v33_v39  ;;  %v139_v16 = vld [vmem:[#allocation3 + $0xd0] sm:$0xff] }
  0x1c   :  { %v2287_v21 = vpop.eup %2286  ;;  %2312 = vrcp.f32 %v32_v42 }
  0x1d   :  { %214 = vperm.xlu0 %2277, %v2287_v21   ;;  %v2289_v22 = vpop.eup %2288  ;;  %2314 = vrcp.f32 %v31_v47 }
  0x1e   :  { %v2291_v23 = vpop.eup %2290  ;;  %2316 = vrcp.f32 %v30_v50 }
  0x1f   :  { %407 = vperm.xlu1 %2276, %v121_v20   ;;  %v2293_v25 = vpop.eup %2292 }
  0x20   :  { %v2295_v27 = vpop.eup %2294 }
  0x21   :  { %219 = vperm.xlu0 %2277, %v2289_v22   ;;  %v2297_v28 = vpop.eup %2296 }
  0x22   :  { %v2299_v30 = vpop.eup %2298 }
  0x23   :  { %209 = vperm.xlu1 %2276, %v2291_v23   ;;  %v2301_v33 = vpop.eup %2300  ;;  %v138_v23 = vld [vmem:[#allocation3 + $0xc0] sm:$0xff] }
  0x24   :  { %v2303_v38 = vpop.eup %2302 }
  0x25   :  { %204 = vperm.xlu0 %2277, %v2293_v25   ;;  %v2305_v41 = vpop.eup %2304 }
  0x26   :  { %v2307_v46 = vpop.eup %2306 }
  0x27   :  { %199 = vperm.xlu1 %2276, %v2295_v27   ;;  %v2309_v49 = vpop.eup %2308 }
  0x28   :  { %v2311_v54 = vpop.eup %2310 }
  0x29   :  { %194 = vperm.xlu0 %2277, %v2297_v28   ;;  %v2313_v56 = vpop.eup %2312 }
  0x2a   :  { %v2315_v60 = vpop.eup %2314 }
  0x2b   :  { %189 = vperm.xlu1 %2276, %v2299_v30   ;;  %v2317_v62 = vpop.eup %2316 }
  0x2d   :  { %184 = vperm.xlu0 %2277, %v2301_v33  }
  0x2f   :  { %397 = vperm.xlu1 %2276, %v119_v35  }
  0x31   :  { %392 = vperm.xlu0 %2277, %v118_v36  }
  0x33   :  { %179 = vperm.xlu1 %2276, %v2303_v38  }
  0x35   :  { %174 = vperm.xlu0 %2277, %v2305_v41   ;;  %v248_v41 = vld [vmem:[#allocation3 + $0xa8] sm:$0xff] }
  0x37   :  { %387 = vperm.xlu1 %2276, %v117_v43  }
  0x39   :  { %382 = vperm.xlu0 %2277, %v116_v44  }
  0x3b   :  { %169 = vperm.xlu1 %2276, %v2307_v46  }
  0x3d   :  { %164 = vperm.xlu0 %2277, %v2309_v49  }
  0x3f   :  { %377 = vperm.xlu1 %2276, %v115_v51  }
  0x41   :  { %372 = vperm.xlu0 %2277, %v114_v52   ;;  %v135_v52 = vld [vmem:[#allocation3 + $0x90] sm:$0xff] }
  0x43   :  { %159 = vperm.xlu1 %2276, %v2311_v54  }
  0x45   :  { %154 = vperm.xlu0 %2277, %v2313_v56   ;;  %v247_v56 = vld [vmem:[#allocation3 + $0x98] sm:$0xff] }
  0x47   :  { %367 = vperm.xlu1 %2276, %v113_v57   ;;  %v134_v57 = vld [vmem:[#allocation3 + $0x80] sm:$0xff] }
  0x49   :  { %362 = vperm.xlu0 %2277, %v112_v58   ;;  %v246_v58 = vld [vmem:[#allocation3 + $0x88] sm:$0xff] }
  0x4b   :  { %149 = vperm.xlu1 %2276, %v2315_v60  }
  0x4d   :  { %144 = vperm.xlu0 %2277, %v2317_v62  }
  0x4f   :  { %357 = vperm.xlu1 %2276, %v111_v63  }
  0x51   :  { %352 = vperm.xlu0 %2277, %v110_v0  }
  0x53   :  { %1709 = vperm.xlu1 %2276, %v31_v47  }
  0x55   :  { %1704 = vperm.xlu0 %2277, %v30_v50  }
  0x57   :  { %1719 = vperm.xlu1 %2276, %v33_v39  }
  0x59   :  { %1714 = vperm.xlu0 %2277, %v32_v42  }
  0x5b   :  { %1729 = vperm.xlu1 %2276, %v2477_v31   ;;  %v249_v31 = vld [vmem:[#allocation3 + $0xb8] sm:$0xff] }
  0x5d   :  { %1724 = vperm.xlu0 %2277, %v2483_v34  }
  0x5f   :  { %1739 = vperm.xlu1 %2276, %v2464_v24   ;;  %v250_v24 = vld [vmem:[#allocation3 + $0xc8] sm:$0xff] }
  0x61   :  { %1734 = vperm.xlu0 %2277, %v2469_v26   ;;  %v137_v26 = vld [vmem:[#allocation3 + $0xb0] sm:$0xff] }
  0x63   :  { %1749 = vperm.xlu1 %2276, %v2450_v18  }
  0x65   :  { %1744 = vperm.xlu0 %2277, %v2456_v19  }
  0x67   :  { %1759 = vperm.xlu1 %2276, %v2441_v15  }
  0x69   :  { %1754 = vperm.xlu0 %2277, %v2423_v7   ;;  %v140_v7 = vld [vmem:[#allocation3 + $0xe0] sm:$0xff] }
  0x6b   :  { %1769 = vperm.xlu1 %2276, %v2428_v8  }
  0x6d   :  { %1764 = vperm.xlu0 %2277, %v2409_v2   ;;  %v141_v2 = vld [vmem:[#allocation3 + $0xf0] sm:$0xff] }
  0x6f   :  { %1779 = vperm.xlu1 %2276, %v2414_v3  }
  0x71   :  { %1774 = vperm.xlu0 %2277, %v2404_v1  }
  0x8e   :  { %v2528_v5 = vpop.permute.xlu1 %422  ;;  %v2530_v6 = vpop.permute.xlu0 %412 }
  0x8f   :  { %3357 = vst [vmem:[#allocation10_spill] sm:$0xff] %v2528_v5 }
  0x92   :  { %v2532_v9 = vpop.permute.xlu1 %427  ;;  %v2534_v10 = vpop.permute.xlu0 %402 }
  0x96   :  { %v2536_v11 = vpop.permute.xlu1 %417 }
  0x98   :  { %v215_v12 = vpop.permute.xlu0 %214 }
  0x99   :  { %v2540_v3 = vmul.f32 %v215_v12, %v140_v7  ;;  %v2542_v1 = vmul.f32 %v252_v13, %v215_v12 }
  0x9a   :  { %v2538_v8 = vpop.permute.xlu1 %407 }
  0x9b   :  { %v444_v27 = vmul.f32 %v2528_v5, %v2540_v3  ;;  %v484_v29 = vmul.f32 %v2528_v5, %v2542_v1 }
  0x9c   :  { %v220_v15 = vpop.permute.xlu0 %219 }
  0x9d   :  { %v2544_v18 = vmul.f32 %v220_v15, %v141_v2  ;;  %v2546_v19 = vmul.f32 %v253_v14, %v220_v15 }
  0x9e   :  { %v210_v20 = vpop.permute.xlu1 %209 }
  0x9f   :  { %v2548_v21 = vmul.f32 %v210_v20, %v139_v16  ;;  %v2550_v22 = vmul.f32 %v251_v17, %v210_v20  ;;  %v445_v28 = vmul.f32 %v2532_v9, %v2544_v18  ;;  %v485_v30 = vmul.f32 %v2532_v9, %v2546_v19  ;;  %v133_v20 = vld [vmem:[#allocation3 + $0x70] sm:$0xff] }
  0xa0   :  { %v205_v25 = vpop.permute.xlu0 %204 }
  0xa1   :  { %v2560_v32 = vmul.f32 %v205_v25, %v138_v23  ;;  %v2562_v33 = vmul.f32 %v250_v24, %v205_v25  ;;  %v453_v35 = vpack.c.bf16 %v445_v28, %v444_v27  ;;  %v493_v36 = vpack.c.bf16 %v485_v30, %v484_v29  ;;  %v245_v25 = vld [vmem:[#allocation3 + $0x78] sm:$0xff]  ;;  %v244_v27 = vld [vmem:[#allocation3 + $0x68] sm:$0xff] }
  0xa2   :  { %v200_v34 = vpop.permute.xlu1 %199  ;;  %v443_v37 = vmul.f32 %v2536_v11, %v2548_v21  ;;  %v483_v38 = vmul.f32 %v2536_v11, %v2550_v22 }
  0xa3   :  { %v2568_v39 = vmul.f32 %v200_v34, %v137_v26  ;;  %v442_v42 = vmul.f32 %v2530_v6, %v2560_v32  ;;  %v482_v43 = vmul.f32 %v2530_v6, %v2562_v33  ;;  %v2574_v44 = vmul.f32 %v249_v31, %v200_v34  ;;  %2015 = vmatprep.subr.bf16.mxu0 %v453_v35  ;;  %v132_v26 = vld [vmem:[#allocation3 + $0x60] sm:$0xff] }
  0xa4   :  { %2047 = vmatprep.subr.bf16.mxu1 %v493_v36  ;;  %v195_v45 = vpop.permute.xlu0 %194  ;;  %2016 = vmatpush3.bf16.msra.mxu0 %v453_v35 }
  0xa5   :  { %2048 = vmatpush3.bf16.msra.mxu1 %v493_v36  ;;  %v2576_v46 = vmul.f32 %v195_v45, %v136_v40  ;;  %v2578_v47 = vmul.f32 %v248_v41, %v195_v45  ;;  %v452_v49 = vpack.c.bf16 %v443_v37, %v442_v42  ;;  %v492_v50 = vpack.c.bf16 %v483_v38, %v482_v43  ;;  %v131_v43 = vld [vmem:[#allocation3 + $0x50] sm:$0xff] }
  0xa6   :  { %v190_v48 = vpop.permute.xlu1 %189  ;;  %v441_v51 = vmul.f32 %v2538_v8, %v2568_v39  ;;  %v481_v53 = vmul.f32 %v2538_v8, %v2574_v44 }
  0xa7   :  { %v440_v54 = vmul.f32 %v2534_v10, %v2576_v46  ;;  %v480_v55 = vmul.f32 %v2534_v10, %v2578_v47  ;;  %2017 = vmatprep.subr.bf16.mxu0 %v452_v49  ;;  %2049 = vmatprep.subr.bf16.mxu1 %v492_v50  ;;  %v2588_v60 = vmul.f32 %v190_v48, %v135_v52 }
  0xa8   :  { %v185_v59 = vpop.permute.xlu0 %184  ;;  %2018 = vmatpush3.bf16.msra.mxu0 %v452_v49  ;;  %v2592_v0 = vmul.f32 %v247_v56, %v190_v48  ;;  %v243_v49 = vld [vmem:[#allocation3 + $0x58] sm:$0xff] }
  0xa9   :  { %2050 = vmatpush3.bf16.msra.mxu1 %v492_v50  ;;  %v451_v62 = vpack.c.bf16 %v441_v51, %v440_v54  ;;  %v491_v63 = vpack.c.bf16 %v481_v53, %v480_v55  ;;  %v2594_v12 = vmul.f32 %v185_v59, %v134_v57  ;;  %v2596_v7 = vmul.f32 %v246_v58, %v185_v59  ;;  %v130_v50 = vld [vmem:[#allocation3 + $0x40] sm:$0xff]  ;;  %v242_v51 = vld [vmem:[#allocation3 + $0x48] sm:$0xff] }
  0xaa   :  { %v2590_v61 = vpop.permute.xlu1 %397 }
  0xab   :  { %2019 = vmatprep.subr.bf16.mxu0 %v451_v62  ;;  %2051 = vmatprep.subr.bf16.mxu1 %v491_v63  ;;  %v439_v2 = vmul.f32 %v2590_v61, %v2588_v60  ;;  %v479_v16 = vmul.f32 %v2590_v61, %v2592_v0 }
  0xac   :  { %v2598_v13 = vpop.permute.xlu0 %392  ;;  %2020 = vmatpush3.bf16.msra.mxu0 %v451_v62 }
  0xad   :  { %2052 = vmatpush3.bf16.msra.mxu1 %v491_v63  ;;  %v438_v14 = vmul.f32 %v2598_v13, %v2594_v12  ;;  %v478_v15 = vmul.f32 %v2598_v13, %v2596_v7 }
  0xae   :  { %v180_v17 = vpop.permute.xlu1 %179 }
  0xaf   :  { %v450_v23 = vpack.c.bf16 %v439_v2, %v438_v14  ;;  %v490_v24 = vpack.c.bf16 %v479_v16, %v478_v15  ;;  %v2610_v30 = vmul.f32 %v180_v17, %v133_v20  ;;  %v2612_v31 = vmul.f32 %v245_v25, %v180_v17  ;;  %v129_v15 = vld [vmem:[#allocation3 + $0x30] sm:$0xff]  ;;  %v241_v20 = vld [vmem:[#allocation3 + $0x38] sm:$0xff] }
  0xb0   :  { %v175_v28 = vpop.permute.xlu0 %174 }
  0xb1   :  { %2021 = vmatprep.subr.bf16.mxu0 %v450_v23  ;;  %2053 = vmatprep.subr.bf16.mxu1 %v490_v24  ;;  %v2614_v34 = vmul.f32 %v175_v28, %v132_v26  ;;  %v2616_v35 = vmul.f32 %v244_v27, %v175_v28 }
  0xb2   :  { %2022 = vmatpush3.bf16.msra.mxu0 %v450_v23  ;;  %2054 = vmatpush3.bf16.msra.mxu1 %v490_v24  ;;  %v2608_v29 = vpop.permute.xlu1 %387  ;;  %v128_v23 = vld [vmem:[#allocation3 + $0x20] sm:$0xff]  ;;  %v240_v24 = vld [vmem:[#allocation3 + $0x28] sm:$0xff] }
  0xb3   :  { %v437_v38 = vmul.f32 %v2608_v29, %v2610_v30  ;;  %v477_v41 = vmul.f32 %v2608_v29, %v2612_v31 }
  0xb4   :  { %v2618_v36 = vpop.permute.xlu0 %382 }
  0xb5   :  { %v436_v37 = vmul.f32 %v2618_v36, %v2614_v34  ;;  %v476_v40 = vmul.f32 %v2618_v36, %v2616_v35 }
  0xb6   :  { %v170_v42 = vpop.permute.xlu1 %169 }
  0xb7   :  { %v449_v45 = vpack.c.bf16 %v437_v38, %v436_v37  ;;  %v489_v48 = vpack.c.bf16 %v477_v41, %v476_v40  ;;  %v2630_v54 = vmul.f32 %v170_v42, %v131_v43  ;;  %v2632_v55 = vmul.f32 %v243_v49, %v170_v42  ;;  %v127_v49 = vld [vmem:[#allocation3 + $0x10] sm:$0xff] }
  0xb8   :  { %v165_v52 = vpop.permute.xlu0 %164 }
  0xb9   :  { %2023 = vmatprep.subr.bf16.mxu0 %v449_v45  ;;  %2055 = vmatprep.subr.bf16.mxu1 %v489_v48  ;;  %v2634_v56 = vmul.f32 %v165_v52, %v130_v50  ;;  %v2636_v57 = vmul.f32 %v242_v51, %v165_v52  ;;  %v239_v52 = vld [vmem:[#allocation3 + $0x18] sm:$0xff] }
  0xba   :  { %2024 = vmatpush3.bf16.msra.mxu0 %v449_v45  ;;  %2056 = vmatpush3.bf16.msra.mxu1 %v489_v48  ;;  %v2628_v53 = vpop.permute.xlu1 %377 }
  0xbb   :  { %3358 = vst [vmem:[#allocation11_spill] sm:$0xff] %v2628_v53  ;;  %v435_v62 = vmul.f32 %v2628_v53, %v2630_v54  ;;  %v475_v2 = vmul.f32 %v2628_v53, %v2632_v55  ;;  %v2791_v53 = vmul.f32 0.1, %v2560_v32  ;;  %v2808_v32 = vmul.f32 0.1, %v2576_v46 }
  0xbc   :  { %v2638_v58 = vpop.permute.xlu0 %372 }
  0xbd   :  { %3359 = vst [vmem:[#allocation12_spill] sm:$0xff] %v2638_v58  ;;  %v434_v59 = vmul.f32 %v2638_v58, %v2634_v56  ;;  %v474_v63 = vmul.f32 %v2638_v58, %v2636_v57  ;;  %3389 = vst [vmem:[#allocation42_spill] sm:$0xff] %v2791_v53 }
  0xbe   :  { %v160_v14 = vpop.permute.xlu1 %159 }
  0xbf   :  { %v448_v16 = vpack.c.bf16 %v435_v62, %v434_v59  ;;  %v488_v17 = vpack.c.bf16 %v475_v2, %v474_v63  ;;  %v2650_v27 = vmul.f32 %v160_v14, %v129_v15  ;;  %v2652_v28 = vmul.f32 %v241_v20, %v160_v14  ;;  %v126_v59 = vld [vmem:[#allocation3] sm:$0xff]  ;;  %v238_v62 = vld [vmem:[#allocation3 + $0x8] sm:$0xff] }
  0xc0   :  { %v155_v25 = vpop.permute.xlu0 %154 }
  0xc1   :  { %2025 = vmatprep.subr.bf16.mxu0 %v448_v16  ;;  %2057 = vmatprep.subr.bf16.mxu1 %v488_v17  ;;  %v2654_v37 = vmul.f32 %v155_v25, %v128_v23  ;;  %v2656_v38 = vmul.f32 %v240_v24, %v155_v25 }
  0xc2   :  { %2026 = vmatpush3.bf16.msra.mxu0 %v448_v16  ;;  %2058 = vmatpush3.bf16.msra.mxu1 %v488_v17  ;;  %v2648_v26 = vpop.permute.xlu1 %367 }
  0xc3   :  { %3360 = vst [vmem:[#allocation13_spill] sm:$0xff] %v2648_v26  ;;  %3361 = vst [vmem:[#allocation14_spill] sm:$0xff] %v2654_v37  ;;  %v433_v42 = vmul.f32 %v2648_v26, %v2650_v27  ;;  %v473_v45 = vmul.f32 %v2648_v26, %v2652_v28 }
  0xc4   :  { %3362 = vst [vmem:[#allocation15_spill] sm:$0xff] %v2656_v38  ;;  %v2658_v40 = vpop.permute.xlu0 %362 }
  0xc5   :  { %3363 = vst [vmem:[#allocation16_spill] sm:$0xff] %v2658_v40  ;;  %v432_v41 = vmul.f32 %v2658_v40, %v2654_v37  ;;  %v472_v43 = vmul.f32 %v2658_v40, %v2656_v38 }
  0xc6   :  { %v150_v48 = vpop.permute.xlu1 %149 }
  0xc7   :  { %v447_v50 = vpack.c.bf16 %v433_v42, %v432_v41  ;;  %v487_v51 = vpack.c.bf16 %v473_v45, %v472_v43  ;;  %v2670_v14 = vmul.f32 %v150_v48, %v127_v49  ;;  %v2672_v15 = vmul.f32 %v239_v52, %v150_v48  ;;  %v2691_v45 = vld [vmem:[%s3269_s0 + $0x8] sm:$0xff]   ;;  %v2696_v48 = vld [vmem:[%s3269_s0 + $0x10] sm:$0xff]   ;;  %v2705_v49 = vld [vmem:[%s3269_s0 + $0x18] sm:$0xff]  }
  0xc8   :  { %v145_v63 = vpop.permute.xlu0 %144  ;;  %3370 = vst [vmem:[#allocation23_spill] sm:$0xff] %v2691_v45  ;;  %3371 = vst [vmem:[#allocation24_spill] sm:$0xff] %v2696_v48  ;;  %v2724_v52 = vld [vmem:[%s3269_s0 + $0x30] sm:$0xff]  }
  0xc9   :  { %2027 = vmatprep.subr.bf16.mxu0 %v447_v50  ;;  %2059 = vmatprep.subr.bf16.mxu1 %v487_v51  ;;  %3365 = vst [vmem:[#allocation18_spill] sm:$0xff] %v2670_v14  ;;  %3366 = vst [vmem:[#allocation19_spill] sm:$0xff] %v2672_v15  ;;  %v2674_v16 = vmul.f32 %v145_v63, %v126_v59  ;;  %v2676_v17 = vmul.f32 %v238_v62, %v145_v63  ;;  %v2733_v59 = vld [vmem:[%s3269_s0 + $0x38] sm:$0xff]  }
  0xca   :  { %2028 = vmatpush3.bf16.msra.mxu0 %v447_v50  ;;  %2060 = vmatpush3.bf16.msra.mxu1 %v487_v51  ;;  %v2668_v2 = vpop.permute.xlu1 %357  ;;  %3372 = vst [vmem:[#allocation25_spill] sm:$0xff] %v2705_v49  ;;  %v2710_v50 = vld [vmem:[%s3269_s0 + $0x20] sm:$0xff]   ;;  %v2719_v51 = vld [vmem:[%s3269_s0 + $0x28] sm:$0xff]   ;;  %3375 = vst [vmem:[#allocation28_spill] sm:$0xff] %v2724_v52 }
  0xcb   :  { %3364 = vst [vmem:[#allocation17_spill] sm:$0xff] %v2668_v2  ;;  %3367 = vst [vmem:[#allocation20_spill] sm:$0xff] %v2674_v16  ;;  %v431_v24 = vmul.f32 %v2668_v2, %v2670_v14  ;;  %v471_v41 = vmul.f32 %v2668_v2, %v2672_v15  ;;  %v2782_v15 = vmul.f32 0.1, %v2544_v18  ;;  %v2788_v14 = vmul.f32 0.1, %v2548_v21 }
  0xcc   :  { %3368 = vst [vmem:[#allocation21_spill] sm:$0xff] %v2676_v17  ;;  %v2678_v20 = vpop.permute.xlu0 %352  ;;  %3373 = vst [vmem:[#allocation26_spill] sm:$0xff] %v2710_v50  ;;  %v2799_v18 = vmul.f32 0.1, %v2550_v22  ;;  %v2805_v21 = vmul.f32 0.1, %v2574_v44 }
  0xcd   :  { %3369 = vst [vmem:[#allocation22_spill] sm:$0xff] %v2678_v20  ;;  %v430_v23 = vmul.f32 %v2678_v20, %v2674_v16  ;;  %v470_v25 = vmul.f32 %v2678_v20, %v2676_v17  ;;  %3374 = vst [vmem:[#allocation27_spill] sm:$0xff] %v2719_v51  ;;  %v2776_v17 = vmul.f32 0.1, %v2540_v3  ;;  %v2779_v16 = vmul.f32 0.1, %v2542_v1 }
  0xce   :  { %3376 = vst [vmem:[#allocation29_spill] sm:$0xff] %v2733_v59  ;;  %v2794_v3 = vmul.f32 0.1, %v2562_v33  ;;  %3391 = vst [vmem:[#allocation44_spill] sm:$0xff] %v2805_v21  ;;  %v2811_v33 = vmul.f32 0.1, %v2578_v47 }
  0xcf   :  { %v446_v42 = vpack.c.bf16 %v431_v24, %v430_v23  ;;  %v486_v43 = vpack.c.bf16 %v471_v41, %v470_v25  ;;  %3386 = vst [vmem:[#allocation39_spill] sm:$0xff] %v2776_v17  ;;  %3387 = vst [vmem:[#allocation40_spill] sm:$0xff] %v2779_v16  ;;  %v2816_v22 = vmul.f32 0.1, %v2588_v60 }
  0xd0   :  { %3390 = vst [vmem:[#allocation43_spill] sm:$0xff] %v2794_v3 }
  0xd1   :  { %2029 = vmatprep.subr.bf16.mxu0 %v446_v42  ;;  %2061 = vmatprep.subr.bf16.mxu1 %v486_v43 }
  0xd2   :  { %2030 = vmatpush3.bf16.msra.mxu0 %v446_v42  ;;  %2062 = vmatpush3.bf16.msra.mxu1 %v486_v43 }
  0xd5   :  { %2032 = vmatmul.mubr.bf16.vlgmr.msra.gmra.mxu0 %v2691_v45  ;;  %2064 = vmatmul.mubr.bf16.vlgmr.msra.gmra.mxu1 %v2691_v45 }
  0xd6   :  { %2035 = vmatprep.mubr.bf16.mxu0 %v2696_v48  ;;  %2067 = vmatprep.mubr.bf16.mxu1 %v2696_v48 }
  0xdd   :  { %2036 = vmatmul.mubr.bf16.gmra.mxu0 %v2705_v49  ;;  %2068 = vmatmul.mubr.bf16.gmra.mxu1 %v2705_v49 }
  0xde   :  { %2039 = vmatprep.mubr.bf16.mxu0 %v2710_v50  ;;  %2071 = vmatprep.mubr.bf16.mxu1 %v2710_v50 }
  0xe5   :  { %2040 = vmatmul.mubr.bf16.gmra.mxu0 %v2719_v51  ;;  %2072 = vmatmul.mubr.bf16.gmra.mxu1 %v2719_v51 }
  0xe6   :  { %2043 = vmatprep.mubr.bf16.mxu0 %v2724_v52  ;;  %2075 = vmatprep.mubr.bf16.mxu1 %v2724_v52 }
  0xed   :  { %2044 = vmatmul.mubr.bf16.gmra.mxu0 %v2733_v59  ;;  %2076 = vmatmul.mubr.bf16.gmra.mxu1 %v2733_v59 }
  0xee   :  { %2095 = vmatprep.mubr.bf16.mxu0 %v2512_v4  ;;  %2127 = vmatprep.mubr.bf16.mxu1 %v2512_v4 }
 0x195   :  { %v2739_v62 = vpop.f32.mrf.mxu0  ;;  %v2741_v63 = vpop.f32.mrf.mxu1 }
 0x196   :  { %3377 = vst [vmem:[#allocation30_spill] sm:$0xff] %v2739_v62  ;;  %3378 = vst [vmem:[#allocation31_spill] sm:$0xff] %v2741_v63  ;;  %v2785_v62 = vmul.f32 0.1, %v2546_v19  ;;  %v2802_v19 = vmul.f32 0.1, %v2568_v39 }
 0x197   :  { %v2743_v23 = vpop.f32.mrf.mxu0  ;;  %v2745_v24 = vpop.f32.mrf.mxu1  ;;  %v2819_v39 = vmul.f32 0.1, %v2592_v0 }
 0x198   :  { %3379 = vst [vmem:[#allocation32_spill] sm:$0xff] %v2743_v23  ;;  %3380 = vst [vmem:[#allocation33_spill] sm:$0xff] %v2745_v24 }
 0x199   :  { %v2747_v25 = vpop.f32.mrf.mxu0  ;;  %v2749_v41 = vpop.f32.mrf.mxu1  ;;  %3388 = vst [vmem:[#allocation41_spill] sm:$0xff] %v2785_v62 }
 0x19a   :  { %3381 = vst [vmem:[#allocation34_spill] sm:$0xff] %v2747_v25  ;;  %3382 = vst [vmem:[#allocation35_spill] sm:$0xff] %v2749_v41 }
 0x19b   :  { %v2751_v42 = vpop.f32.mrf.mxu0  ;;  %v2753_v43 = vpop.f32.mrf.mxu1 }
 0x19c   :  { %3383 = vst [vmem:[#allocation36_spill] sm:$0xff] %v2751_v42  ;;  %3384 = vst [vmem:[#allocation37_spill] sm:$0xff] %v2753_v43 }
 0x19d   :  { %v2755_v59 = vpop.f32.mrf.mxu0  ;;  %v2757_v52 = vpop.f32.mrf.mxu1 }
 0x19f   :  { %v2759_v4 = vpop.f32.mrf.mxu0  ;;  %v2761_v51 = vpop.f32.mrf.mxu1 }
 0x1a0   :  { %3385 = vst [vmem:[#allocation38_spill] sm:$0xff] %v2761_v51 }
 0x1a1   :  { %v2763_v50 = vpop.f32.mrf.mxu0  ;;  %v2765_v49 = vpop.f32.mrf.mxu1 }
 0x1a3   :  { %v2767_v48 = vpop.f32.mrf.mxu0  ;;  %v2769_v45 = vpop.f32.mrf.mxu1 }
 0x1a5   :  { %v2041_v20 = vpop.f32.mrf.mxu0  ;;  %v2073_v2 = vpop.f32.mrf.mxu1 }
 0x1a7   :  { %v2771_v24 = vpop.f32.mrf.mxu0  ;;  %v2773_v23 = vpop.f32.mrf.mxu1 }
 0x1a9   :  { %v2042_v40 = vpop.f32.mrf.mxu0  ;;  %v2074_v43 = vpop.f32.mrf.mxu1 }
 0x1aa   :  { %v620_v37 = vadd.f32 %v2042_v40, %v2802_v19  ;;  %v733_v47 = vadd.f32 %v2074_v43, %v2805_v21  ;;  %v730_v40 = vadd.f32 %v2073_v2, %v2811_v33  ;;  %v2844_v2 = vmul.f32 0.1, %v2596_v7 }
 0x1ab   :  { %v611_v42 = vpop.f32.mrf.mxu0  ;;  %v724_v26 = vpop.f32.mrf.mxu1 }
 0x1ad   :  { %v2045_v58 = vpop.f32.mrf.mxu0  ;;  %v2077_v63 = vpop.f32.mrf.mxu1 }
 0x1ae   :  { %v633_v1 = vadd.f32 %v2045_v58, %v2776_v17  ;;  %v746_v41 = vadd.f32 %v2077_v63, %v2779_v16 }
 0x1af   :  { %v624_v25 = vpop.f32.mrf.mxu0  ;;  %v737_v38 = vpop.f32.mrf.mxu1 }
 0x1b0   :  { %v625_v58 = vadd.f32 %v624_v25, %v2791_v53  ;;  %v738_v63 = vadd.f32 %v737_v38, %v2794_v3  ;;  %v798_v25 = vmul.f32 %v633_v1, %v2528_v5  ;;  %v838_v38 = vmul.f32 %v746_v41, %v2528_v5 }
 0x1b1   :  { %v2046_v16 = vpop.f32.mrf.mxu0  ;;  %v2078_v17 = vpop.f32.mrf.mxu1 }
 0x1b2   :  { %v636_v44 = vadd.f32 %v2046_v16, %v2782_v15  ;;  %v749_v46 = vadd.f32 %v2078_v17, %v2785_v62  ;;  %v617_v17 = vadd.f32 %v2041_v20, %v2808_v32  ;;  %v796_v43 = vmul.f32 %v625_v58, %v2530_v6 }
 0x1b3   :  { %v627_v3 = vpop.f32.mrf.mxu0  ;;  %v740_v53 = vpop.f32.mrf.mxu1  ;;  %v836_v1 = vmul.f32 %v738_v63, %v2530_v6  ;;  %v612_v20 = vadd.f32 %v611_v42, %v2816_v22  ;;  %v725_v58 = vadd.f32 %v724_v26, %v2819_v39  ;;  %v834_v42 = vmul.f32 %v730_v40, %v2534_v10 }
 0x1b4   :  { %v799_v60 = vmul.f32 %v636_v44, %v2532_v9  ;;  %v839_v51 = vmul.f32 %v749_v46, %v2532_v9  ;;  %v628_v0 = vadd.f32 %v627_v3, %v2788_v14  ;;  %v741_v16 = vadd.f32 %v740_v53, %v2799_v18 }
 0x1b5   :  { %v2838_v46 = vmul.f32 0.1, %v2594_v12  ;;  %v795_v3 = vmul.f32 %v620_v37, %v2538_v8  ;;  %v835_v53 = vmul.f32 %v733_v47, %v2538_v8  ;;  %v2851_v12 = vmul.f32 0.1, %v2612_v31 }
 0x1b6   :  { %v797_v41 = vmul.f32 %v628_v0, %v2536_v11  ;;  %v837_v5 = vmul.f32 %v741_v16, %v2536_v11  ;;  %v807_v21 = vpack.c.bf16 %v799_v60, %v798_v25  ;;  %v847_v44 = vpack.c.bf16 %v839_v51, %v838_v38 }
 0x1b7   :  { %v2848_v51 = vmul.f32 0.1, %v2610_v30  ;;  %v794_v37 = vmul.f32 %v617_v17, %v2534_v10  ;;  %v609_v7 = vadd.f32 %v2771_v24, %v2838_v46  ;;  %v722_v26 = vadd.f32 %v2773_v23, %v2844_v2 }
 0x1b8   :  { %2079 = vmatprep.subr.bf16.mxu0 %v807_v21  ;;  %2111 = vmatprep.subr.bf16.mxu1 %v847_v44  ;;  %v806_v63 = vpack.c.bf16 %v797_v41, %v796_v43  ;;  %v846_v0 = vpack.c.bf16 %v837_v5, %v836_v1  ;;  %v2860_v5 = vmul.f32 0.1, %v2614_v34  ;;  %v2863_v30 = vmul.f32 0.1, %v2616_v35 }
 0x1b9   :  { %2080 = vmatpush3.bf16.msra.mxu0 %v807_v21  ;;  %2112 = vmatpush3.bf16.msra.mxu1 %v847_v44  ;;  %v604_v31 = vadd.f32 %v2763_v50, %v2848_v51  ;;  %v717_v21 = vadd.f32 %v2765_v49, %v2851_v12  ;;  %v793_v47 = vmul.f32 %v612_v20, %v2590_v61  ;;  %v2872_v38 = vmul.f32 0.1, %v2630_v54  ;;  %v3394_v44 = vld [vmem:[#allocation38_spill] sm:$0xff] }
 0x1ba   :  { %2081 = vmatprep.subr.bf16.mxu0 %v806_v63  ;;  %2113 = vmatprep.subr.bf16.mxu1 %v846_v0  ;;  %v833_v24 = vmul.f32 %v725_v58, %v2590_v61  ;;  %v805_v25 = vpack.c.bf16 %v795_v3, %v794_v37  ;;  %v845_v23 = vpack.c.bf16 %v835_v53, %v834_v42  ;;  %v2877_v35 = vmul.f32 0.1, %v2632_v55  ;;  %v3395_v3 = vld [vmem:[#allocation14_spill] sm:$0xff]  ;;  %v3397_v53 = vld [vmem:[#allocation15_spill] sm:$0xff] }
 0x1bb   :  { %v601_v34 = vadd.f32 %v2755_v59, %v2860_v5  ;;  %v714_v49 = vadd.f32 %v2757_v52, %v2863_v30  ;;  %v792_v50 = vmul.f32 %v609_v7, %v2598_v13  ;;  %v832_v60 = vmul.f32 %v722_v26, %v2598_v13  ;;  %v3399_v20 = vld [vmem:[#allocation34_spill] sm:$0xff]  ;;  %v3401_v37 = vld [vmem:[#allocation11_spill] sm:$0xff] }
 0x1bc   :  { %v2884_v54 = vmul.f32 0.1, %v2634_v56  ;;  %v2887_v16 = vmul.f32 0.1, %v2636_v57  ;;  %v791_v59 = vmul.f32 %v604_v31, %v2608_v29  ;;  %v831_v55 = vmul.f32 %v717_v21, %v2608_v29  ;;  %v3402_v31 = vld [vmem:[#allocation18_spill] sm:$0xff] }
 0x1bd   :  { %2082 = vmatpush3.bf16.msra.mxu0 %v806_v63  ;;  %2114 = vmatpush3.bf16.msra.mxu1 %v846_v0  ;;  %v596_v17 = vadd.f32 %v2767_v48, %v2872_v38  ;;  %v709_v52 = vadd.f32 %v2769_v45, %v2877_v35  ;;  %v804_v40 = vpack.c.bf16 %v793_v47, %v792_v50  ;;  %v2896_v1 = vmul.f32 0.1, %v2650_v27  ;;  %v3400_v63 = vld [vmem:[#allocation35_spill] sm:$0xff]  ;;  %v3404_v47 = vld [vmem:[#allocation30_spill] sm:$0xff]  ;;  %v3408_v50 = vld [vmem:[#allocation12_spill] sm:$0xff] }
 0x1be   :  { %2083 = vmatprep.subr.bf16.mxu0 %v805_v25  ;;  %2115 = vmatprep.subr.bf16.mxu1 %v845_v23  ;;  %v844_v43 = vpack.c.bf16 %v833_v24, %v832_v60  ;;  %v2899_v56 = vmul.f32 0.1, %v2652_v28  ;;  %v790_v57 = vmul.f32 %v601_v34, %v2618_v36  ;;  %v830_v41 = vmul.f32 %v714_v49, %v2618_v36  ;;  %v3407_v34 = vld [vmem:[#allocation31_spill] sm:$0xff] }
 0x1bf   :  { %3392 = vst [vmem:[#allocation45_spill] sm:$0xff] %v2896_v1  ;;  %v593_v48 = vadd.f32 %v2759_v4, %v2884_v54  ;;  %v706_v45 = vadd.f32 %v3394_v44, %v2887_v16  ;;  %v2908_v27 = vmul.f32 0.1, %v3395_v3  ;;  %v2911_v28 = vmul.f32 0.1, %v3397_v53  ;;  %v3414_v44 = vld [vmem:[#allocation36_spill] sm:$0xff] }
 0x1c0   :  { %3393 = vst [vmem:[#allocation46_spill] sm:$0xff] %v2899_v56  ;;  %v588_v58 = vadd.f32 %v3399_v20, %v2896_v1  ;;  %v701_v0 = vadd.f32 %v3400_v63, %v2899_v56  ;;  %v789_v42 = vmul.f32 %v596_v17, %v3401_v37  ;;  %v829_v4 = vmul.f32 %v709_v52, %v3401_v37  ;;  %v3411_v52 = vld [vmem:[#allocation21_spill] sm:$0xff]  ;;  %v3416_v63 = vld [vmem:[#allocation16_spill] sm:$0xff]  ;;  %v3442_v1 = vld [vmem:[#allocation10_spill] sm:$0xff] }
 0x1c1   :  { %2084 = vmatpush3.bf16.msra.mxu0 %v805_v25  ;;  %2116 = vmatpush3.bf16.msra.mxu1 %v845_v23  ;;  %3396 = vst [vmem:[#allocation38_spill] sm:$0xff] %v2908_v27  ;;  %3398 = vst [vmem:[#allocation14_spill] sm:$0xff] %v2911_v28  ;;  %v803_v7 = vpack.c.bf16 %v791_v59, %v790_v57  ;;  %v843_v26 = vpack.c.bf16 %v831_v55, %v830_v41  ;;  %v2920_v21 = vmul.f32 0.1, %v3402_v31  ;;  %v3405_v25 = vld [vmem:[#allocation19_spill] sm:$0xff]  ;;  %v3409_v59 = vld [vmem:[#allocation20_spill] sm:$0xff] }
 0x1c2   :  { %2085 = vmatprep.subr.bf16.mxu0 %v804_v40  ;;  %2117 = vmatprep.subr.bf16.mxu1 %v844_v43  ;;  %v585_v24 = vadd.f32 %v3404_v47, %v2908_v27  ;;  %v2925_v23 = vmul.f32 0.1, %v3405_v25  ;;  %v698_v49 = vadd.f32 %v3407_v34, %v2911_v28  ;;  %v788_v60 = vmul.f32 %v593_v48, %v3408_v50  ;;  %v3415_v53 = vld [vmem:[#allocation37_spill] sm:$0xff]  ;;  %v3417_v25 = vld [vmem:[#allocation32_spill] sm:$0xff] }
 0x1c3   :  { %3403 = vst [vmem:[#allocation15_spill] sm:$0xff] %v2920_v21  ;;  %v828_v17 = vmul.f32 %v706_v45, %v3408_v50  ;;  %v2932_v55 = vmul.f32 0.1, %v3409_v59  ;;  %v2935_v57 = vmul.f32 0.1, %v3411_v52  ;;  %v580_v3 = vadd.f32 %v3414_v44, %v2920_v21  ;;  %v3419_v59 = vld [vmem:[#allocation17_spill] sm:$0xff] }
 0x1c4   :  { %3406 = vst [vmem:[#allocation34_spill] sm:$0xff] %v2925_v23  ;;  %v693_v48 = vadd.f32 %v3415_v53, %v2925_v23  ;;  %v802_v20 = vpack.c.bf16 %v789_v42, %v788_v60  ;;  %v786_v31 = vmul.f32 %v585_v24, %v3416_v63  ;;  %v826_v47 = vmul.f32 %v698_v49, %v3416_v63  ;;  %v3425_v53 = vld [vmem:[#allocation27_spill] sm:$0xff]  ;;  %v3438_v63 = vld [vmem:[#allocation40_spill] sm:$0xff]  ;;  %v3439_v21 = vld [vmem:[#allocation42_spill] sm:$0xff] }
 0x1c5   :  { %2086 = vmatpush3.bf16.msra.mxu0 %v804_v40  ;;  %2118 = vmatpush3.bf16.msra.mxu1 %v844_v43  ;;  %3410 = vst [vmem:[#allocation35_spill] sm:$0xff] %v2932_v55  ;;  %3412 = vst [vmem:[#allocation18_spill] sm:$0xff] %v2935_v57  ;;  %v3413_v40 = vld [vmem:[#allocation13_spill] sm:$0xff]  ;;  %v842_v45 = vpack.c.bf16 %v829_v4, %v828_v17  ;;  %v577_v34 = vadd.f32 %v3417_v25, %v2932_v55  ;;  %v3421_v17 = vld [vmem:[#allocation23_spill] sm:$0xff] }
 0x1c6   :  { %2087 = vmatprep.subr.bf16.mxu0 %v803_v7  ;;  %2119 = vmatprep.subr.bf16.mxu1 %v843_v26  ;;  %v787_v43 = vmul.f32 %v588_v58, %v3413_v40  ;;  %v827_v41 = vmul.f32 %v701_v0, %v3413_v40  ;;  %v3418_v58 = vld [vmem:[#allocation33_spill] sm:$0xff]  ;;  %v785_v52 = vmul.f32 %v580_v3, %v3419_v59  ;;  %v3424_v3 = vld [vmem:[#allocation26_spill] sm:$0xff]  ;;  %v3440_v50 = vld [vmem:[#allocation43_spill] sm:$0xff] }
 0x1c7   :  { %v690_v0 = vadd.f32 %v3418_v58, %v2935_v57  ;;  %v825_v44 = vmul.f32 %v693_v48, %v3419_v59  ;;  %v3426_v48 = vld [vmem:[#allocation28_spill] sm:$0xff] }
 0x1c8   :  { %v801_v42 = vpack.c.bf16 %v787_v43, %v786_v31  ;;  %v841_v4 = vpack.c.bf16 %v827_v41, %v826_v47  ;;  %v3422_v43 = vld [vmem:[#allocation24_spill] sm:$0xff]  ;;  %v3423_v41 = vld [vmem:[#allocation25_spill] sm:$0xff] }
 0x1c9   :  { %2088 = vmatpush3.bf16.msra.mxu0 %v803_v7  ;;  %2120 = vmatpush3.bf16.msra.mxu1 %v843_v26  ;;  %v3420_v7 = vld [vmem:[#allocation22_spill] sm:$0xff]  ;;  %v3441_v56 = vld [vmem:[#allocation44_spill] sm:$0xff] }
 0x1ca   :  { %2089 = vmatprep.subr.bf16.mxu0 %v802_v20  ;;  %2121 = vmatprep.subr.bf16.mxu1 %v842_v45  ;;  %v784_v26 = vmul.f32 %v577_v34, %v3420_v7  ;;  %v824_v24 = vmul.f32 %v690_v0, %v3420_v7 }
 0x1cc   :  { %v800_v49 = vpack.c.bf16 %v785_v52, %v784_v26  ;;  %v840_v60 = vpack.c.bf16 %v825_v44, %v824_v24 }
 0x1cd   :  { %2090 = vmatpush3.bf16.msra.mxu0 %v802_v20  ;;  %2122 = vmatpush3.bf16.msra.mxu1 %v842_v45  ;;  %v3427_v20 = vld [vmem:[#allocation29_spill] sm:$0xff] }
 0x1ce   :  { %2091 = vmatprep.subr.bf16.mxu0 %v801_v42  ;;  %2123 = vmatprep.subr.bf16.mxu1 %v841_v4  ;;  %v3428_v45 = vld [vmem:[#allocation9_spill] sm:$0xff] }
 0x1d1   :  { %2092 = vmatpush3.bf16.msra.mxu0 %v801_v42  ;;  %2124 = vmatpush3.bf16.msra.mxu1 %v841_v4 }
 0x1d2   :  { %2093 = vmatprep.subr.bf16.mxu0 %v800_v49  ;;  %2125 = vmatprep.subr.bf16.mxu1 %v840_v60 }
 0x1d5   :  { %2094 = vmatpush3.bf16.msra.mxu0 %v800_v49  ;;  %2126 = vmatpush3.bf16.msra.mxu1 %v840_v60 }
 0x1d8   :  { %2096 = vmatmul.mubr.bf16.vlgmr.msra.gmra.mxu0 %v3421_v17  ;;  %2128 = vmatmul.mubr.bf16.vlgmr.msra.gmra.mxu1 %v3421_v17 }
 0x1d9   :  { %2099 = vmatprep.mubr.bf16.mxu0 %v3422_v43  ;;  %2131 = vmatprep.mubr.bf16.mxu1 %v3422_v43 }
 0x1e0   :  { %2100 = vmatmul.mubr.bf16.gmra.mxu0 %v3423_v41  ;;  %2132 = vmatmul.mubr.bf16.gmra.mxu1 %v3423_v41 }
 0x1e1   :  { %2103 = vmatprep.mubr.bf16.mxu0 %v3424_v3  ;;  %2135 = vmatprep.mubr.bf16.mxu1 %v3424_v3 }
 0x1e8   :  { %2104 = vmatmul.mubr.bf16.gmra.mxu0 %v3425_v53  ;;  %2136 = vmatmul.mubr.bf16.gmra.mxu1 %v3425_v53 }
 0x1e9   :  { %2107 = vmatprep.mubr.bf16.mxu0 %v3426_v48  ;;  %2139 = vmatprep.mubr.bf16.mxu1 %v3426_v48 }
 0x1f0   :  { %2108 = vmatmul.mubr.bf16.gmra.mxu0 %v3427_v20  ;;  %2140 = vmatmul.mubr.bf16.gmra.mxu1 %v3427_v20 }
 0x1f1   :  { %2159 = vmatprep.mubr.bf16.mxu0 %v3428_v45  ;;  %2191 = vmatprep.mubr.bf16.mxu1 %v3428_v45 }
 0x298   :  { %v2969_v31 = vpop.f32.mrf.mxu0  ;;  %v2971_v47 = vpop.f32.mrf.mxu1 }
 0x299   :  { %3429 = vst [vmem:[#allocation30_spill] sm:$0xff] %v2969_v31  ;;  %3430 = vst [vmem:[#allocation19_spill] sm:$0xff] %v2971_v47 }
 0x29a   :  { %v2973_v25 = vpop.f32.mrf.mxu0  ;;  %v2975_v34 = vpop.f32.mrf.mxu1 }
 0x29b   :  { %3431 = vst [vmem:[#allocation31_spill] sm:$0xff] %v2973_v25  ;;  %3432 = vst [vmem:[#allocation20_spill] sm:$0xff] %v2975_v34  ;;  %v3437_v25 = vld [vmem:[#allocation39_spill] sm:$0xff] }
 0x29c   :  { %v2977_v58 = vpop.f32.mrf.mxu0  ;;  %v2979_v0 = vpop.f32.mrf.mxu1 }
 0x29d   :  { %3433 = vst [vmem:[#allocation21_spill] sm:$0xff] %v2977_v58  ;;  %3434 = vst [vmem:[#allocation36_spill] sm:$0xff] %v2979_v0 }
 0x29e   :  { %v2981_v52 = vpop.f32.mrf.mxu0  ;;  %v2983_v44 = vpop.f32.mrf.mxu1 }
 0x29f   :  { %3435 = vst [vmem:[#allocation37_spill] sm:$0xff] %v2981_v52  ;;  %3436 = vst [vmem:[#allocation32_spill] sm:$0xff] %v2983_v44 }
 0x2a0   :  { %v2985_v42 = vpop.f32.mrf.mxu0  ;;  %v2987_v4 = vpop.f32.mrf.mxu1 }
 0x2a2   :  { %v2989_v26 = vpop.f32.mrf.mxu0  ;;  %v2991_v24 = vpop.f32.mrf.mxu1 }
 0x2a4   :  { %v2102_v49 = vpop.f32.mrf.mxu0  ;;  %v2134_v60 = vpop.f32.mrf.mxu1 }
 0x2a6   :  { %v2993_v45 = vpop.f32.mrf.mxu0  ;;  %v2995_v20 = vpop.f32.mrf.mxu1 }
 0x2a8   :  { %v2105_v48 = vpop.f32.mrf.mxu0  ;;  %v2137_v53 = vpop.f32.mrf.mxu1 }
 0x2aa   :  { %v914_v3 = vpop.f32.mrf.mxu0  ;;  %v1027_v41 = vpop.f32.mrf.mxu1 }
 0x2ac   :  { %v2106_v43 = vpop.f32.mrf.mxu0  ;;  %v2138_v17 = vpop.f32.mrf.mxu1 }
 0x2ad   :  { %v926_v0 = vadd.f32 %v2106_v43, %v2802_v19  ;;  %v1039_v58 = vadd.f32 %v2138_v17, %v3441_v56  ;;  %v1036_v43 = vadd.f32 %v2137_v53, %v2811_v33 }
 0x2ae   :  { %v917_v7 = vpop.f32.mrf.mxu0  ;;  %v1030_v59 = vpop.f32.mrf.mxu1 }
 0x2b0   :  { %v2109_v34 = vpop.f32.mrf.mxu0  ;;  %v2141_v57 = vpop.f32.mrf.mxu1 }
 0x2b1   :  { %v939_v55 = vadd.f32 %v2109_v34, %v3437_v25  ;;  %v1052_v44 = vadd.f32 %v2141_v57, %v3438_v63 }
 0x2b2   :  { %v930_v23 = vpop.f32.mrf.mxu0  ;;  %v1043_v52 = vpop.f32.mrf.mxu1 }
 0x2b3   :  { %v931_v40 = vadd.f32 %v930_v23, %v3439_v21  ;;  %v1044_v47 = vadd.f32 %v1043_v52, %v3440_v50  ;;  %v1104_v34 = vmul.f32 %v939_v55, %v3442_v1  ;;  %v1144_v57 = vmul.f32 %v1052_v44, %v3442_v1 }
 0x2b4   :  { %v2110_v28 = vpop.f32.mrf.mxu0  ;;  %v2142_v31 = vpop.f32.mrf.mxu1 }
 0x2b5   :  { %v942_v27 = vadd.f32 %v2110_v28, %v2782_v15  ;;  %v1055_v37 = vadd.f32 %v2142_v31, %v2785_v62  ;;  %v923_v31 = vadd.f32 %v2105_v48, %v2808_v32  ;;  %v1102_v17 = vmul.f32 %v931_v40, %v2530_v6 }
 0x2b6   :  { %v933_v63 = vpop.f32.mrf.mxu0  ;;  %v1046_v25 = vpop.f32.mrf.mxu1  ;;  %v1142_v55 = vmul.f32 %v1044_v47, %v2530_v6  ;;  %v1031_v48 = vadd.f32 %v1030_v59, %v2819_v39  ;;  %v1023_v59 = vadd.f32 %v2134_v60, %v2851_v12 }
 0x2b7   :  { %v1105_v23 = vmul.f32 %v942_v27, %v2532_v9  ;;  %v1145_v52 = vmul.f32 %v1055_v37, %v2532_v9  ;;  %v934_v50 = vadd.f32 %v933_v63, %v2788_v14  ;;  %v1047_v28 = vadd.f32 %v1046_v25, %v2799_v18 }
 0x2b8   :  { %v1101_v37 = vmul.f32 %v926_v0, %v2538_v8  ;;  %v1141_v63 = vmul.f32 %v1039_v58, %v2538_v8  ;;  %v918_v25 = vadd.f32 %v917_v7, %v2816_v22  ;;  %v1100_v47 = vmul.f32 %v923_v31, %v2534_v10 }
 0x2b9   :  { %v1103_v44 = vmul.f32 %v934_v50, %v2536_v11  ;;  %v1143_v1 = vmul.f32 %v1047_v28, %v2536_v11  ;;  %v1113_v56 = vpack.c.bf16 %v1105_v23, %v1104_v34  ;;  %v1153_v27 = vpack.c.bf16 %v1145_v52, %v1144_v57 }
 0x2ba   :  { %v1140_v50 = vmul.f32 %v1036_v43, %v2534_v10  ;;  %v915_v34 = vadd.f32 %v914_v3, %v2838_v46  ;;  %v1028_v0 = vadd.f32 %v1027_v41, %v2844_v2  ;;  %v910_v7 = vadd.f32 %v2102_v49, %v2848_v51 }
 0x2bb   :  { %2143 = vmatprep.subr.bf16.mxu0 %v1113_v56  ;;  %2175 = vmatprep.subr.bf16.mxu1 %v1153_v27  ;;  %v1112_v53 = vpack.c.bf16 %v1103_v44, %v1102_v17  ;;  %v1152_v40 = vpack.c.bf16 %v1143_v1, %v1142_v55  ;;  %v1099_v58 = vmul.f32 %v918_v25, %v2590_v61 }
 0x2bc   :  { %2144 = vmatpush3.bf16.msra.mxu0 %v1113_v56  ;;  %2176 = vmatpush3.bf16.msra.mxu1 %v1153_v27  ;;  %v1139_v1 = vmul.f32 %v1031_v48, %v2590_v61  ;;  %v1111_v57 = vpack.c.bf16 %v1101_v37, %v1100_v47  ;;  %v1151_v23 = vpack.c.bf16 %v1141_v63, %v1140_v50  ;;  %v3444_v27 = vld [vmem:[#allocation21_spill] sm:$0xff]  ;;  %v3446_v63 = vld [vmem:[#allocation36_spill] sm:$0xff]  ;;  %v3447_v48 = vld [vmem:[#allocation11_spill] sm:$0xff] }
 0x2bd   :  { %2145 = vmatprep.subr.bf16.mxu0 %v1112_v53  ;;  %2177 = vmatprep.subr.bf16.mxu1 %v1152_v40  ;;  %v907_v56 = vadd.f32 %v2985_v42, %v2860_v5  ;;  %v1020_v41 = vadd.f32 %v2987_v4, %v2863_v30  ;;  %v1098_v3 = vmul.f32 %v915_v34, %v2598_v13  ;;  %v3448_v34 = vld [vmem:[#allocation38_spill] sm:$0xff] }
 0x2be   :  { %v1138_v49 = vmul.f32 %v1028_v0, %v2598_v13  ;;  %v1097_v60 = vmul.f32 %v910_v7, %v2608_v29  ;;  %v1137_v52 = vmul.f32 %v1023_v59, %v2608_v29  ;;  %v902_v28 = vadd.f32 %v2993_v45, %v2872_v38  ;;  %v3443_v45 = vld [vmem:[#allocation45_spill] sm:$0xff]  ;;  %v3449_v0 = vld [vmem:[#allocation30_spill] sm:$0xff]  ;;  %v3451_v7 = vld [vmem:[#allocation19_spill] sm:$0xff] }
 0x2bf   :  { %v1015_v42 = vadd.f32 %v2995_v20, %v2877_v35  ;;  %v1110_v31 = vpack.c.bf16 %v1099_v58, %v1098_v3  ;;  %v1096_v4 = vmul.f32 %v907_v56, %v2618_v36  ;;  %v1136_v17 = vmul.f32 %v1020_v41, %v2618_v36  ;;  %v3445_v20 = vld [vmem:[#allocation46_spill] sm:$0xff]  ;;  %v3452_v58 = vld [vmem:[#allocation12_spill] sm:$0xff]  ;;  %v3454_v3 = vld [vmem:[#allocation15_spill] sm:$0xff] }
 0x2c0   :  { %2146 = vmatpush3.bf16.msra.mxu0 %v1112_v53  ;;  %2178 = vmatpush3.bf16.msra.mxu1 %v1152_v40  ;;  %v1150_v43 = vpack.c.bf16 %v1139_v1, %v1138_v49  ;;  %v899_v55 = vadd.f32 %v2989_v26, %v2884_v54  ;;  %v1012_v44 = vadd.f32 %v2991_v24, %v2887_v16  ;;  %v3450_v24 = vld [vmem:[#allocation14_spill] sm:$0xff]  ;;  %v3455_v49 = vld [vmem:[#allocation37_spill] sm:$0xff] }
 0x2c1   :  { %2147 = vmatprep.subr.bf16.mxu0 %v1111_v57  ;;  %2179 = vmatprep.subr.bf16.mxu1 %v1151_v23  ;;  %v894_v37 = vadd.f32 %v3444_v27, %v3443_v45  ;;  %v1007_v25 = vadd.f32 %v3446_v63, %v3445_v20  ;;  %v1095_v53 = vmul.f32 %v902_v28, %v3447_v48  ;;  %v3457_v28 = vld [vmem:[#allocation32_spill] sm:$0xff]  ;;  %v3460_v27 = vld [vmem:[#allocation31_spill] sm:$0xff]  ;;  %v3484_v45 = vld [vmem:[#allocation10_spill] sm:$0xff] }
 0x2c2   :  { %v1135_v40 = vmul.f32 %v1015_v42, %v3447_v48  ;;  %v1109_v47 = vpack.c.bf16 %v1097_v60, %v1096_v4  ;;  %v1149_v50 = vpack.c.bf16 %v1137_v52, %v1136_v17  ;;  %v891_v26 = vadd.f32 %v3449_v0, %v3448_v34  ;;  %v3456_v52 = vld [vmem:[#allocation34_spill] sm:$0xff]  ;;  %v3458_v4 = vld [vmem:[#allocation16_spill] sm:$0xff] }
 0x2c3   :  { %v1004_v59 = vadd.f32 %v3451_v7, %v3450_v24  ;;  %v1094_v1 = vmul.f32 %v899_v55, %v3452_v58  ;;  %v886_v60 = vadd.f32 %v3455_v49, %v3454_v3  ;;  %v999_v42 = vadd.f32 %v3457_v28, %v3456_v52  ;;  %v3462_v0 = vld [vmem:[#allocation20_spill] sm:$0xff]  ;;  %v3463_v7 = vld [vmem:[#allocation17_spill] sm:$0xff] }
 0x2c4   :  { %2148 = vmatpush3.bf16.msra.mxu0 %v1111_v57  ;;  %2180 = vmatpush3.bf16.msra.mxu1 %v1151_v23  ;;  %v1134_v57 = vmul.f32 %v1012_v44, %v3452_v58  ;;  %v3453_v23 = vld [vmem:[#allocation13_spill] sm:$0xff]  ;;  %v1092_v17 = vmul.f32 %v891_v26, %v3458_v4  ;;  %v3459_v44 = vld [vmem:[#allocation35_spill] sm:$0xff]  ;;  %v3483_v20 = vld [vmem:[#allocation44_spill] sm:$0xff] }
 0x2c5   :  { %2149 = vmatprep.subr.bf16.mxu0 %v1110_v31  ;;  %2181 = vmatprep.subr.bf16.mxu1 %v1150_v43  ;;  %v1093_v56 = vmul.f32 %v894_v37, %v3453_v23  ;;  %v1133_v41 = vmul.f32 %v1007_v25, %v3453_v23  ;;  %v1132_v55 = vmul.f32 %v1004_v59, %v3458_v4  ;;  %v3461_v37 = vld [vmem:[#allocation18_spill] sm:$0xff]  ;;  %v3482_v58 = vld [vmem:[#allocation43_spill] sm:$0xff] }
 0x2c6   :  { %v883_v63 = vadd.f32 %v3460_v27, %v3459_v44  ;;  %v996_v25 = vadd.f32 %v3462_v0, %v3461_v37  ;;  %v1091_v49 = vmul.f32 %v886_v60, %v3463_v7  ;;  %v1131_v28 = vmul.f32 %v999_v42, %v3463_v7  ;;  %v3468_v60 = vld [vmem:[#allocation26_spill] sm:$0xff]  ;;  %v3469_v42 = vld [vmem:[#allocation27_spill] sm:$0xff] }
 0x2c7   :  { %v3480_v44 = vld [vmem:[#allocation39_spill] sm:$0xff] }
 0x2c8   :  { %2150 = vmatpush3.bf16.msra.mxu0 %v1110_v31  ;;  %2182 = vmatpush3.bf16.msra.mxu1 %v1150_v43  ;;  %v1108_v31 = vpack.c.bf16 %v1095_v53, %v1094_v1  ;;  %v1148_v43 = vpack.c.bf16 %v1135_v40, %v1134_v57  ;;  %v1107_v53 = vpack.c.bf16 %v1093_v56, %v1092_v17  ;;  %v3465_v57 = vld [vmem:[#allocation23_spill] sm:$0xff]  ;;  %v3466_v56 = vld [vmem:[#allocation24_spill] sm:$0xff]  ;;  %v2318_v17 = vld [vmem:[%s3269_s0] sm:$0xff]  }
 0x2c9   :  { %2151 = vmatprep.subr.bf16.mxu0 %v1109_v47  ;;  %2183 = vmatprep.subr.bf16.mxu1 %v1149_v50  ;;  %v1147_v40 = vpack.c.bf16 %v1133_v41, %v1132_v55  ;;  %v3467_v41 = vld [vmem:[#allocation25_spill] sm:$0xff] }
 0x2cc   :  { %2152 = vmatpush3.bf16.msra.mxu0 %v1109_v47  ;;  %2184 = vmatpush3.bf16.msra.mxu1 %v1149_v50  ;;  %v3464_v47 = vld [vmem:[#allocation22_spill] sm:$0xff] }
 0x2cd   :  { %2153 = vmatprep.subr.bf16.mxu0 %v1108_v31  ;;  %2185 = vmatprep.subr.bf16.mxu1 %v1148_v43  ;;  %v1090_v50 = vmul.f32 %v883_v63, %v3464_v47  ;;  %v1130_v26 = vmul.f32 %v996_v25, %v3464_v47 }
 0x2cf   :  { %v1106_v59 = vpack.c.bf16 %v1091_v49, %v1090_v50  ;;  %v1146_v1 = vpack.c.bf16 %v1131_v28, %v1130_v26 }
 0x2d0   :  { %2154 = vmatpush3.bf16.msra.mxu0 %v1108_v31  ;;  %2186 = vmatpush3.bf16.msra.mxu1 %v1148_v43  ;;  %v3470_v31 = vld [vmem:[#allocation28_spill] sm:$0xff]  ;;  %v3471_v43 = vld [vmem:[#allocation29_spill] sm:$0xff] }
 0x2d1   :  { %2155 = vmatprep.subr.bf16.mxu0 %v1107_v53  ;;  %2187 = vmatprep.subr.bf16.mxu1 %v1147_v40 }
 0x2d4   :  { %2156 = vmatpush3.bf16.msra.mxu0 %v1107_v53  ;;  %2188 = vmatpush3.bf16.msra.mxu1 %v1147_v40 }
 0x2d5   :  { %2157 = vmatprep.subr.bf16.mxu0 %v1106_v59  ;;  %2189 = vmatprep.subr.bf16.mxu1 %v1146_v1 }
 0x2d8   :  { %2158 = vmatpush3.bf16.msra.mxu0 %v1106_v59  ;;  %2190 = vmatpush3.bf16.msra.mxu1 %v1146_v1 }
 0x2db   :  { %2160 = vmatmul.mubr.bf16.vlgmr.msra.gmra.mxu0 %v3465_v57  ;;  %2192 = vmatmul.mubr.bf16.vlgmr.msra.gmra.mxu1 %v3465_v57 }
 0x2dc   :  { %2163 = vmatprep.mubr.bf16.mxu0 %v3466_v56  ;;  %2195 = vmatprep.mubr.bf16.mxu1 %v3466_v56 }
 0x2e3   :  { %2164 = vmatmul.mubr.bf16.gmra.mxu0 %v3467_v41  ;;  %2196 = vmatmul.mubr.bf16.gmra.mxu1 %v3467_v41 }
 0x2e4   :  { %2167 = vmatprep.mubr.bf16.mxu0 %v3468_v60  ;;  %2199 = vmatprep.mubr.bf16.mxu1 %v3468_v60 }
 0x2eb   :  { %2168 = vmatmul.mubr.bf16.gmra.mxu0 %v3469_v42  ;;  %2200 = vmatmul.mubr.bf16.gmra.mxu1 %v3469_v42 }
 0x2ec   :  { %2171 = vmatprep.mubr.bf16.mxu0 %v3470_v31  ;;  %2203 = vmatprep.mubr.bf16.mxu1 %v3470_v31 }
 0x2f3   :  { %2172 = vmatmul.mubr.bf16.gmra.mxu0 %v3471_v43  ;;  %2204 = vmatmul.mubr.bf16.gmra.mxu1 %v3471_v43 }
 0x2f4   :  { %2223 = vmatprep.mubr.bf16.mxu0 %v2318_v17  ;;  %2255 = vmatprep.mubr.bf16.mxu1 %v2318_v17 }
 0x39b   :  { %v3092_v55 = vpop.f32.mrf.mxu0  ;;  %v3094_v27 = vpop.f32.mrf.mxu1 }
 0x39c   :  { %3472 = vst [vmem:[#allocation33_spill] sm:$0xff] %v3092_v55  ;;  %3473 = vst [vmem:[#allocation9_spill] sm:$0xff] %v3094_v27 }
 0x39d   :  { %v3096_v63 = vpop.f32.mrf.mxu0  ;;  %v3098_v0 = vpop.f32.mrf.mxu1 }
 0x39e   :  { %3474 = vst [vmem:[#allocation42_spill] sm:$0xff] %v3096_v63  ;;  %3475 = vst [vmem:[#allocation21_spill] sm:$0xff] %v3098_v0 }
 0x39f   :  { %v3100_v25 = vpop.f32.mrf.mxu0  ;;  %v3102_v49 = vpop.f32.mrf.mxu1 }
 0x3a0   :  { %3476 = vst [vmem:[#allocation36_spill] sm:$0xff] %v3100_v25  ;;  %3477 = vst [vmem:[#allocation30_spill] sm:$0xff] %v3102_v49 }
 0x3a1   :  { %v3104_v28 = vpop.f32.mrf.mxu0  ;;  %v3106_v53 = vpop.f32.mrf.mxu1 }
 0x3a2   :  { %3478 = vst [vmem:[#allocation19_spill] sm:$0xff] %v3104_v28  ;;  %3479 = vst [vmem:[#allocation37_spill] sm:$0xff] %v3106_v53  ;;  %v3481_v53 = vld [vmem:[#allocation40_spill] sm:$0xff] }
 0x3a3   :  { %v3108_v40 = vpop.f32.mrf.mxu0  ;;  %v3110_v50 = vpop.f32.mrf.mxu1 }
 0x3a5   :  { %v3112_v26 = vpop.f32.mrf.mxu0  ;;  %v3114_v59 = vpop.f32.mrf.mxu1 }
 0x3a7   :  { %v2166_v1 = vpop.f32.mrf.mxu0  ;;  %v2198_v57 = vpop.f32.mrf.mxu1 }
 0x3a9   :  { %v3116_v56 = vpop.f32.mrf.mxu0  ;;  %v3118_v41 = vpop.f32.mrf.mxu1 }
 0x3ab   :  { %v2169_v60 = vpop.f32.mrf.mxu0  ;;  %v2201_v42 = vpop.f32.mrf.mxu1 }
 0x3ad   :  { %v1220_v31 = vpop.f32.mrf.mxu0  ;;  %v1333_v43 = vpop.f32.mrf.mxu1 }
 0x3af   :  { %v2170_v17 = vpop.f32.mrf.mxu0  ;;  %v2202_v47 = vpop.f32.mrf.mxu1 }
 0x3b0   :  { %v1232_v49 = vadd.f32 %v2170_v17, %v2802_v19  ;;  %v1345_v25 = vadd.f32 %v2202_v47, %v3483_v20  ;;  %v1342_v17 = vadd.f32 %v2201_v42, %v2811_v33 }
 0x3b1   :  { %v1223_v7 = vpop.f32.mrf.mxu0  ;;  %v1336_v0 = vpop.f32.mrf.mxu1 }
 0x3b3   :  { %v2173_v37 = vpop.f32.mrf.mxu0  ;;  %v2205_v63 = vpop.f32.mrf.mxu1 }
 0x3b4   :  { %v1245_v4 = vadd.f32 %v2173_v37, %v3480_v44  ;;  %v1358_v52 = vadd.f32 %v2205_v63, %v3481_v53 }
 0x3b5   :  { %v1236_v28 = vpop.f32.mrf.mxu0  ;;  %v1349_v3 = vpop.f32.mrf.mxu1 }
 0x3b6   :  { %v1237_v23 = vadd.f32 %v1236_v28, %v3439_v21  ;;  %v1350_v27 = vadd.f32 %v1349_v3, %v3482_v58  ;;  %v1410_v37 = vmul.f32 %v1245_v4, %v3484_v45  ;;  %v1450_v63 = vmul.f32 %v1358_v52, %v3484_v45 }
 0x3b7   :  { %v2174_v24 = vpop.f32.mrf.mxu0  ;;  %v2206_v55 = vpop.f32.mrf.mxu1 }
 0x3b8   :  { %v1248_v34 = vadd.f32 %v2174_v24, %v2782_v15  ;;  %v1361_v48 = vadd.f32 %v2206_v55, %v2785_v62  ;;  %v1229_v55 = vadd.f32 %v2169_v60, %v2808_v32  ;;  %v1408_v47 = vmul.f32 %v1237_v23, %v2530_v6 }
 0x3b9   :  { %v1239_v53 = vpop.f32.mrf.mxu0  ;;  %v1352_v44 = vpop.f32.mrf.mxu1  ;;  %v1448_v4 = vmul.f32 %v1350_v27, %v2530_v6  ;;  %v1334_v27 = vadd.f32 %v1333_v43, %v2844_v2  ;;  %v1208_v43 = vadd.f32 %v3116_v56, %v2872_v38  ;;  %v3485_v56 = vld [vmem:[#allocation45_spill] sm:$0xff] }
 0x3ba   :  { %v1411_v28 = vmul.f32 %v1248_v34, %v2532_v9  ;;  %v1451_v3 = vmul.f32 %v1361_v48, %v2532_v9  ;;  %v1240_v58 = vadd.f32 %v1239_v53, %v2788_v14  ;;  %v1353_v24 = vadd.f32 %v1352_v44, %v2799_v18 }
 0x3bb   :  { %v1407_v9 = vmul.f32 %v1232_v49, %v2538_v8  ;;  %v1447_v48 = vmul.f32 %v1345_v25, %v2538_v8  ;;  %v1224_v44 = vadd.f32 %v1223_v7, %v2816_v22  ;;  %v1337_v53 = vadd.f32 %v1336_v0, %v2819_v39 }
 0x3bc   :  { %v1409_v45 = vmul.f32 %v1240_v58, %v2536_v11  ;;  %v1449_v52 = vmul.f32 %v1353_v24, %v2536_v11  ;;  %v1419_v62 = vpack.c.bf16 %v1411_v28, %v1410_v37  ;;  %v1459_v34 = vpack.c.bf16 %v1451_v3, %v1450_v63  ;;  %v3486_v3 = vld [vmem:[#allocation36_spill] sm:$0xff] }
 0x3bd   :  { %v1406_v6 = vmul.f32 %v1229_v55, %v2534_v10  ;;  %v1446_v11 = vmul.f32 %v1342_v17, %v2534_v10  ;;  %v1221_v58 = vadd.f32 %v1220_v31, %v2838_v46  ;;  %v1216_v8 = vadd.f32 %v2166_v1, %v2848_v51  ;;  %v3488_v55 = vld [vmem:[#allocation30_spill] sm:$0xff] }
 0x3be   :  { %2207 = vmatprep.subr.bf16.mxu0 %v1419_v62  ;;  %2239 = vmatprep.subr.bf16.mxu1 %v1459_v34  ;;  %v1418_v60 = vpack.c.bf16 %v1409_v45, %v1408_v47  ;;  %v1458_v23 = vpack.c.bf16 %v1449_v52, %v1448_v4  ;;  %v1329_v7 = vadd.f32 %v2198_v57, %v2851_v12  ;;  %v3489_v47 = vld [vmem:[#allocation11_spill] sm:$0xff] }
 0x3bf   :  { %2208 = vmatpush3.bf16.msra.mxu0 %v1419_v62  ;;  %2240 = vmatpush3.bf16.msra.mxu1 %v1459_v34  ;;  %v1405_v0 = vmul.f32 %v1224_v44, %v2590_v61  ;;  %v1445_v25 = vmul.f32 %v1337_v53, %v2590_v61  ;;  %v1417_v49 = vpack.c.bf16 %v1407_v9, %v1406_v6  ;;  %v3490_v34 = vld [vmem:[#allocation38_spill] sm:$0xff]  ;;  %v3491_v9 = vld [vmem:[#allocation33_spill] sm:$0xff]  ;;  %v3494_v53 = vld [vmem:[#allocation12_spill] sm:$0xff] }
 0x3c0   :  { %2209 = vmatprep.subr.bf16.mxu0 %v1418_v60  ;;  %2241 = vmatprep.subr.bf16.mxu1 %v1458_v23  ;;  %v1457_v42 = vpack.c.bf16 %v1447_v48, %v1446_v11  ;;  %v1213_v62 = vadd.f32 %v3108_v40, %v2860_v5  ;;  %v1326_v10 = vadd.f32 %v3110_v50, %v2863_v30  ;;  %v3493_v48 = vld [vmem:[#allocation9_spill] sm:$0xff] }
 0x3c1   :  { %v1404_v31 = vmul.f32 %v1221_v58, %v2598_v13  ;;  %v1444_v1 = vmul.f32 %v1334_v27, %v2598_v13  ;;  %v1403_v57 = vmul.f32 %v1216_v8, %v2608_v29  ;;  %v1443_v61 = vmul.f32 %v1329_v7, %v2608_v29  ;;  %v3495_v6 = vld [vmem:[#allocation13_spill] sm:$0xff]  ;;  %v3496_v27 = vld [vmem:[#allocation15_spill] sm:$0xff] }
 0x3c2   :  { %v1321_v40 = vadd.f32 %v3118_v41, %v2877_v35  ;;  %v1402_v50 = vmul.f32 %v1213_v62, %v2618_v36  ;;  %v1442_v13 = vmul.f32 %v1326_v10, %v2618_v36  ;;  %v1205_v28 = vadd.f32 %v3112_v26, %v2884_v54  ;;  %v3487_v41 = vld [vmem:[#allocation46_spill] sm:$0xff]  ;;  %v3497_v8 = vld [vmem:[#allocation19_spill] sm:$0xff]  ;;  %v3500_v10 = vld [vmem:[#allocation16_spill] sm:$0xff] }
 0x3c3   :  { %2210 = vmatpush3.bf16.msra.mxu0 %v1418_v60  ;;  %2242 = vmatpush3.bf16.msra.mxu1 %v1458_v23  ;;  %v1416_v37 = vpack.c.bf16 %v1405_v0, %v1404_v31  ;;  %v1456_v63 = vpack.c.bf16 %v1445_v25, %v1444_v1  ;;  %v1318_v29 = vadd.f32 %v3114_v59, %v2887_v16  ;;  %v3492_v59 = vld [vmem:[#allocation14_spill] sm:$0xff]  ;;  %v3499_v25 = vld [vmem:[#allocation37_spill] sm:$0xff] }
 0x3c4   :  { %2211 = vmatprep.subr.bf16.mxu0 %v1417_v49  ;;  %2243 = vmatprep.subr.bf16.mxu1 %v1457_v42  ;;  %v1200_v24 = vadd.f32 %v3486_v3, %v3485_v56  ;;  %v1313_v17 = vadd.f32 %v3488_v55, %v3487_v41  ;;  %v1401_v4 = vmul.f32 %v1208_v43, %v3489_v47  ;;  %v3498_v0 = vld [vmem:[#allocation34_spill] sm:$0xff] }
 0x3c5   :  { %v1441_v45 = vmul.f32 %v1321_v40, %v3489_v47  ;;  %v1415_v52 = vpack.c.bf16 %v1403_v57, %v1402_v50  ;;  %v1455_v36 = vpack.c.bf16 %v1443_v61, %v1442_v13  ;;  %v1197_v26 = vadd.f32 %v3491_v9, %v3490_v34  ;;  %v3501_v57 = vld [vmem:[#allocation35_spill] sm:$0xff]  ;;  %v3502_v61 = vld [vmem:[#allocation42_spill] sm:$0xff]  ;;  %v3505_v50 = vld [vmem:[#allocation17_spill] sm:$0xff] }
 0x3c6   :  { %v1310_v44 = vadd.f32 %v3493_v48, %v3492_v59  ;;  %v1400_v60 = vmul.f32 %v1205_v28, %v3494_v53  ;;  %v1440_v23 = vmul.f32 %v1318_v29, %v3494_v53  ;;  %v1399_v11 = vmul.f32 %v1200_v24, %v3495_v6  ;;  %v3503_v40 = vld [vmem:[#allocation18_spill] sm:$0xff]  ;;  %v2322_v9 = vld [vmem:[%s3269_s0 + $0x20] sm:$0xff]   ;;  %v2324_v48 = vld [vmem:[%s3269_s0 + $0x30] sm:$0xff]   ;;  %v1705_v53 = vpop.permute.xlu0 %1704 }
 0x3c7   :  { %2212 = vmatpush3.bf16.msra.mxu0 %v1417_v49  ;;  %2244 = vmatpush3.bf16.msra.mxu1 %v1457_v42  ;;  %v1439_v58 = vmul.f32 %v1313_v17, %v3495_v6  ;;  %v1192_v7 = vadd.f32 %v3497_v8, %v3496_v27  ;;  %v1305_v49 = vadd.f32 %v3499_v25, %v3498_v0  ;;  %v3506_v24 = vld [vmem:[#allocation22_spill] sm:$0xff] }
 0x3c8   :  { %2213 = vmatprep.subr.bf16.mxu0 %v1416_v37  ;;  %2245 = vmatprep.subr.bf16.mxu1 %v1456_v63  ;;  %v1414_v42 = vpack.c.bf16 %v1401_v4, %v1400_v60  ;;  %v1454_v62 = vpack.c.bf16 %v1441_v45, %v1440_v23  ;;  %v1398_v31 = vmul.f32 %v1197_v26, %v3500_v10  ;;  %v2319_v45 = vld [vmem:[%s3269_s0 + $0x8] sm:$0xff]   ;;  %v1710_v60 = vpop.permute.xlu1 %1709 }
 0x3c9   :  { %v1438_v1 = vmul.f32 %v1310_v44, %v3500_v10  ;;  %v1189_v43 = vadd.f32 %v3502_v61, %v3501_v57  ;;  %v1397_v13 = vmul.f32 %v1192_v7, %v3505_v50  ;;  %v1437_v28 = vmul.f32 %v1305_v49, %v3505_v50  ;;  %v2323_v26 = vld [vmem:[%s3269_s0 + $0x28] sm:$0xff]   ;;  %v2325_v44 = vld [vmem:[%s3269_s0 + $0x38] sm:$0xff]  }
 0x3ca   :  { %v1413_v29 = vpack.c.bf16 %v1399_v11, %v1398_v31  ;;  %v1715_v23 = vpop.permute.xlu0 %1714 }
 0x3cb   :  { %2214 = vmatpush3.bf16.msra.mxu0 %v1416_v37  ;;  %2246 = vmatpush3.bf16.msra.mxu1 %v1456_v63  ;;  %v3504_v37 = vld [vmem:[#allocation21_spill] sm:$0xff]  ;;  %v1453_v3 = vpack.c.bf16 %v1439_v58, %v1438_v1  ;;  %v1396_v55 = vmul.f32 %v1189_v43, %v3506_v24 }
 0x3cc   :  { %2215 = vmatprep.subr.bf16.mxu0 %v1415_v52  ;;  %2247 = vmatprep.subr.bf16.mxu1 %v1455_v36  ;;  %v1302_v63 = vadd.f32 %v3504_v37, %v3503_v40  ;;  %v1720_v6 = vpop.permute.xlu1 %1719 }
 0x3cd   :  { %v1412_v47 = vpack.c.bf16 %v1397_v13, %v1396_v55 }
 0x3ce   :  { %v1436_v17 = vmul.f32 %v1302_v63, %v3506_v24  ;;  %v1725_v11 = vpop.permute.xlu0 %1724 }
 0x3cf   :  { %2216 = vmatpush3.bf16.msra.mxu0 %v1415_v52  ;;  %2248 = vmatpush3.bf16.msra.mxu1 %v1455_v36  ;;  %v2320_v52 = vld [vmem:[%s3269_s0 + $0x10] sm:$0xff]   ;;  %v2321_v36 = vld [vmem:[%s3269_s0 + $0x18] sm:$0xff]   ;;  %s2374_s0 = smov [#allocation6]  }
 0x3d0   :  { %2217 = vmatprep.subr.bf16.mxu0 %v1414_v42  ;;  %2249 = vmatprep.subr.bf16.mxu1 %v1454_v62  ;;  %v1452_v4 = vpack.c.bf16 %v1437_v28, %v1436_v17  ;;  %v3219_v58 = vpop.permute.xlu1 %1729  ;;  %s1867_s28 = sshll.u32 %s2374_s0, 4  ;;  %s1868_s28 = int_to_ptr.vmem [resolvable:$true] %s1867_s28 }
 0x3d1   :  { %s2346_s29 = scalar_lea.vmem %s1868_s28, 4096  ;;  %p2351_p6 = scmp.lt.s32.totalorder %s1868_s28, %s1868_s28 }
 0x3d2   :  { %v1735_v25 = vpop.permute.xlu0 %1734  ;;  %p2347_p5 = scmp.ne.s32.totalorder %s1868_s28, %s2346_s29  ;;  %p2352_p7 = scmp.lt.s32.totalorder %s2346_s29, %s2346_s29 }
 0x3d3   :  { %2218 = vmatpush3.bf16.msra.mxu0 %v1414_v42  ;;  %2250 = vmatpush3.bf16.msra.mxu1 %v1454_v62 }
 0x3d4   :  { %2219 = vmatprep.subr.bf16.mxu0 %v1413_v29  ;;  %2251 = vmatprep.subr.bf16.mxu1 %v1453_v3  ;;  %v1740_v50 = vpop.permute.xlu1 %1739  ;;  %p2353_p8 = por %p2352_p7, %p2351_p6 }
 0x3d6   :  { %v3227_v24 = vpop.permute.xlu0 %1744  ;;  %p2354_p9 = pnand %p2353_p8, %p2347_p5 }
 0x3d7   :  { %2220 = vmatpush3.bf16.msra.mxu0 %v1413_v29  ;;  %2252 = vmatpush3.bf16.msra.mxu1 %v1453_v3 }
 0x3d8   :  { %2221 = vmatprep.subr.bf16.mxu0 %v1412_v47  ;;  %2253 = vmatprep.subr.bf16.mxu1 %v1452_v4 }
 0x3db   :  { %2222 = vmatpush3.bf16.msra.mxu0 %v1412_v47  ;;  %2254 = vmatpush3.bf16.msra.mxu1 %v1452_v4 }
 0x3de   :  { %2224 = vmatmul.mubr.bf16.vlgmr.msra.gmra.mxu0 %v2319_v45  ;;  %2256 = vmatmul.mubr.bf16.vlgmr.msra.gmra.mxu1 %v2319_v45 }
 0x3df   :  { %2227 = vmatprep.mubr.bf16.mxu0 %v2320_v52  ;;  %2259 = vmatprep.mubr.bf16.mxu1 %v2320_v52 }
 0x3e6   :  { %2228 = vmatmul.mubr.bf16.gmra.mxu0 %v2321_v36  ;;  %2260 = vmatmul.mubr.bf16.gmra.mxu1 %v2321_v36 }
 0x3e7   :  { %2231 = vmatprep.mubr.bf16.mxu0 %v2322_v9  ;;  %2263 = vmatprep.mubr.bf16.mxu1 %v2322_v9 }
 0x3ee   :  { %2232 = vmatmul.mubr.bf16.gmra.mxu0 %v2323_v26  ;;  %2264 = vmatmul.mubr.bf16.gmra.mxu1 %v2323_v26  ;;  %v3233_v26 = vpop.permute.xlu1 %1749 }
 0x3ef   :  { %2235 = vmatprep.mubr.bf16.mxu0 %v2324_v48  ;;  %2267 = vmatprep.mubr.bf16.mxu1 %v2324_v48 }
 0x3f6   :  { %2236 = vmatmul.mubr.bf16.gmra.mxu0 %v2325_v44  ;;  %2268 = vmatmul.mubr.bf16.gmra.mxu1 %v2325_v44 }
 0x49e   :  { %v2225_v8 = vpop.f32.mrf.mxu0  ;;  %v2257_v7 = vpop.f32.mrf.mxu1 }
 0x49f   :  { %v1503_v49 = vadd.f32 %v2225_v8, %v3490_v34  ;;  %v1616_v42 = vadd.f32 %v2257_v7, %v3492_v59 }
 0x4a0   :  { %v1494_v62 = vpop.f32.mrf.mxu0  ;;  %v1607_v10 = vpop.f32.mrf.mxu1 }
 0x4a1   :  { %v1784_v31 = vmul.f32 %v1715_v23, %v1503_v49  ;;  %v1832_v1 = vmul.f32 %v1715_v23, %v1616_v42  ;;  %v1495_v61 = vadd.f32 %v1494_v62, %v3501_v57  ;;  %v1608_v43 = vadd.f32 %v1607_v10, %v3503_v40 }
 0x4a2   :  { %v2226_v37 = vpop.f32.mrf.mxu0  ;;  %v2258_v63 = vpop.f32.mrf.mxu1 }
 0x4a3   :  { %1800 = vst [vmem:[#allocation6 + $0x20] sm:$0xff] %v1784_v31  ;;  %1848 = vst [vmem:[#allocation6 + $0x28] sm:$0xff] %v1832_v1  ;;  %v1782_v13 = vmul.f32 %v1705_v53, %v1495_v61  ;;  %v1830_v28 = vmul.f32 %v1705_v53, %v1608_v43  ;;  %v1506_v29 = vadd.f32 %v2226_v37, %v3485_v56  ;;  %v1760_v31 = vpop.permute.xlu1 %1759 }
 0x4a4   :  { %v1619_v34 = vadd.f32 %v2258_v63, %v3487_v41  ;;  %v1497_v59 = vpop.f32.mrf.mxu0  ;;  %v1610_v3 = vpop.f32.mrf.mxu1 }
 0x4a5   :  { %1798 = vst [vmem:[#allocation6] sm:$0xff] %v1782_v13  ;;  %1846 = vst [vmem:[#allocation6 + $0x8] sm:$0xff] %v1830_v28  ;;  %v1785_v57 = vmul.f32 %v1720_v6, %v1506_v29  ;;  %v1498_v40 = vadd.f32 %v1497_v59, %v3496_v27  ;;  %v1611_v17 = vadd.f32 %v1610_v3, %v3498_v0 }
 0x4a6   :  { %v1833_v55 = vmul.f32 %v1720_v6, %v1619_v34  ;;  %v2229_v47 = vpop.f32.mrf.mxu0  ;;  %v2261_v4 = vpop.f32.mrf.mxu1 }
 0x4a7   :  { %1801 = vst [vmem:[#allocation6 + $0x30] sm:$0xff] %v1785_v57  ;;  %v1783_v45 = vmul.f32 %v1710_v60, %v1498_v40  ;;  %v1831_v56 = vmul.f32 %v1710_v60, %v1611_v17  ;;  %v1519_v41 = vadd.f32 %v2229_v47, %v2860_v5  ;;  %v1632_v52 = vadd.f32 %v2261_v4, %v2863_v30  ;;  %v1755_v6 = vpop.permute.xlu0 %1754  ;;  %v1770_v3 = vpop.permute.xlu1 %1769 }
 0x4a8   :  { %1849 = vst [vmem:[#allocation6 + $0x38] sm:$0xff] %v1833_v55  ;;  %v1510_v36 = vpop.f32.mrf.mxu0  ;;  %v1623_v9 = vpop.f32.mrf.mxu1 }
 0x4a9   :  { %1799 = vst [vmem:[#allocation6 + $0x10] sm:$0xff] %v1783_v45  ;;  %1847 = vst [vmem:[#allocation6 + $0x18] sm:$0xff] %v1831_v56  ;;  %v1788_v48 = vmul.f32 %v1735_v25, %v1519_v41  ;;  %v1836_v27 = vmul.f32 %v1735_v25, %v1632_v52  ;;  %v1511_v0 = vadd.f32 %v1510_v36, %v2884_v54  ;;  %v3508_v45 = vld [vmem:[#allocation40_spill] sm:$0xff] }
 0x4aa   :  { %v1624_v44 = vadd.f32 %v1623_v9, %v2887_v16  ;;  %v2230_v53 = vpop.f32.mrf.mxu0  ;;  %v2262_v23 = vpop.f32.mrf.mxu1  ;;  %v3509_v9 = vld [vmem:[#allocation43_spill] sm:$0xff] }
 0x4ab   :  { %1804 = vst [vmem:[#allocation6 + $0x60] sm:$0xff] %v1788_v48  ;;  %1852 = vst [vmem:[#allocation6 + $0x68] sm:$0xff] %v1836_v27  ;;  %v1786_v5 = vmul.f32 %v1725_v11, %v1511_v0  ;;  %v1522_v30 = vadd.f32 %v2230_v53, %v2848_v51  ;;  %v1635_v8 = vadd.f32 %v2262_v23, %v2851_v12  ;;  %v1765_v37 = vpop.permute.xlu0 %1764 }
 0x4ac   :  { %v1834_v60 = vmul.f32 %v1725_v11, %v1624_v44  ;;  %v1513_v7 = vpop.f32.mrf.mxu0  ;;  %v1626_v49 = vpop.f32.mrf.mxu1 }
 0x4ad   :  { %1802 = vst [vmem:[#allocation6 + $0x40] sm:$0xff] %v1786_v5  ;;  %v1789_v25 = vmul.f32 %v1740_v50, %v1522_v30  ;;  %v1837_v42 = vmul.f32 %v1740_v50, %v1635_v8  ;;  %v1514_v54 = vadd.f32 %v1513_v7, %v2872_v38  ;;  %v1627_v16 = vadd.f32 %v1626_v49, %v2877_v35  ;;  %v1780_v44 = vpop.permute.xlu1 %1779 }
 0x4ae   :  { %1850 = vst [vmem:[#allocation6 + $0x48] sm:$0xff] %v1834_v60  ;;  %v2233_v62 = vpop.f32.mrf.mxu0  ;;  %v2265_v10 = vpop.f32.mrf.mxu1 }
 0x4af   :  { %1805 = vst [vmem:[#allocation6 + $0x70] sm:$0xff] %v1789_v25  ;;  %1853 = vst [vmem:[#allocation6 + $0x78] sm:$0xff] %v1837_v42  ;;  %v1787_v11 = vmul.f32 %v3219_v58, %v1514_v54  ;;  %v1835_v51 = vmul.f32 %v3219_v58, %v1627_v16  ;;  %v1535_v12 = vadd.f32 %v2233_v62, %v2808_v32  ;;  %v1775_v47 = vpop.permute.xlu0 %1774 }
 0x4b0   :  { %v1648_v1 = vadd.f32 %v2265_v10, %v2811_v33  ;;  %v1526_v61 = vpop.f32.mrf.mxu0  ;;  %v1639_v43 = vpop.f32.mrf.mxu1 }
 0x4b1   :  { %1803 = vst [vmem:[#allocation6 + $0x50] sm:$0xff] %v1787_v11  ;;  %1851 = vst [vmem:[#allocation6 + $0x58] sm:$0xff] %v1835_v51  ;;  %v1792_v38 = vmul.f32 %v1755_v6, %v1535_v12  ;;  %v1527_v63 = vadd.f32 %v1526_v61, %v2838_v46  ;;  %v1640_v50 = vadd.f32 %v1639_v43, %v2844_v2 }
 0x4b2   :  { %v1840_v35 = vmul.f32 %v1755_v6, %v1648_v1  ;;  %v2234_v13 = vpop.f32.mrf.mxu0  ;;  %v2266_v28 = vpop.f32.mrf.mxu1  ;;  %v3510_v6 = vld [vmem:[#allocation41_spill] sm:$0xff] }
 0x4b3   :  { %1808 = vst [vmem:[#allocation6 + $0xa0] sm:$0xff] %v1792_v38  ;;  %v1790_v58 = vmul.f32 %v3227_v24, %v1527_v63  ;;  %v1838_v32 = vmul.f32 %v3227_v24, %v1640_v50  ;;  %v1538_v33 = vadd.f32 %v2234_v13, %v2802_v19  ;;  %v1651_v29 = vadd.f32 %v2266_v28, %v3483_v20  ;;  %v3507_v24 = vld [vmem:[#allocation39_spill] sm:$0xff] }
 0x4b4   :  { %1856 = vst [vmem:[#allocation6 + $0xa8] sm:$0xff] %v1840_v35  ;;  %v1529_v34 = vpop.f32.mrf.mxu0  ;;  %v1642_v59 = vpop.f32.mrf.mxu1 }
 0x4b5   :  { %1806 = vst [vmem:[#allocation6 + $0x80] sm:$0xff] %v1790_v58  ;;  %1854 = vst [vmem:[#allocation6 + $0x88] sm:$0xff] %v1838_v32  ;;  %v1793_v46 = vmul.f32 %v1760_v31, %v1538_v33  ;;  %v1841_v57 = vmul.f32 %v1760_v31, %v1651_v29  ;;  %v1530_v2 = vadd.f32 %v1529_v34, %v2816_v22 }
 0x4b6   :  { %v1643_v55 = vadd.f32 %v1642_v59, %v2819_v39  ;;  %v2237_v40 = vpop.f32.mrf.mxu0  ;;  %v2269_v17 = vpop.f32.mrf.mxu1 }
 0x4b7   :  { %1809 = vst [vmem:[#allocation6 + $0xb0] sm:$0xff] %v1793_v46  ;;  %1857 = vst [vmem:[#allocation6 + $0xb8] sm:$0xff] %v1841_v57  ;;  %v1791_v19 = vmul.f32 %v3233_v26, %v1530_v2  ;;  %v1551_v4 = vadd.f32 %v2237_v40, %v3507_v24  ;;  %v1664_v56 = vadd.f32 %v2269_v17, %v3508_v45 }
 0x4b8   :  { %v1839_v20 = vmul.f32 %v3233_v26, %v1643_v55  ;;  %v1542_v41 = vpop.f32.mrf.mxu0  ;;  %v1655_v52 = vpop.f32.mrf.mxu1 }
 0x4b9   :  { %1807 = vst [vmem:[#allocation6 + $0x90] sm:$0xff] %v1791_v19  ;;  %v1796_v22 = vmul.f32 %v1775_v47, %v1551_v4  ;;  %v1844_v36 = vmul.f32 %v1775_v47, %v1664_v56  ;;  %v1543_v39 = vadd.f32 %v1542_v41, %v3439_v21  ;;  %v1656_v48 = vadd.f32 %v1655_v52, %v3509_v9 }
 0x4ba   :  { %1855 = vst [vmem:[#allocation6 + $0x98] sm:$0xff] %v1839_v20  ;;  %v2238_v27 = vpop.f32.mrf.mxu0  ;;  %v2270_v0 = vpop.f32.mrf.mxu1 }
 0x4bb   :  { %1812 = vst [vmem:[#allocation6 + $0xe0] sm:$0xff] %v1796_v22  ;;  %1860 = vst [vmem:[#allocation6 + $0xe8] sm:$0xff] %v1844_v36  ;;  %v1794_v26 = vmul.f32 %v1765_v37, %v1543_v39  ;;  %v1842_v53 = vmul.f32 %v1765_v37, %v1656_v48  ;;  %v1554_v23 = vadd.f32 %v2238_v27, %v2782_v15 }
 0x4bc   :  { %v1667_v5 = vadd.f32 %v2270_v0, %v3510_v6  ;;  %v1545_v60 = vpop.f32.mrf.mxu0  ;;  %v1658_v30 = vpop.f32.mrf.mxu1 }
 0x4bd   :  { %1810 = vst [vmem:[#allocation6 + $0xc0] sm:$0xff] %v1794_v26  ;;  %1858 = vst [vmem:[#allocation6 + $0xc8] sm:$0xff] %v1842_v53  ;;  %v1797_v21 = vmul.f32 %v1780_v44, %v1554_v23  ;;  %v1546_v7 = vadd.f32 %v1545_v60, %v2788_v14  ;;  %v1659_v49 = vadd.f32 %v1658_v30, %v2799_v18 }
 0x4be   :  { %v1845_v8 = vmul.f32 %v1780_v44, %v1667_v5 }
 0x4bf   :  { %1813 = vst [vmem:[#allocation6 + $0xf0] sm:$0xff] %v1797_v21  ;;  %v1795_v25 = vmul.f32 %v1770_v3, %v1546_v7  ;;  %v1843_v42 = vmul.f32 %v1770_v3, %v1659_v49 }
 0x4c0   :  { %1861 = vst [vmem:[#allocation6 + $0xf8] sm:$0xff] %v1845_v8 }
 0x4c1   :  { %1811 = vst [vmem:[#allocation6 + $0xd0] sm:$0xff] %v1795_v25  ;;  %1859 = vst [vmem:[#allocation6 + $0xd8] sm:$0xff] %v1843_v42 }
 0x4c2   :  { %2357 = shalt.err (!%p2354_p9)
}
 0x4c3   :  { %1873 = dma.vmem_to_hbm [thread:$0]  %s1868_s28, 4096, %s3272_s3, [#allocation5], %s2371_s15, %s2371_s15, %s2372_s16  }
 0x4c4   :  { %2368 = dma.done.wait [#allocation5], 4096  }
 0x4c5   :  { %2369 = vsyncadd [#allocation5], 4294963200 }
 0x4c6   :  { %1877 = vsyncpa [#allocation4], 1 }
 0x4c7   :  { %1878 = vsyncpa [#allocation5], 1 }

</bundles_post_ra>
